<compile_context>
chip_gen: v7x
topology: tpu7x:2x2x1
jax: 0.10.0
libtpu: 0.0.40
codegen_flags: <defaults>
</compile_context>

<pallas_src>
import math

import jax
import jax.numpy as jnp
from jax import lax
from jax.experimental import pallas as pl
from jax.experimental.pallas import tpu as pltpu

LANE = 128
_VMEM = pl.BlockSpec(memory_space=pltpu.MemorySpace.VMEM)


def _pad_axis(x, axis, mult):
    pad = (-x.shape[axis]) % mult
    if pad == 0:
        return x
    widths = [(0, 0)] * x.ndim
    widths[axis] = (0, pad)
    return jnp.pad(x, widths)


# ----------------------------- Pallas kernels -------------------------------

def _conv_pool_kernel(p_ref, w_ref, b_ref, o_ref):
    """Fused conv-as-matmul + bias + 2x2/stride-2 max-pool.

    p_ref : (4, Mb, Kpad) bf16  im2col patches; axis 0 = position inside the
                                 2x2 pooling window, rows = pooled pixels.
    w_ref : (Kpad, Npad)  bf16  (kh, kw, cin)-ordered weights, zero-padded.
    b_ref : (1, Npad)     f32
    o_ref : (Mb, Npad)    bf16  pooled activation rows (lane-dense, Npad=128).
    """
    w = w_ref[...]
    m = jnp.dot(p_ref[0], w, preferred_element_type=jnp.float32)
    for g in range(1, 4):                       # static unroll: 3 extra dots + maxes
        m = jnp.maximum(m, jnp.dot(p_ref[g], w, preferred_element_type=jnp.float32))
    # bias is identical for all 4 window elements, so add it after the max.
    o_ref[...] = (m + b_ref[...]).astype(o_ref.dtype)


def _fc_fused_kernel(x_ref, w1_ref, b1_ref, w2_ref, b2_ref, o_ref):
    """fc1 + bias + relu + fc2 + bias in a single kernel (weights VMEM-resident)."""
    h = jnp.dot(x_ref[...], w1_ref[...], preferred_element_type=jnp.float32)
    h = jnp.maximum(h + b1_ref[...], 0.0)
    o = jnp.dot(h.astype(w2_ref.dtype), w2_ref[...], preferred_element_type=jnp.float32)
    o_ref[...] = o + b2_ref[...]


# ------------------------------ wrappers -------------------------------------

def _im2col_pool_major(x, k, cin):
    """NHWC x -> (4, B*Hp*Wp, Kpad) bf16 patches grouped by pool-window element."""
    B, H, W, _ = x.shape
    Ho, Wo = H - k + 1, W - k + 1
    Hp, Wp = Ho // 2, Wo // 2
    # patch columns ordered (kh, kw, cin) to match the packed weight matrix
    cols = [x[:, i:i + Ho, j:j + Wo, :cin] for i in range(k) for j in range(k)]
    p = jnp.concatenate(cols, axis=-1)                    # (B, Ho, Wo, k*k*cin)
    p = p.reshape(B, Hp, 2, Wp, 2, k * k * cin)
    p = p.transpose(2, 4, 0, 1, 3, 5)                     # (dy, dx, B, Hp, Wp, KC)
    p = p.reshape(4, B * Hp * Wp, k * k * cin)
    p = _pad_axis(p, 2, LANE)                             # lane-dense K for the MXU
    return p.astype(jnp.bfloat16), Hp, Wp


def conv_pool(x, wmat, bias, *, k, cin):
    """conv2d(k x k, valid, stride 1) + bias + max_pool2d(2, 2) on NHWC input."""
    B = x.shape[0]
    p, Hp, Wp = _im2col_pool_major(x, k, cin)
    Kpad = p.shape[2]
    Npad = wmat.shape[1]
    M = B * Hp * Wp
    Mb = Hp * Wp if (Hp * Wp) % 8 == 0 else M             # one image per grid step
    grid = (M // Mb,)
    out = pl.pallas_call(
        _conv_pool_kernel,
        out_shape=jax.ShapeDtypeStruct((M, Npad), jnp.bfloat16),
        grid=grid,
        in_specs=[
            pl.BlockSpec((4, Mb, Kpad), lambda i: (0, i, 0)),
            pl.BlockSpec((Kpad, Npad), lambda i: (0, 0)),   # weights stay resident
            pl.BlockSpec((1, Npad), lambda i: (0, 0)),
        ],
        out_specs=pl.BlockSpec((Mb, Npad), lambda i: (i, 0)),
        compiler_params=pltpu.CompilerParams(
            dimension_semantics=("parallel",)),
    )(p, wmat, bias)
    return out.reshape(B, Hp, Wp, Npad)                   # channel-padded NHWC


def fc_fused(xf, w1, b1, w2, b2, out_dim):
    B = xf.shape[0]
    Npad = w2.shape[1]
    out = pl.pallas_call(
        _fc_fused_kernel,
        out_shape=jax.ShapeDtypeStruct((B, Npad), jnp.float32),
        in_specs=[_VMEM] * 5,
        out_specs=_VMEM,
    )(xf, w1, b1, w2, b2)
    return out[:, :out_dim]


# ------------------------------ parameters -----------------------------------

def init_params(key):
    """PyTorch-layout, PyTorch-default-style init (uniform(+-1/sqrt(fan_in)))."""
    k = jax.random.split(key, 8)

    def u(kk, shape, fan_in):
        bound = 1.0 / math.sqrt(fan_in)
        return jax.random.uniform(kk, shape, jnp.float32, -bound, bound)

    return {
        "conv1_w": u(k[0], (20, 1, 5, 5), 1 * 5 * 5),
        "conv1_b": u(k[1], (20,), 1 * 5 * 5),
        "conv2_w": u(k[2], (50, 20, 5, 5), 20 * 5 * 5),
        "conv2_b": u(k[3], (50,), 20 * 5 * 5),
        "fc1_w": u(k[4], (500, 800), 800),
        "fc1_b": u(k[5], (500,), 800),
        "fc2_w": u(k[6], (10, 500), 500),
        "fc2_b": u(k[7], (10,), 500),
    }


def prepare_kernel_params(p):
    """One-time conversion: PyTorch layout -> padded/transposed kernel operands."""
    def conv_pack(w, b):
        cout, cin, kh, kw = w.shape
        wmat = jnp.transpose(w, (2, 3, 1, 0)).reshape(kh * kw * cin, cout)
        wmat = _pad_axis(_pad_axis(wmat, 0, LANE), 1, LANE).astype(jnp.bfloat16)
        bias = _pad_axis(b.reshape(1, cout), 1, LANE).astype(jnp.float32)
        return wmat, bias

    c1w, c1b = conv_pack(p["conv1_w"], p["conv1_b"])
    c2w, c2b = conv_pack(p["conv2_w"], p["conv2_b"])

    # fc1 consumes the channel-padded NHWC flatten of the (B, 4, 4, 128) pooled
    # activation, so permute its columns from PyTorch's (c, h, w) flatten order
    # to (h, w, c) and zero-pad the channel axis to 128.  This removes the
    # NHWC->NCHW transpose and the channel slice from the forward pass.
    nout1, nin1 = p["fc1_w"].shape                          # (500, 800)
    cout2 = p["conv2_w"].shape[0]                           # 50
    hw = nin1 // cout2                                      # 16
    side = int(math.isqrt(hw))                              # 4
    f1 = p["fc1_w"].reshape(nout1, cout2, side, side)
    f1 = jnp.transpose(f1, (0, 2, 3, 1))                    # (500, 4, 4, 50)
    f1 = _pad_axis(f1, 3, LANE).reshape(nout1, hw * LANE)   # (500, 2048)
    f1 = _pad_axis(f1.T, 1, LANE).astype(jnp.bfloat16)      # (2048, 512)
    f1b = _pad_axis(p["fc1_b"].reshape(1, -1), 1, LANE).astype(jnp.float32)

    f2 = _pad_axis(_pad_axis(p["fc2_w"].T, 0, LANE), 1, LANE).astype(jnp.bfloat16)  # (512, 128)
    f2b = _pad_axis(p["fc2_b"].reshape(1, -1), 1, LANE).astype(jnp.float32)         # (1, 128)

    return {"conv1_w": c1w, "conv1_b": c1b, "conv2_w": c2w, "conv2_b": c2b,
            "fc1_w": f1, "fc1_b": f1b, "fc2_w": f2, "fc2_b": f2b}


# ------------------------------ the network ----------------------------------

def net_forward(x_nchw, kp):
    x = jnp.transpose(x_nchw, (0, 2, 3, 1))                         # (B, 28, 28, 1) NHWC
    x = conv_pool(x, kp["conv1_w"], kp["conv1_b"], k=5, cin=1)      # (B, 12, 12, 128)
    x = conv_pool(x, kp["conv2_w"], kp["conv2_b"], k=5, cin=20)     # (B,  4,  4, 128)
    B = x.shape[0]
    xf = x.reshape(B, -1)                                           # (B, 2048) padded-NHWC flatten
    return fc_fused(xf, kp["fc1_w"], kp["fc1_b"],
                    kp["fc2_w"], kp["fc2_b"], out_dim=10)           # (B, 10)


def reference_forward(x, p):
    """Pure-JAX f32 reference of the PyTorch module (for correctness check)."""
    hi = lax.Precision.HIGHEST
    y = lax.conv_general_dilated(x, p["conv1_w"], (1, 1), "VALID",
                                 dimension_numbers=("NCHW", "OIHW", "NCHW"),
                                 precision=hi)
    y = y + p["conv1_b"][None, :, None, None]
    y = lax.reduce_window(y, -jnp.inf, lax.max, (1, 1, 2, 2), (1, 1, 2, 2), "VALID")
    y = lax.conv_general_dilated(y, p["conv2_w"], (1, 1), "VALID",
                                 dimension_numbers=("NCHW", "OIHW", "NCHW"),
                                 precision=hi)
    y = y + p["conv2_b"][None, :, None, None]
    y = lax.reduce_window(y, -jnp.inf, lax.max, (1, 1, 2, 2), (1, 1, 2, 2), "VALID")
    y = y.reshape(y.shape[0], -1)
    y = jnp.maximum(jnp.dot(y, p["fc1_w"].T, precision=hi) + p["fc1_b"], 0.0)
    y = jnp.dot(y, p["fc2_w"].T, precision=hi) + p["fc2_b"]
    return y


if __name__ == "__main__":
    key = jax.random.PRNGKey(0)
    pkey, xkey = jax.random.split(key)
    params = init_params(pkey)
    kp = prepare_kernel_params(params)      # one-time weight pad/transpose
    # 28x28 single-channel input so the flatten yields exactly 800 features
    x = jax.random.normal(xkey, (2, 1, 28, 28), jnp.float32)

    out = jax.jit(net_forward)(x, kp)
    out = jax.block_until_ready(out)
    assert out.shape == (2, 10), out.shape
    assert bool(jnp.all(jnp.isfinite(out)))

    # loose tolerance: kernels use bf16 operands / bf16 inter-stage activations
    ref = reference_forward(x, params)
    assert bool(jnp.allclose(out, ref, atol=0.15, rtol=0.1)), (
        float(jnp.max(jnp.abs(out - ref))))

    print("KERNEL_OK")
</pallas_src>

<mosaic_0001>
module attributes {stable_mosaic.version = 11 : i64} {
  func.func @_conv_pool_kernel(%arg0: i32, %arg1: memref<4x144x128xbf16, #tpu.memory_space<vmem>>, %arg2: memref<128x128xbf16, #tpu.memory_space<vmem>>, %arg3: memref<1x128xf32, #tpu.memory_space<vmem>>, %arg4: memref<144x128xbf16, #tpu.memory_space<vmem>>) attributes {dimension_semantics = [#tpu.dimension_semantics<parallel>], iteration_bounds = array<i64: 2>, scalar_prefetch = 0 : i64, scratch_operands = 0 : i64, tpu.core_type = #tpu.core_type<tc>, window_params = [{transform_indices = @transform_0, window_bounds = array<i64: 4, 144, 128>}, {pipeline_mode = #tpu.pipeline_mode<synchronous>, transform_indices = @transform_1, window_bounds = array<i64: 128, 128>}, {pipeline_mode = #tpu.pipeline_mode<synchronous>, transform_indices = @transform_2, window_bounds = array<i64: 1, 128>}, {transform_indices = @transform_3, window_bounds = array<i64: 144, 128>}]} {
    %c0 = arith.constant 0 : index
    %c0_0 = arith.constant 0 : index
    %0 = vector.load %arg2[%c0, %c0_0] : memref<128x128xbf16, #tpu.memory_space<vmem>>, vector<128x128xbf16>
    %c0_1 = arith.constant 0 : index
    %c0_2 = arith.constant 0 : index
    %c0_3 = arith.constant 0 : index
    %1 = vector.load %arg1[%c0_1, %c0_2, %c0_3] : memref<4x144x128xbf16, #tpu.memory_space<vmem>>, vector<1x144x128xbf16>
    %2 = vector.shape_cast %1 : vector<1x144x128xbf16> to vector<144x128xbf16>
    %cst = arith.constant dense<0.000000e+00> : vector<144x128xf32>
    %3 = tpu.matmul %2, %0, %cst {dimension_numbers = #tpu.dot_dimension_numbers<[1], [0], [0], [1], [0, 0, 1, 1], [], []>} : vector<144x128xbf16>, vector<128x128xbf16>, vector<144x128xf32> -> vector<144x128xf32>
    %c1 = arith.constant 1 : index
    %c0_4 = arith.constant 0 : index
    %c0_5 = arith.constant 0 : index
    %4 = vector.load %arg1[%c1, %c0_4, %c0_5] : memref<4x144x128xbf16, #tpu.memory_space<vmem>>, vector<1x144x128xbf16>
    %5 = vector.shape_cast %4 : vector<1x144x128xbf16> to vector<144x128xbf16>
    %cst_6 = arith.constant dense<0.000000e+00> : vector<144x128xf32>
    %6 = tpu.matmul %5, %0, %cst_6 {dimension_numbers = #tpu.dot_dimension_numbers<[1], [0], [0], [1], [0, 0, 1, 1], [], []>} : vector<144x128xbf16>, vector<128x128xbf16>, vector<144x128xf32> -> vector<144x128xf32>
    %7 = arith.maximumf %3, %6 : vector<144x128xf32>
    %c2 = arith.constant 2 : index
    %c0_7 = arith.constant 0 : index
    %c0_8 = arith.constant 0 : index
    %8 = vector.load %arg1[%c2, %c0_7, %c0_8] : memref<4x144x128xbf16, #tpu.memory_space<vmem>>, vector<1x144x128xbf16>
    %9 = vector.shape_cast %8 : vector<1x144x128xbf16> to vector<144x128xbf16>
    %cst_9 = arith.constant dense<0.000000e+00> : vector<144x128xf32>
    %10 = tpu.matmul %9, %0, %cst_9 {dimension_numbers = #tpu.dot_dimension_numbers<[1], [0], [0], [1], [0, 0, 1, 1], [], []>} : vector<144x128xbf16>, vector<128x128xbf16>, vector<144x128xf32> -> vector<144x128xf32>
    %11 = arith.maximumf %7, %10 : vector<144x128xf32>
    %c3 = arith.constant 3 : index
    %c0_10 = arith.constant 0 : index
    %c0_11 = arith.constant 0 : index
    %12 = vector.load %arg1[%c3, %c0_10, %c0_11] : memref<4x144x128xbf16, #tpu.memory_space<vmem>>, vector<1x144x128xbf16>
    %13 = vector.shape_cast %12 : vector<1x144x128xbf16> to vector<144x128xbf16>
    %cst_12 = arith.constant dense<0.000000e+00> : vector<144x128xf32>
    %14 = tpu.matmul %13, %0, %cst_12 {dimension_numbers = #tpu.dot_dimension_numbers<[1], [0], [0], [1], [0, 0, 1, 1], [], []>} : vector<144x128xbf16>, vector<128x128xbf16>, vector<144x128xf32> -> vector<144x128xf32>
    %15 = arith.maximumf %11, %14 : vector<144x128xf32>
    %c0_13 = arith.constant 0 : index
    %c0_14 = arith.constant 0 : index
    %16 = vector.load %arg3[%c0_13, %c0_14] : memref<1x128xf32, #tpu.memory_space<vmem>>, vector<1x128xf32>
    %17 = vector.broadcast %16 : vector<1x128xf32> to vector<144x128xf32>
    %18 = arith.addf %15, %17 : vector<144x128xf32>
    %19 = arith.truncf %18 : vector<144x128xf32> to vector<144x128xbf16>
    %c0_15 = arith.constant 0 : index
    %c0_16 = arith.constant 0 : index
    %20 = vector.load %arg4[%c0_15, %c0_16] : memref<144x128xbf16, #tpu.memory_space<vmem>>, vector<144x128xbf16>
    tpu.vector_store %arg4[%c0_15, %c0_16], %19 {strides = array<i32>} : memref<144x128xbf16, #tpu.memory_space<vmem>>, vector<144x128xbf16>,
    return
  }
  func.func @transform_0(%arg0: i32) -> (i32, i32, i32) {
    %c0_i32 = arith.constant 0 : i32
    %c0_i32_0 = arith.constant 0 : i32
    %c0_i32_1 = arith.constant 0 : i32
    return %c0_i32, %arg0, %c0_i32_0 : i32, i32, i32
  }
  func.func @transform_1(%arg0: i32) -> (i32, i32) {
    %c0_i32 = arith.constant 0 : i32
    %c0_i32_0 = arith.constant 0 : i32
    %c0_i32_1 = arith.constant 0 : i32
    return %c0_i32, %c0_i32_0 : i32, i32
  }
  func.func @transform_2(%arg0: i32) -> (i32, i32) {
    %c0_i32 = arith.constant 0 : i32
    %c0_i32_0 = arith.constant 0 : i32
    %c0_i32_1 = arith.constant 0 : i32
    return %c0_i32, %c0_i32_0 : i32, i32
  }
  func.func @transform_3(%arg0: i32) -> (i32, i32) {
    %c0_i32 = arith.constant 0 : i32
    %c0_i32_0 = arith.constant 0 : i32
    return %arg0, %c0_i32 : i32, i32
  }
}

module attributes {stable_mosaic.version = 11 : i64} {
  func.func @_conv_pool_kernel(%arg0: i32, %arg1: memref<4x16x512xbf16, #tpu.memory_space<vmem>>, %arg2: memref<512x128xbf16, #tpu.memory_space<vmem>>, %arg3: memref<1x128xf32, #tpu.memory_space<vmem>>, %arg4: memref<16x128xbf16, #tpu.memory_space<vmem>>) attributes {dimension_semantics = [#tpu.dimension_semantics<parallel>], iteration_bounds = array<i64: 2>, scalar_prefetch = 0 : i64, scratch_operands = 0 : i64, tpu.core_type = #tpu.core_type<tc>, window_params = [{transform_indices = @transform_0, window_bounds = array<i64: 4, 16, 512>}, {pipeline_mode = #tpu.pipeline_mode<synchronous>, transform_indices = @transform_1, window_bounds = array<i64: 512, 128>}, {pipeline_mode = #tpu.pipeline_mode<synchronous>, transform_indices = @transform_2, window_bounds = array<i64: 1, 128>}, {transform_indices = @transform_3, window_bounds = array<i64: 16, 128>}]} {
    %c0 = arith.constant 0 : index
    %c0_0 = arith.constant 0 : index
    %0 = vector.load %arg2[%c0, %c0_0] : memref<512x128xbf16, #tpu.memory_space<vmem>>, vector<512x128xbf16>
    %c0_1 = arith.constant 0 : index
    %c0_2 = arith.constant 0 : index
    %c0_3 = arith.constant 0 : index
    %1 = vector.load %arg1[%c0_1, %c0_2, %c0_3] : memref<4x16x512xbf16, #tpu.memory_space<vmem>>, vector<1x16x512xbf16>
    %2 = vector.shape_cast %1 : vector<1x16x512xbf16> to vector<16x512xbf16>
    %cst = arith.constant dense<0.000000e+00> : vector<16x128xf32>
    %3 = tpu.matmul %2, %0, %cst {dimension_numbers = #tpu.dot_dimension_numbers<[1], [0], [0], [1], [0, 0, 1, 1], [], []>} : vector<16x512xbf16>, vector<512x128xbf16>, vector<16x128xf32> -> vector<16x128xf32>
    %c1 = arith.constant 1 : index
    %c0_4 = arith.constant 0 : index
    %c0_5 = arith.constant 0 : index
    %4 = vector.load %arg1[%c1, %c0_4, %c0_5] : memref<4x16x512xbf16, #tpu.memory_space<vmem>>, vector<1x16x512xbf16>
    %5 = vector.shape_cast %4 : vector<1x16x512xbf16> to vector<16x512xbf16>
    %cst_6 = arith.constant dense<0.000000e+00> : vector<16x128xf32>
    %6 = tpu.matmul %5, %0, %cst_6 {dimension_numbers = #tpu.dot_dimension_numbers<[1], [0], [0], [1], [0, 0, 1, 1], [], []>} : vector<16x512xbf16>, vector<512x128xbf16>, vector<16x128xf32> -> vector<16x128xf32>
    %7 = arith.maximumf %3, %6 : vector<16x128xf32>
    %c2 = arith.constant 2 : index
    %c0_7 = arith.constant 0 : index
    %c0_8 = arith.constant 0 : index
    %8 = vector.load %arg1[%c2, %c0_7, %c0_8] : memref<4x16x512xbf16, #tpu.memory_space<vmem>>, vector<1x16x512xbf16>
    %9 = vector.shape_cast %8 : vector<1x16x512xbf16> to vector<16x512xbf16>
    %cst_9 = arith.constant dense<0.000000e+00> : vector<16x128xf32>
    %10 = tpu.matmul %9, %0, %cst_9 {dimension_numbers = #tpu.dot_dimension_numbers<[1], [0], [0], [1], [0, 0, 1, 1], [], []>} : vector<16x512xbf16>, vector<512x128xbf16>, vector<16x128xf32> -> vector<16x128xf32>
    %11 = arith.maximumf %7, %10 : vector<16x128xf32>
    %c3 = arith.constant 3 : index
    %c0_10 = arith.constant 0 : index
    %c0_11 = arith.constant 0 : index
    %12 = vector.load %arg1[%c3, %c0_10, %c0_11] : memref<4x16x512xbf16, #tpu.memory_space<vmem>>, vector<1x16x512xbf16>
    %13 = vector.shape_cast %12 : vector<1x16x512xbf16> to vector<16x512xbf16>
    %cst_12 = arith.constant dense<0.000000e+00> : vector<16x128xf32>
    %14 = tpu.matmul %13, %0, %cst_12 {dimension_numbers = #tpu.dot_dimension_numbers<[1], [0], [0], [1], [0, 0, 1, 1], [], []>} : vector<16x512xbf16>, vector<512x128xbf16>, vector<16x128xf32> -> vector<16x128xf32>
    %15 = arith.maximumf %11, %14 : vector<16x128xf32>
    %c0_13 = arith.constant 0 : index
    %c0_14 = arith.constant 0 : index
    %16 = vector.load %arg3[%c0_13, %c0_14] : memref<1x128xf32, #tpu.memory_space<vmem>>, vector<1x128xf32>
    %17 = vector.broadcast %16 : vector<1x128xf32> to vector<16x128xf32>
    %18 = arith.addf %15, %17 : vector<16x128xf32>
    %19 = arith.truncf %18 : vector<16x128xf32> to vector<16x128xbf16>
    %c0_15 = arith.constant 0 : index
    %c0_16 = arith.constant 0 : index
    %20 = vector.load %arg4[%c0_15, %c0_16] : memref<16x128xbf16, #tpu.memory_space<vmem>>, vector<16x128xbf16>
    tpu.vector_store %arg4[%c0_15, %c0_16], %19 {strides = array<i32>} : memref<16x128xbf16, #tpu.memory_space<vmem>>, vector<16x128xbf16>,
    return
  }
  func.func @transform_0(%arg0: i32) -> (i32, i32, i32) {
    %c0_i32 = arith.constant 0 : i32
    %c0_i32_0 = arith.constant 0 : i32
    %c0_i32_1 = arith.constant 0 : i32
    return %c0_i32, %arg0, %c0_i32_0 : i32, i32, i32
  }
  func.func @transform_1(%arg0: i32) -> (i32, i32) {
    %c0_i32 = arith.constant 0 : i32
    %c0_i32_0 = arith.constant 0 : i32
    %c0_i32_1 = arith.constant 0 : i32
    return %c0_i32, %c0_i32_0 : i32, i32
  }
  func.func @transform_2(%arg0: i32) -> (i32, i32) {
    %c0_i32 = arith.constant 0 : i32
    %c0_i32_0 = arith.constant 0 : i32
    %c0_i32_1 = arith.constant 0 : i32
    return %c0_i32, %c0_i32_0 : i32, i32
  }
  func.func @transform_3(%arg0: i32) -> (i32, i32) {
    %c0_i32 = arith.constant 0 : i32
    %c0_i32_0 = arith.constant 0 : i32
    return %arg0, %c0_i32 : i32, i32
  }
}

module attributes {stable_mosaic.version = 11 : i64} {
  func.func @_fc_fused_kernel(%arg0: memref<2x2048xbf16, #tpu.memory_space<vmem>>, %arg1: memref<2048x512xbf16, #tpu.memory_space<vmem>>, %arg2: memref<1x512xf32, #tpu.memory_space<vmem>>, %arg3: memref<512x128xbf16, #tpu.memory_space<vmem>>, %arg4: memref<1x128xf32, #tpu.memory_space<vmem>>, %arg5: memref<2x128xf32, #tpu.memory_space<vmem>>) attributes {dimension_semantics = [], scalar_prefetch = 0 : i64, scratch_operands = 0 : i64, tpu.core_type = #tpu.core_type<tc>} {
    %c0 = arith.constant 0 : index
    %c0_0 = arith.constant 0 : index
    %0 = vector.load %arg0[%c0, %c0_0] : memref<2x2048xbf16, #tpu.memory_space<vmem>>, vector<2x2048xbf16>
    %c0_1 = arith.constant 0 : index
    %c0_2 = arith.constant 0 : index
    %1 = vector.load %arg1[%c0_1, %c0_2] : memref<2048x512xbf16, #tpu.memory_space<vmem>>, vector<2048x512xbf16>
    %cst = arith.constant dense<0.000000e+00> : vector<2x512xf32>
    %2 = tpu.matmul %0, %1, %cst {dimension_numbers = #tpu.dot_dimension_numbers<[1], [0], [0], [1], [0, 0, 1, 1], [], []>} : vector<2x2048xbf16>, vector<2048x512xbf16>, vector<2x512xf32> -> vector<2x512xf32>
    %c0_3 = arith.constant 0 : index
    %c0_4 = arith.constant 0 : index
    %3 = vector.load %arg2[%c0_3, %c0_4] : memref<1x512xf32, #tpu.memory_space<vmem>>, vector<1x512xf32>
    %4 = vector.broadcast %3 : vector<1x512xf32> to vector<2x512xf32>
    %5 = arith.addf %2, %4 : vector<2x512xf32>
    %cst_5 = arith.constant 0.000000e+00 : f32
    %6 = vector.broadcast %cst_5 : f32 to vector<2x512xf32>
    %7 = arith.maximumf %5, %6 : vector<2x512xf32>
    %8 = arith.truncf %7 : vector<2x512xf32> to vector<2x512xbf16>
    %c0_6 = arith.constant 0 : index
    %c0_7 = arith.constant 0 : index
    %9 = vector.load %arg3[%c0_6, %c0_7] : memref<512x128xbf16, #tpu.memory_space<vmem>>, vector<512x128xbf16>
    %cst_8 = arith.constant dense<0.000000e+00> : vector<2x128xf32>
    %10 = tpu.matmul %8, %9, %cst_8 {dimension_numbers = #tpu.dot_dimension_numbers<[1], [0], [0], [1], [0, 0, 1, 1], [], []>} : vector<2x512xbf16>, vector<512x128xbf16>, vector<2x128xf32> -> vector<2x128xf32>
    %c0_9 = arith.constant 0 : index
    %c0_10 = arith.constant 0 : index
    %11 = vector.load %arg4[%c0_9, %c0_10] : memref<1x128xf32, #tpu.memory_space<vmem>>, vector<1x128xf32>
    %12 = vector.broadcast %11 : vector<1x128xf32> to vector<2x128xf32>
    %13 = arith.addf %10, %12 : vector<2x128xf32>
    %c0_11 = arith.constant 0 : index
    %c0_12 = arith.constant 0 : index
    %14 = vector.load %arg5[%c0_11, %c0_12] : memref<2x128xf32, #tpu.memory_space<vmem>>, vector<2x128xf32>
    tpu.vector_store %arg5[%c0_11, %c0_12], %13 {strides = array<i32>} : memref<2x128xf32, #tpu.memory_space<vmem>>, vector<2x128xf32>,
    return
  }
}

</mosaic_0001>

<bundles_post_ra>
// kernel: net_forward.3
= control target key start
LH: loop header
LB: loop body
LE: loop exit
PB: predicated region body
PF: predicated region fallthrough
CT: control target
= control target key end

     0   :  { %s2098_s12 = smov 0   ;;  %s2100_s13 = smov 0   ;;  %s2588_s0 = inlined_call_operand.vmem [shape: bf16[4,288,128], index: 0, kind: input, shape index: {}]   ;;  %s2589_s1 = inlined_call_operand.vmem [shape: bf16[128,128], index: 1, kind: input, shape index: {}]   ;;  %s2590_s2 = inlined_call_operand.vmem [shape: f32[1,128], index: 2, kind: input, shape index: {}]   ;;  %s2591_s3 = inlined_call_operand.vmem [shape: bf16[288,128], index: 3, kind: output, shape index: {}]  }
   0x1   :  { %s2102_s14 = smov 0  }
   0x2 LB: > { %s1506_s15 = sadd.s32 4294967295, %s2074_s14   ;;  %s2115_s16 = sadd.s32 1, %s2074_s14   ;;  %s2074_s14 = sphi %s2102_s14, %s2596_s14   ;;  %s2070_s13 = sphi %s2100_s13, %s2595_s13   ;;  %s2066_s12 = sphi %s2098_s12, %s2594_s12  }
   0x3   : > { %s17_s17 = ssub.s32 %s2074_s14, %s2115_s16  ;;  %s20_s18 = sadd.s32 1, %s2070_s13 }
   0x4   : > { %p18_p0 = scmp.eq.s32.totalorder %s17_s17, 0  ;;  %p27_p1 = scmp.ne.s32.totalorder %s2070_s13, %s2066_s12 }
   0x5   : > { %p28_p2 = scmp.eq.s32.totalorder %s2074_s14, 0  ;;  %p1509_p4 = scmp.ge.s32.totalorder %s2074_s14, 2 }
   0x6   : > { %s2124_s19 = scalar_select %p18_p0, %s2070_s13, %s20_s18  }
   0x7   : > { %p29_p3 = por %p28_p2, %p27_p1  ;;  %127 = sbr.rel (%p1509_p4) target bundleno = 37 (0x25), region = 24 }
   0xe   : > { %130 = sbr.rel (!%p29_p3) target bundleno = 37 (0x25), region = 28  ;;  %s132_s20 = sand.u32 (%p29_p3), 1, %s2070_s13  }
   0xf   : > { %s1632_s21 = smul.u32 (%p29_p3), 72, %s2074_s14 }
  0x10   : > { %s1980_s22 = smul.u32 (%p29_p3), 288, %s132_s20 }
  0x11   : > { %s2132_s25 = scalar_lea.vmem (%p29_p3), %s2588_s0, %s1632_s21 }
  0x12   : > { %v153_v0 = vld [vmem:[%s2132_s25] sm:$0xff] (%p29_p3)   ;;  %v157_v1 = vld [vmem:[%s2132_s25 + $0x8] sm:$0xff] (%p29_p3)   ;;  %v161_v2 = vld [vmem:[%s2132_s25 + $0x10] sm:$0xff] (%p29_p3)   ;;  %s2137_s26 = scalar_lea.vmem (%p29_p3), [#allocation2], %s1980_s22 }
  0x13   : > { %154 = vst [vmem:[%s2137_s26] sm:$0xff] (%p29_p3), %v153_v0   ;;  %158 = vst [vmem:[%s2137_s26 + $0x8] sm:$0xff] (%p29_p3), %v157_v1   ;;  %v165_v3 = vld [vmem:[%s2132_s25 + $0x18] sm:$0xff] (%p29_p3)   ;;  %v169_v4 = vld [vmem:[%s2132_s25 + $0x20] sm:$0xff] (%p29_p3)  }
  0x14   : > { %162 = vst [vmem:[%s2137_s26 + $0x10] sm:$0xff] (%p29_p3), %v161_v2   ;;  %v173_v5 = vld [vmem:[%s2132_s25 + $0x28] sm:$0xff] (%p29_p3)   ;;  %166 = vst [vmem:[%s2137_s26 + $0x18] sm:$0xff] (%p29_p3), %v165_v3   ;;  %v177_v6 = vld [vmem:[%s2132_s25 + $0x30] sm:$0xff] (%p29_p3)  }
  0x15   : > { %170 = vst [vmem:[%s2137_s26 + $0x20] sm:$0xff] %v169_v4   ;;  %174 = vst [vmem:[%s2137_s26 + $0x28] sm:$0xff] %v173_v5   ;;  %v181_v7 = vld [vmem:[%s2132_s25 + $0x38] sm:$0xff]   ;;  %v185_v8 = vld [vmem:[%s2132_s25 + $0x40] sm:$0xff]  }
  0x16   : > { %178 = vst [vmem:[%s2137_s26 + $0x30] sm:$0xff] %v177_v6   ;;  %182 = vst [vmem:[%s2137_s26 + $0x38] sm:$0xff] %v181_v7   ;;  %v189_v9 = vld [vmem:[%s2132_s25 + $0x90] sm:$0xff]   ;;  %v193_v10 = vld [vmem:[%s2132_s25 + $0x98] sm:$0xff]  }
  0x17   : > { %186 = vst [vmem:[%s2137_s26 + $0x40] sm:$0xff] %v185_v8   ;;  %v197_v11 = vld [vmem:[%s2132_s25 + $0xa0] sm:$0xff]   ;;  %190 = vst [vmem:[%s2137_s26 + $0x48] sm:$0xff] %v189_v9   ;;  %v201_v12 = vld [vmem:[%s2132_s25 + $0xa8] sm:$0xff]  }
  0x18   : > { %194 = vst [vmem:[%s2137_s26 + $0x50] sm:$0xff] %v193_v10   ;;  %198 = vst [vmem:[%s2137_s26 + $0x58] sm:$0xff] %v197_v11   ;;  %v205_v13 = vld [vmem:[%s2132_s25 + $0xb0] sm:$0xff]   ;;  %v209_v14 = vld [vmem:[%s2132_s25 + $0xb8] sm:$0xff]  }
  0x19   : > { %202 = vst [vmem:[%s2137_s26 + $0x60] sm:$0xff] %v201_v12   ;;  %206 = vst [vmem:[%s2137_s26 + $0x68] sm:$0xff] %v205_v13   ;;  %v213_v15 = vld [vmem:[%s2132_s25 + $0xc0] sm:$0xff]   ;;  %v217_v16 = vld [vmem:[%s2132_s25 + $0xc8] sm:$0xff]  }
  0x1a   : > { %210 = vst [vmem:[%s2137_s26 + $0x70] sm:$0xff] %v209_v14   ;;  %v221_v17 = vld [vmem:[%s2132_s25 + $0xd0] sm:$0xff]   ;;  %214 = vst [vmem:[%s2137_s26 + $0x78] sm:$0xff] %v213_v15   ;;  %v225_v18 = vld [vmem:[%s2132_s25 + $0x120] sm:$0xff]  }
  0x1b   : > { %218 = vst [vmem:[%s2137_s26 + $0x80] sm:$0xff] %v217_v16   ;;  %222 = vst [vmem:[%s2137_s26 + $0x88] sm:$0xff] %v221_v17   ;;  %v229_v19 = vld [vmem:[%s2132_s25 + $0x128] sm:$0xff]   ;;  %v233_v20 = vld [vmem:[%s2132_s25 + $0x130] sm:$0xff]  }
  0x1c   : > { %226 = vst [vmem:[%s2137_s26 + $0x90] sm:$0xff] %v225_v18   ;;  %230 = vst [vmem:[%s2137_s26 + $0x98] sm:$0xff] %v229_v19   ;;  %v237_v21 = vld [vmem:[%s2132_s25 + $0x138] sm:$0xff]   ;;  %v241_v22 = vld [vmem:[%s2132_s25 + $0x140] sm:$0xff]  }
  0x1d   : > { %234 = vst [vmem:[%s2137_s26 + $0xa0] sm:$0xff] %v233_v20   ;;  %v245_v23 = vld [vmem:[%s2132_s25 + $0x148] sm:$0xff]   ;;  %238 = vst [vmem:[%s2137_s26 + $0xa8] sm:$0xff] %v237_v21   ;;  %v249_v24 = vld [vmem:[%s2132_s25 + $0x150] sm:$0xff]  }
  0x1e   : > { %242 = vst [vmem:[%s2137_s26 + $0xb0] sm:$0xff] %v241_v22   ;;  %246 = vst [vmem:[%s2137_s26 + $0xb8] sm:$0xff] %v245_v23   ;;  %v253_v25 = vld [vmem:[%s2132_s25 + $0x158] sm:$0xff]   ;;  %v257_v26 = vld [vmem:[%s2132_s25 + $0x160] sm:$0xff]  }
  0x1f   : > { %250 = vst [vmem:[%s2137_s26 + $0xc0] sm:$0xff] %v249_v24   ;;  %254 = vst [vmem:[%s2137_s26 + $0xc8] sm:$0xff] %v253_v25   ;;  %v261_v27 = vld [vmem:[%s2132_s25 + $0x1b0] sm:$0xff]   ;;  %v265_v28 = vld [vmem:[%s2132_s25 + $0x1b8] sm:$0xff]  }
  0x20   : > { %258 = vst [vmem:[%s2137_s26 + $0xd0] sm:$0xff] %v257_v26   ;;  %v269_v29 = vld [vmem:[%s2132_s25 + $0x1c0] sm:$0xff]   ;;  %262 = vst [vmem:[%s2137_s26 + $0xd8] sm:$0xff] %v261_v27   ;;  %v273_v30 = vld [vmem:[%s2132_s25 + $0x1c8] sm:$0xff]  }
  0x21   : > { %266 = vst [vmem:[%s2137_s26 + $0xe0] sm:$0xff] %v265_v28   ;;  %270 = vst [vmem:[%s2137_s26 + $0xe8] sm:$0xff] %v269_v29   ;;  %v277_v31 = vld [vmem:[%s2132_s25 + $0x1d0] sm:$0xff]   ;;  %v281_v32 = vld [vmem:[%s2132_s25 + $0x1d8] sm:$0xff]  }
  0x22   : > { %274 = vst [vmem:[%s2137_s26 + $0xf0] sm:$0xff] %v273_v30   ;;  %278 = vst [vmem:[%s2137_s26 + $0xf8] sm:$0xff] %v277_v31   ;;  %v285_v33 = vld [vmem:[%s2132_s25 + $0x1e0] sm:$0xff]   ;;  %v289_v34 = vld [vmem:[%s2132_s25 + $0x1e8] sm:$0xff]  }
  0x23   : > { %282 = vst [vmem:[%s2137_s26 + $0x100] sm:$0xff] %v281_v32   ;;  %v293_v35 = vld [vmem:[%s2132_s25 + $0x1f0] sm:$0xff]   ;;  %286 = vst [vmem:[%s2137_s26 + $0x108] sm:$0xff] %v285_v33  }
  0x24   : > { %290 = vst [vmem:[%s2137_s26 + $0x110] sm:$0xff] %v289_v34   ;;  %294 = vst [vmem:[%s2137_s26 + $0x118] sm:$0xff] %v293_v35  }
  0x25 PF: > { %p1511_p5 = scmp.ge.s32.totalorder %s2074_s14, 1  ;;  %p462_p6 = scmp.lt.s32.totalorder %s2074_s14, 3 }
  0x27   : > { %p463_p7 = pnand %p1511_p5, %p462_p6 }
  0x28   : > { %v2008_v36 = vld [vmem:[%s2589_s1] sm:$0xff] (!%p463_p7)   ;;  %v2076_v37 = vmov (!%p463_p7), 0.0   ;;  %v2009_v38 = vld [vmem:[%s2589_s1 + $0x8] sm:$0xff] (!%p463_p7)   ;;  %s469_s4 = sand.u32 (!%p463_p7), 1, %s2066_s12   ;;  %vm2077_vm0 = vmmov (!%p463_p7), 0   ;;  %v2010_v39 = vld [vmem:[%s2589_s1 + $0x10] sm:$0xff] (!%p463_p7)  }
  0x29   : > { %466 = sbr.rel (%p463_p7) target bundleno = 432 (0x1b0), region = 69  ;;  %1772 = vmatprep.subr.bf16.mxu0 (!%p463_p7), %v2076_v37  ;;  %1824 = vmatprep.subr.bf16.mxu1 (!%p463_p7), %v2076_v37  ;;  %v2011_v40 = vld [vmem:[%s2589_s1 + $0x18] sm:$0xff] (!%p463_p7)   ;;  %v2012_v41 = vld [vmem:[%s2589_s1 + $0x20] sm:$0xff] (!%p463_p7)   ;;  %v2013_v42 = vld [vmem:[%s2589_s1 + $0x28] sm:$0xff] (!%p463_p7)  }
  0x2a   : > { %1773 = vmatpush3.bf16.msra.mxu0 (!%p463_p7), %v2008_v36  ;;  %1825 = vmatpush3.bf16.msra.mxu1 (!%p463_p7), %v2008_v36  ;;  %s1981_s5 = smul.u32 (!%p463_p7), 288, %s469_s4  ;;  %v2014_v43 = vld [vmem:[%s2589_s1 + $0x30] sm:$0xff] (!%p463_p7)   ;;  %v2015_v44 = vld [vmem:[%s2589_s1 + $0x38] sm:$0xff] (!%p463_p7)  }
  0x2b   : > { %1774 = vmatprep.subr.bf16.mxu0 (!%p463_p7), %v2076_v37  ;;  %1826 = vmatprep.subr.bf16.mxu1 (!%p463_p7), %v2076_v37  ;;  %s493_s24 = smul.u32 (!%p463_p7), 18, %s1506_s15 }
  0x2c   : > { %1788 = vmatprep.mubr.msk.bf16.mxu0 (!%p463_p7), %vm2077_vm0, %v2076_v37  ;;  %1840 = vmatprep.mubr.msk.bf16.mxu1 (!%p463_p7), %vm2077_vm0, %v2076_v37  ;;  %s2230_s8 = scalar_lea.vmem (!%p463_p7), [#allocation2], %s1981_s5 }
  0x2d   : > { %v2016_v45 = vld [vmem:[%s2230_s8] sm:$0xff] (!%p463_p7)   ;;  %v2017_v46 = vld [vmem:[%s2230_s8 + $0x48] sm:$0xff] (!%p463_p7)   ;;  %v2019_v48 = vld [vmem:[%s2230_s8 + $0x50] sm:$0xff] (!%p463_p7)   ;;  %p494_p8 = scmp.lt.s32.totalorder (!%p463_p7), %s493_s24, 35 }
  0x2e   : > { %1775 = vmatpush3.bf16.msra.mxu0 (!%p463_p7), %v2009_v38  ;;  %1827 = vmatpush3.bf16.msra.mxu1 (!%p463_p7), %v2009_v38  ;;  %v2018_v47 = vld [vmem:[%s2230_s8 + $0x8] sm:$0xff] (!%p463_p7)   ;;  %v2020_v49 = vld [vmem:[%s2230_s8 + $0x10] sm:$0xff] (!%p463_p7)   ;;  %v2021_v50 = vld [vmem:[%s2230_s8 + $0x58] sm:$0xff] (!%p463_p7)  }
  0x2f   : > { %1776 = vmatprep.subr.bf16.mxu0 (!%p463_p7), %v2076_v37  ;;  %1828 = vmatprep.subr.bf16.mxu1 (!%p463_p7), %v2076_v37  ;;  %v2022_v51 = vld [vmem:[%s2230_s8 + $0x18] sm:$0xff] (!%p463_p7)   ;;  %v2023_v52 = vld [vmem:[%s2230_s8 + $0x60] sm:$0xff] (!%p463_p7)   ;;  %v2025_v54 = vld [vmem:[%s2230_s8 + $0x68] sm:$0xff] (!%p463_p7)  }
  0x30   : > { %v2024_v53 = vld [vmem:[%s2230_s8 + $0x20] sm:$0xff]   ;;  %v2026_v55 = vld [vmem:[%s2230_s8 + $0x28] sm:$0xff]   ;;  %v2027_v56 = vld [vmem:[%s2230_s8 + $0x70] sm:$0xff]   ;;  %s2598_s24 = smov (!%p494_p8, %s493_s24), 35 }
  0x31   : > { %v2028_v57 = vld [vmem:[%s2230_s8 + $0x30] sm:$0xff]   ;;  %v2029_v58 = vld [vmem:[%s2230_s8 + $0x78] sm:$0xff]   ;;  %v2031_v60 = vld [vmem:[%s2230_s8 + $0x80] sm:$0xff]   ;;  %s1512_s25 = sshll.u32 %s2598_s24, 2 }
  0x32   : > { %1777 = vmatpush3.bf16.msra.mxu0 %v2010_v39  ;;  %1829 = vmatpush3.bf16.msra.mxu1 %v2010_v39  ;;  %v2030_v59 = vld [vmem:[%s2230_s8 + $0x38] sm:$0xff]   ;;  %v2032_v61 = vld [vmem:[%s2230_s8 + $0x40] sm:$0xff]   ;;  %v2033_v62 = vld [vmem:[%s2230_s8 + $0x88] sm:$0xff]   ;;  %s2503_s28 = scalar_lea.vmem %s2591_s3, %s1512_s25 }
  0x33   : > { %1778 = vmatprep.subr.bf16.mxu0 %v2076_v37  ;;  %1830 = vmatprep.subr.bf16.mxu1 %v2076_v37  ;;  %v2034_v63 = vld [vmem:[%s2230_s8 + $0x90] sm:$0xff]   ;;  %v2035_v0 = vld [vmem:[%s2230_s8 + $0xd8] sm:$0xff]   ;;  %v2037_v2 = vld [vmem:[%s2230_s8 + $0xe0] sm:$0xff]  }
  0x34   : > { %v2036_v1 = vld [vmem:[%s2230_s8 + $0x98] sm:$0xff]   ;;  %v2038_v3 = vld [vmem:[%s2230_s8 + $0xa0] sm:$0xff]   ;;  %v2039_v4 = vld [vmem:[%s2230_s8 + $0xe8] sm:$0xff]  }
  0x35   : > { %v2040_v5 = vld [vmem:[%s2230_s8 + $0xa8] sm:$0xff]   ;;  %v2041_v6 = vld [vmem:[%s2230_s8 + $0xf0] sm:$0xff]   ;;  %v2043_v8 = vld [vmem:[%s2230_s8 + $0xf8] sm:$0xff]  }
  0x36   : > { %1779 = vmatpush3.bf16.msra.mxu0 %v2011_v40  ;;  %1831 = vmatpush3.bf16.msra.mxu1 %v2011_v40  ;;  %v2042_v7 = vld [vmem:[%s2230_s8 + $0xb0] sm:$0xff]   ;;  %v2044_v9 = vld [vmem:[%s2230_s8 + $0xb8] sm:$0xff]   ;;  %v2045_v10 = vld [vmem:[%s2230_s8 + $0x100] sm:$0xff]  }
  0x37   : > { %1780 = vmatprep.subr.bf16.mxu0 %v2076_v37  ;;  %1832 = vmatprep.subr.bf16.mxu1 %v2076_v37  ;;  %v2046_v11 = vld [vmem:[%s2230_s8 + $0xc0] sm:$0xff]   ;;  %v2047_v12 = vld [vmem:[%s2230_s8 + $0x108] sm:$0xff]   ;;  %v2049_v14 = vld [vmem:[%s2230_s8 + $0x110] sm:$0xff]  }
  0x38   : > { %v2048_v13 = vld [vmem:[%s2230_s8 + $0xc8] sm:$0xff]   ;;  %v2050_v15 = vld [vmem:[%s2230_s8 + $0xd0] sm:$0xff]   ;;  %v2051_v16 = vld [vmem:[%s2230_s8 + $0x118] sm:$0xff]  }
  0x3a   : > { %1781 = vmatpush3.bf16.msra.mxu0 %v2012_v41  ;;  %1833 = vmatpush3.bf16.msra.mxu1 %v2012_v41 }
  0x3b   : > { %1782 = vmatprep.subr.bf16.mxu0 %v2076_v37  ;;  %1834 = vmatprep.subr.bf16.mxu1 %v2076_v37 }
  0x3e   : > { %1783 = vmatpush3.bf16.msra.mxu0 %v2013_v42  ;;  %1835 = vmatpush3.bf16.msra.mxu1 %v2013_v42 }
  0x3f   : > { %1784 = vmatprep.subr.bf16.mxu0 %v2076_v37  ;;  %1836 = vmatprep.subr.bf16.mxu1 %v2076_v37 }
  0x42   : > { %1785 = vmatpush3.bf16.msra.mxu0 %v2014_v43  ;;  %1837 = vmatpush3.bf16.msra.mxu1 %v2014_v43 }
  0x43   : > { %1786 = vmatprep.subr.bf16.mxu0 %v2076_v37  ;;  %1838 = vmatprep.subr.bf16.mxu1 %v2076_v37 }
  0x46   : > { %1787 = vmatpush3.bf16.msra.mxu0 %v2015_v44  ;;  %1839 = vmatpush3.bf16.msra.mxu1 %v2015_v44 }
  0x47   : > { %1876 = vmatprep.subr.bf16.mxu0 %v2076_v37  ;;  %1928 = vmatprep.subr.bf16.mxu1 %v2076_v37 }
  0x49   : > { %1789 = vmatmul.mubr.bf16.vlgmr.msra.gmra.mrb[0].mxu0 %v2016_v45  ;;  %1841 = vmatmul.mubr.bf16.vlgmr.msra.gmra.mrb[0].mxu1 %v2017_v46 }
  0x4a   : > { %1877 = vmatpush3.bf16.msra.mxu0 %v2008_v36  ;;  %1929 = vmatpush3.bf16.msra.mxu1 %v2008_v36 }
  0x4b   : > { %1792 = vmatprep.mubr.msk.bf16.mxu0 %vm2077_vm0, %v2076_v37  ;;  %1844 = vmatprep.mubr.msk.bf16.mxu1 %vm2077_vm0, %v2076_v37 }
  0x4c   : > { %1878 = vmatprep.subr.bf16.mxu0 %v2076_v37  ;;  %1930 = vmatprep.subr.bf16.mxu1 %v2076_v37 }
  0x4e   : > { %1879 = vmatpush3.bf16.msra.mxu0 %v2009_v38  ;;  %1931 = vmatpush3.bf16.msra.mxu1 %v2009_v38 }
  0x4f   : > { %1880 = vmatprep.subr.bf16.mxu0 %v2076_v37  ;;  %1932 = vmatprep.subr.bf16.mxu1 %v2076_v37 }
  0x51   : > { %1793 = vmatmul.mubr.bf16.gmra.mrb[4].mxu0 %v2018_v47  ;;  %1845 = vmatmul.mubr.bf16.gmra.mrb[4].mxu1 %v2019_v48 }
  0x52   : > { %1796 = vmatprep.mubr.msk.bf16.mxu0 %vm2077_vm0, %v2076_v37  ;;  %1848 = vmatprep.mubr.msk.bf16.mxu1 %vm2077_vm0, %v2076_v37 }
  0x53   : > { %1881 = vmatpush3.bf16.msra.mxu0 %v2010_v39  ;;  %1933 = vmatpush3.bf16.msra.mxu1 %v2010_v39 }
  0x54   : > { %1882 = vmatprep.subr.bf16.mxu0 %v2076_v37  ;;  %1934 = vmatprep.subr.bf16.mxu1 %v2076_v37 }
  0x57   : > { %1883 = vmatpush3.bf16.msra.mxu0 %v2011_v40  ;;  %1935 = vmatpush3.bf16.msra.mxu1 %v2011_v40 }
  0x58   : > { %1884 = vmatprep.subr.bf16.mxu0 %v2076_v37  ;;  %1936 = vmatprep.subr.bf16.mxu1 %v2076_v37 }
  0x59   : > { %1797 = vmatmul.mubr.bf16.gmra.mrb[8].mxu0 %v2020_v49  ;;  %1849 = vmatmul.mubr.bf16.gmra.mrb[8].mxu1 %v2021_v50 }
  0x5a   : > { %1800 = vmatprep.mubr.msk.bf16.mxu0 %vm2077_vm0, %v2076_v37  ;;  %1852 = vmatprep.mubr.msk.bf16.mxu1 %vm2077_vm0, %v2076_v37 }
  0x5b   : > { %1885 = vmatpush3.bf16.msra.mxu0 %v2012_v41  ;;  %1937 = vmatpush3.bf16.msra.mxu1 %v2012_v41 }
  0x5c   : > { %1886 = vmatprep.subr.bf16.mxu0 %v2076_v37  ;;  %1938 = vmatprep.subr.bf16.mxu1 %v2076_v37 }
  0x5f   : > { %1887 = vmatpush3.bf16.msra.mxu0 %v2013_v42  ;;  %1939 = vmatpush3.bf16.msra.mxu1 %v2013_v42 }
  0x60   : > { %1888 = vmatprep.subr.bf16.mxu0 %v2076_v37  ;;  %1940 = vmatprep.subr.bf16.mxu1 %v2076_v37 }
  0x61   : > { %1801 = vmatmul.mubr.bf16.gmra.mrb[12].mxu0 %v2022_v51  ;;  %1853 = vmatmul.mubr.bf16.gmra.mrb[12].mxu1 %v2023_v52 }
  0x62   : > { %1804 = vmatprep.mubr.msk.bf16.mxu0 %vm2077_vm0, %v2076_v37  ;;  %1856 = vmatprep.mubr.msk.bf16.mxu1 %vm2077_vm0, %v2076_v37 }
  0x63   : > { %1889 = vmatpush3.bf16.msra.mxu0 %v2014_v43  ;;  %1941 = vmatpush3.bf16.msra.mxu1 %v2014_v43 }
  0x64   : > { %1890 = vmatprep.subr.bf16.mxu0 %v2076_v37  ;;  %1942 = vmatprep.subr.bf16.mxu1 %v2076_v37 }
  0x67   : > { %1891 = vmatpush3.bf16.msra.mxu0 %v2015_v44  ;;  %1943 = vmatpush3.bf16.msra.mxu1 %v2015_v44 }
  0x69   : > { %1805 = vmatmul.mubr.bf16.gmra.mrb[16].mxu0 %v2024_v53  ;;  %1857 = vmatmul.mubr.bf16.gmra.mrb[16].mxu1 %v2025_v54 }
  0x6a   : > { %1808 = vmatprep.mubr.msk.bf16.mxu0 %vm2077_vm0, %v2076_v37  ;;  %1860 = vmatprep.mubr.msk.bf16.mxu1 %vm2077_vm0, %v2076_v37 }
  0x71   : > { %1809 = vmatmul.mubr.bf16.gmra.mrb[20].mxu0 %v2026_v55  ;;  %1861 = vmatmul.mubr.bf16.gmra.mrb[20].mxu1 %v2027_v56 }
  0x72   : > { %1812 = vmatprep.mubr.msk.bf16.mxu0 %vm2077_vm0, %v2076_v37  ;;  %1864 = vmatprep.mubr.msk.bf16.mxu1 %vm2077_vm0, %v2076_v37 }
  0x79   : > { %1813 = vmatmul.mubr.bf16.gmra.mrb[24].mxu0 %v2028_v57  ;;  %1865 = vmatmul.mubr.bf16.gmra.mrb[24].mxu1 %v2029_v58 }
  0x7a   : > { %1816 = vmatprep.mubr.msk.bf16.mxu0 %vm2077_vm0, %v2076_v37  ;;  %1868 = vmatprep.mubr.msk.bf16.mxu1 %vm2077_vm0, %v2076_v37 }
  0x81   : > { %1817 = vmatmul.mubr.bf16.gmra.mrb[28].mxu0 %v2030_v59  ;;  %1869 = vmatmul.mubr.bf16.gmra.mrb[28].mxu1 %v2031_v60 }
  0x82   : > { %1820 = vmatprep.mubr.msk.bf16.mxu0 %vm2077_vm0, %v2076_v37  ;;  %1872 = vmatprep.mubr.msk.bf16.mxu1 %vm2077_vm0, %v2076_v37 }
  0x89   : > { %1821 = vmatmul.mubr.bf16.gmra.mrb[32].mxu0 %v2032_v61  ;;  %1873 = vmatmul.mubr.bf16.gmra.mrb[32].mxu1 %v2033_v62 }
  0x8a   : > { %1892 = vmatprep.mubr.msk.bf16.mxu0 %vm2077_vm0, %v2076_v37  ;;  %1944 = vmatprep.mubr.msk.bf16.mxu1 %vm2077_vm0, %v2076_v37 }
  0x91   : > { %1893 = vmatmul.mubr.bf16.vlgmr.msra.gmra.mrb[36].mxu0 %v2034_v63  ;;  %1945 = vmatmul.mubr.bf16.vlgmr.msra.gmra.mrb[36].mxu1 %v2035_v0 }
  0x92   : > { %1896 = vmatprep.mubr.msk.bf16.mxu0 %vm2077_vm0, %v2076_v37  ;;  %1948 = vmatprep.mubr.msk.bf16.mxu1 %vm2077_vm0, %v2076_v37 }
  0x99   : > { %1897 = vmatmul.mubr.bf16.gmra.mrb[40].mxu0 %v2036_v1  ;;  %1949 = vmatmul.mubr.bf16.gmra.mrb[40].mxu1 %v2037_v2 }
  0x9a   : > { %1900 = vmatprep.mubr.msk.bf16.mxu0 %vm2077_vm0, %v2076_v37  ;;  %1952 = vmatprep.mubr.msk.bf16.mxu1 %vm2077_vm0, %v2076_v37 }
  0xa1   : > { %1901 = vmatmul.mubr.bf16.gmra.mrb[44].mxu0 %v2038_v3  ;;  %1953 = vmatmul.mubr.bf16.gmra.mrb[44].mxu1 %v2039_v4 }
  0xa2   : > { %1904 = vmatprep.mubr.msk.bf16.mxu0 %vm2077_vm0, %v2076_v37  ;;  %1956 = vmatprep.mubr.msk.bf16.mxu1 %vm2077_vm0, %v2076_v37 }
  0xa9   : > { %1905 = vmatmul.mubr.bf16.gmra.mrb[48].mxu0 %v2040_v5  ;;  %1957 = vmatmul.mubr.bf16.gmra.mrb[48].mxu1 %v2041_v6 }
  0xaa   : > { %1908 = vmatprep.mubr.msk.bf16.mxu0 %vm2077_vm0, %v2076_v37  ;;  %1960 = vmatprep.mubr.msk.bf16.mxu1 %vm2077_vm0, %v2076_v37 }
  0xb1   : > { %1909 = vmatmul.mubr.bf16.gmra.mrb[52].mxu0 %v2042_v7  ;;  %1961 = vmatmul.mubr.bf16.gmra.mrb[52].mxu1 %v2043_v8 }
  0xb2   : > { %1912 = vmatprep.mubr.msk.bf16.mxu0 %vm2077_vm0, %v2076_v37  ;;  %1964 = vmatprep.mubr.msk.bf16.mxu1 %vm2077_vm0, %v2076_v37 }
  0xb9   : > { %1913 = vmatmul.mubr.bf16.gmra.mrb[56].mxu0 %v2044_v9  ;;  %1965 = vmatmul.mubr.bf16.gmra.mrb[56].mxu1 %v2045_v10 }
  0xba   : > { %1916 = vmatprep.mubr.msk.bf16.mxu0 %vm2077_vm0, %v2076_v37  ;;  %1968 = vmatprep.mubr.msk.bf16.mxu1 %vm2077_vm0, %v2076_v37 }
  0xc1   : > { %1917 = vmatmul.mubr.bf16.gmra.mrb[60].mxu0 %v2046_v11  ;;  %1969 = vmatmul.mubr.bf16.gmra.mrb[60].mxu1 %v2047_v12 }
  0xc2   : > { %1920 = vmatprep.mubr.msk.bf16.mxu0 %vm2077_vm0, %v2076_v37  ;;  %1972 = vmatprep.mubr.msk.bf16.mxu1 %vm2077_vm0, %v2076_v37 }
  0xc9   : > { %1921 = vmatmul.mubr.bf16.gmra.mrb[64].mxu0 %v2048_v13  ;;  %1973 = vmatmul.mubr.bf16.gmra.mrb[64].mxu1 %v2049_v14 }
  0xca   : > { %1924 = vmatprep.mubr.msk.bf16.mxu0 %vm2077_vm0, %v2076_v37  ;;  %1976 = vmatprep.mubr.msk.bf16.mxu1 %vm2077_vm0, %v2076_v37 }
  0xd1   : > { %1925 = vmatmul.mubr.bf16.gmra.mrb[68].mxu0 %v2050_v15  ;;  %1977 = vmatmul.mubr.bf16.gmra.mrb[68].mxu1 %v2051_v16 }
 0x11c   : > { %v2377_v17 = vpop.f32.mrb[0].mxu0  ;;  %v2379_v18 = vpop.f32.mrb[0].mxu1 }
 0x11d   : > { %v919_v19 = vmax.f32 %v2377_v17, %v2379_v18  ;;  %v1790_v20 = vpop.f32.mrb[1].mxu0  ;;  %v1842_v21 = vpop.f32.mrb[1].mxu1 }
 0x11e   : > { %v2383_v22 = vpop.f32.mrb[2].mxu0  ;;  %v2385_v23 = vpop.f32.mrb[2].mxu1 }
 0x11f   : > { %v920_v24 = vmax.f32 %v2383_v22, %v2385_v23  ;;  %v1791_v25 = vpop.f32.mrb[3].mxu0  ;;  %v1843_v26 = vpop.f32.mrb[3].mxu1 }
 0x124   : > { %v2389_v27 = vpop.f32.mrb[4].mxu0  ;;  %v2391_v28 = vpop.f32.mrb[4].mxu1 }
 0x125   : > { %v921_v29 = vmax.f32 %v2389_v27, %v2391_v28  ;;  %v1794_v30 = vpop.f32.mrb[5].mxu0  ;;  %v1846_v31 = vpop.f32.mrb[5].mxu1 }
 0x126   : > { %v2395_v32 = vpop.f32.mrb[6].mxu0  ;;  %v2397_v33 = vpop.f32.mrb[6].mxu1 }
 0x127   : > { %v922_v34 = vmax.f32 %v2395_v32, %v2397_v33  ;;  %v1795_v35 = vpop.f32.mrb[7].mxu0  ;;  %v1847_v36 = vpop.f32.mrb[7].mxu1 }
 0x12c   : > { %v2401_v37 = vpop.f32.mrb[8].mxu0  ;;  %v2403_v38 = vpop.f32.mrb[8].mxu1 }
 0x12d   : > { %v923_v39 = vmax.f32 %v2401_v37, %v2403_v38  ;;  %v1798_v40 = vpop.f32.mrb[9].mxu0  ;;  %v1850_v41 = vpop.f32.mrb[9].mxu1 }
 0x12e   : > { %v2407_v42 = vpop.f32.mrb[10].mxu0  ;;  %v2409_v43 = vpop.f32.mrb[10].mxu1 }
 0x12f   : > { %v924_v44 = vmax.f32 %v2407_v42, %v2409_v43  ;;  %v1799_v45 = vpop.f32.mrb[11].mxu0  ;;  %v1851_v46 = vpop.f32.mrb[11].mxu1 }
 0x134   : > { %v2413_v47 = vpop.f32.mrb[12].mxu0  ;;  %v2415_v48 = vpop.f32.mrb[12].mxu1 }
 0x135   : > { %v925_v49 = vmax.f32 %v2413_v47, %v2415_v48  ;;  %v1802_v50 = vpop.f32.mrb[13].mxu0  ;;  %v1854_v51 = vpop.f32.mrb[13].mxu1 }
 0x136   : > { %v2419_v52 = vpop.f32.mrb[14].mxu0  ;;  %v2421_v53 = vpop.f32.mrb[14].mxu1 }
 0x137   : > { %v926_v54 = vmax.f32 %v2419_v52, %v2421_v53  ;;  %v1803_v55 = vpop.f32.mrb[15].mxu0  ;;  %v1855_v56 = vpop.f32.mrb[15].mxu1 }
 0x13c   : > { %v2425_v57 = vpop.f32.mrb[16].mxu0  ;;  %v2427_v58 = vpop.f32.mrb[16].mxu1 }
 0x13d   : > { %v927_v59 = vmax.f32 %v2425_v57, %v2427_v58  ;;  %v1806_v60 = vpop.f32.mrb[17].mxu0  ;;  %v1858_v61 = vpop.f32.mrb[17].mxu1 }
 0x13e   : > { %v2431_v62 = vpop.f32.mrb[18].mxu0  ;;  %v2433_v63 = vpop.f32.mrb[18].mxu1 }
 0x13f   : > { %v928_v0 = vmax.f32 %v2431_v62, %v2433_v63  ;;  %v1807_v1 = vpop.f32.mrb[19].mxu0  ;;  %v1859_v2 = vpop.f32.mrb[19].mxu1 }
 0x144   : > { %v2437_v3 = vpop.f32.mrb[20].mxu0  ;;  %v2439_v4 = vpop.f32.mrb[20].mxu1 }
 0x145   : > { %v929_v5 = vmax.f32 %v2437_v3, %v2439_v4  ;;  %v1810_v6 = vpop.f32.mrb[21].mxu0  ;;  %v1862_v7 = vpop.f32.mrb[21].mxu1 }
 0x146   : > { %v2443_v8 = vpop.f32.mrb[22].mxu0  ;;  %v2445_v9 = vpop.f32.mrb[22].mxu1 }
 0x147   : > { %v930_v10 = vmax.f32 %v2443_v8, %v2445_v9  ;;  %v1811_v11 = vpop.f32.mrb[23].mxu0  ;;  %v1863_v12 = vpop.f32.mrb[23].mxu1 }
 0x14c   : > { %v2449_v13 = vpop.f32.mrb[24].mxu0  ;;  %v2451_v14 = vpop.f32.mrb[24].mxu1 }
 0x14d   : > { %v931_v15 = vmax.f32 %v2449_v13, %v2451_v14  ;;  %v1814_v16 = vpop.f32.mrb[25].mxu0  ;;  %v1866_v20 = vpop.f32.mrb[25].mxu1 }
 0x14e   : > { %v2455_v21 = vpop.f32.mrb[26].mxu0  ;;  %v2457_v25 = vpop.f32.mrb[26].mxu1 }
 0x14f   : > { %v932_v26 = vmax.f32 %v2455_v21, %v2457_v25  ;;  %v1815_v30 = vpop.f32.mrb[27].mxu0  ;;  %v1867_v31 = vpop.f32.mrb[27].mxu1 }
 0x154   : > { %v2461_v35 = vpop.f32.mrb[28].mxu0  ;;  %v2463_v36 = vpop.f32.mrb[28].mxu1 }
 0x155   : > { %v933_v40 = vmax.f32 %v2461_v35, %v2463_v36  ;;  %v1818_v41 = vpop.f32.mrb[29].mxu0  ;;  %v1870_v45 = vpop.f32.mrb[29].mxu1 }
 0x156   : > { %v2467_v46 = vpop.f32.mrb[30].mxu0  ;;  %v2469_v50 = vpop.f32.mrb[30].mxu1 }
 0x157   : > { %v934_v51 = vmax.f32 %v2467_v46, %v2469_v50  ;;  %v1819_v55 = vpop.f32.mrb[31].mxu0  ;;  %v1871_v56 = vpop.f32.mrb[31].mxu1 }
 0x15c   : > { %v2473_v60 = vpop.f32.mrb[32].mxu0  ;;  %v2475_v61 = vpop.f32.mrb[32].mxu1 }
 0x15d   : > { %v1822_v2 = vpop.f32.mrb[33].mxu0  ;;  %v1874_v6 = vpop.f32.mrb[33].mxu1 }
 0x15e   : > { %v2481_v7 = vpop.f32.mrb[34].mxu0  ;;  %v2483_v11 = vpop.f32.mrb[34].mxu1 }
 0x15f   : > { %v1823_v16 = vpop.f32.mrb[35].mxu0  ;;  %v1875_v20 = vpop.f32.mrb[35].mxu1 }
 0x160   : > { %v2496_v20 = vld [vmem:[%s2590_s2] ss:$0 sm:$0xff] }
 0x164   : > { %v1044_v30 = vpop.f32.mrb[36].mxu0  ;;  %v1240_v31 = vpop.f32.mrb[36].mxu1 }
 0x165   : > { %v1115_v41 = vmax.f32 %v919_v19, %v1044_v30  ;;  %v1894_v45 = vpop.f32.mrb[37].mxu0  ;;  %v1946_v55 = vpop.f32.mrb[37].mxu1 }
 0x166   : > { %v1047_v56 = vpop.f32.mrb[38].mxu0  ;;  %v1243_v2 = vpop.f32.mrb[38].mxu1 }
 0x167   : > { %v1311_v6 = vmax.f32 %v1115_v41, %v1240_v31  ;;  %v1116_v1 = vmax.f32 %v920_v24, %v1047_v56  ;;  %v1895_v12 = vpop.f32.mrb[39].mxu0  ;;  %v1947_v16 = vpop.f32.mrb[39].mxu1 }
 0x169   : > { %v1312_v17 = vmax.f32 %v1116_v1, %v1243_v2  ;;  %v1336_v18 = vadd.f32 %v2496_v20, %v1311_v6 }
 0x16b   : > { %v1337_v19 = vadd.f32 %v2496_v20, %v1312_v17 }
 0x16c   : > { %v1052_v22 = vpop.f32.mrb[40].mxu0  ;;  %v1248_v23 = vpop.f32.mrb[40].mxu1 }
 0x16d   : > { %v1654_v24 = vpack.c.bf16 %v1337_v19, %v1336_v18  ;;  %v1117_v12 = vmax.f32 %v921_v29, %v1052_v22  ;;  %v1898_v30 = vpop.f32.mrb[41].mxu0  ;;  %v1950_v31 = vpop.f32.mrb[41].mxu1 }
 0x16e   : > { %v1055_v1 = vpop.f32.mrb[42].mxu0  ;;  %v1251_v41 = vpop.f32.mrb[42].mxu1 }
 0x16f   : > { %1655 = vst [vmem:[%s2503_s28] sm:$0xff] %v1654_v24   ;;  %v1313_v45 = vmax.f32 %v1117_v12, %v1248_v23  ;;  %v1118_v55 = vmax.f32 %v922_v34, %v1055_v1  ;;  %v1899_v56 = vpop.f32.mrb[43].mxu0  ;;  %v1951_v2 = vpop.f32.mrb[43].mxu1 }
 0x171   : > { %v1314_v6 = vmax.f32 %v1118_v55, %v1251_v41  ;;  %v1338_v16 = vadd.f32 %v2496_v20, %v1313_v45 }
 0x173   : > { %v1339_v17 = vadd.f32 %v2496_v20, %v1314_v6 }
 0x174   : > { %v1060_v27 = vpop.f32.mrb[44].mxu0  ;;  %v1256_v28 = vpop.f32.mrb[44].mxu1 }
 0x175   : > { %v1659_v29 = vpack.c.bf16 %v1339_v17, %v1338_v16  ;;  %v1119_v18 = vmax.f32 %v923_v39, %v1060_v27  ;;  %v1902_v19 = vpop.f32.mrb[45].mxu0  ;;  %v1954_v22 = vpop.f32.mrb[45].mxu1 }
 0x176   : > { %v1063_v23 = vpop.f32.mrb[46].mxu0  ;;  %v1259_v24 = vpop.f32.mrb[46].mxu1 }
 0x177   : > { %1696 = vst [vmem:[%s2503_s28 + $0x8] sm:$0xff] %v1659_v29   ;;  %v1315_v32 = vmax.f32 %v1119_v18, %v1256_v28  ;;  %v1120_v33 = vmax.f32 %v924_v44, %v1063_v23  ;;  %v1903_v34 = vpop.f32.mrb[47].mxu0  ;;  %v1955_v12 = vpop.f32.mrb[47].mxu1 }
 0x179   : > { %v1316_v30 = vmax.f32 %v1120_v33, %v1259_v24  ;;  %v1340_v31 = vadd.f32 %v2496_v20, %v1315_v32 }
 0x17b   : > { %v1341_v1 = vadd.f32 %v2496_v20, %v1316_v30 }
 0x17c   : > { %v1068_v37 = vpop.f32.mrb[48].mxu0  ;;  %v1264_v38 = vpop.f32.mrb[48].mxu1 }
 0x17d   : > { %v1664_v39 = vpack.c.bf16 %v1341_v1, %v1340_v31  ;;  %v1121_v41 = vmax.f32 %v925_v49, %v1068_v37  ;;  %v1906_v45 = vpop.f32.mrb[49].mxu0  ;;  %v1958_v55 = vpop.f32.mrb[49].mxu1 }
 0x17e   : > { %v1071_v56 = vpop.f32.mrb[50].mxu0  ;;  %v1267_v2 = vpop.f32.mrb[50].mxu1 }
 0x17f   : > { %1697 = vst [vmem:[%s2503_s28 + $0x10] sm:$0xff] %v1664_v39   ;;  %v1317_v42 = vmax.f32 %v1121_v41, %v1264_v38  ;;  %v1122_v43 = vmax.f32 %v926_v54, %v1071_v56  ;;  %v1907_v44 = vpop.f32.mrb[51].mxu0  ;;  %v1959_v6 = vpop.f32.mrb[51].mxu1 }
 0x181   : > { %v1318_v16 = vmax.f32 %v1122_v43, %v1267_v2  ;;  %v1342_v17 = vadd.f32 %v2496_v20, %v1317_v42 }
 0x183   : > { %v1343_v27 = vadd.f32 %v2496_v20, %v1318_v16 }
 0x184   : > { %v1076_v47 = vpop.f32.mrb[52].mxu0  ;;  %v1272_v48 = vpop.f32.mrb[52].mxu1 }
 0x185   : > { %v1669_v49 = vpack.c.bf16 %v1343_v27, %v1342_v17  ;;  %v1123_v28 = vmax.f32 %v927_v59, %v1076_v47  ;;  %v1910_v29 = vpop.f32.mrb[53].mxu0  ;;  %v1962_v18 = vpop.f32.mrb[53].mxu1 }
 0x186   : > { %v1079_v19 = vpop.f32.mrb[54].mxu0  ;;  %v1275_v22 = vpop.f32.mrb[54].mxu1 }
 0x187   : > { %1698 = vst [vmem:[%s2503_s28 + $0x18] sm:$0xff] %v1669_v49   ;;  %v1319_v52 = vmax.f32 %v1123_v28, %v1272_v48  ;;  %v1124_v53 = vmax.f32 %v928_v0, %v1079_v19  ;;  %v1911_v54 = vpop.f32.mrb[55].mxu0  ;;  %v1963_v23 = vpop.f32.mrb[55].mxu1 }
 0x189   : > { %v1320_v24 = vmax.f32 %v1124_v53, %v1275_v22  ;;  %v1344_v32 = vadd.f32 %v2496_v20, %v1319_v52  ;;  %v2592_v22 = vmax.f32 %v2473_v60, %v2475_v61 }
 0x18b   : > { %v1345_v33 = vadd.f32 %v2496_v20, %v1320_v24 }
 0x18c   : > { %v1084_v57 = vpop.f32.mrb[56].mxu0  ;;  %v1280_v58 = vpop.f32.mrb[56].mxu1 }
 0x18d   : > { %v1674_v59 = vpack.c.bf16 %v1345_v33, %v1344_v32  ;;  %v1125_v34 = vmax.f32 %v929_v5, %v1084_v57  ;;  %v1914_v12 = vpop.f32.mrb[57].mxu0  ;;  %v1966_v30 = vpop.f32.mrb[57].mxu1 }
 0x18e   : > { %v1087_v31 = vpop.f32.mrb[58].mxu0  ;;  %v1283_v1 = vpop.f32.mrb[58].mxu1 }
 0x18f   : > { %1699 = vst [vmem:[%s2503_s28 + $0x20] sm:$0xff] %v1674_v59   ;;  %v1321_v62 = vmax.f32 %v1125_v34, %v1280_v58  ;;  %v1126_v63 = vmax.f32 %v930_v10, %v1087_v31  ;;  %v1915_v0 = vpop.f32.mrb[59].mxu0  ;;  %v1967_v37 = vpop.f32.mrb[59].mxu1 }
 0x191   : > { %v1322_v38 = vmax.f32 %v1126_v63, %v1283_v1  ;;  %v1346_v39 = vadd.f32 %v2496_v20, %v1321_v62 }
 0x193   : > { %v1347_v41 = vadd.f32 %v2496_v20, %v1322_v38 }
 0x194   : > { %v1092_v3 = vpop.f32.mrb[60].mxu0  ;;  %v1288_v4 = vpop.f32.mrb[60].mxu1 }
 0x195   : > { %v1679_v5 = vpack.c.bf16 %v1347_v41, %v1346_v39  ;;  %v1127_v45 = vmax.f32 %v931_v15, %v1092_v3  ;;  %v1918_v55 = vpop.f32.mrb[61].mxu0  ;;  %v1970_v56 = vpop.f32.mrb[61].mxu1 }
 0x196   : > { %v1095_v2 = vpop.f32.mrb[62].mxu0  ;;  %v1291_v42 = vpop.f32.mrb[62].mxu1 }
 0x197   : > { %1700 = vst [vmem:[%s2503_s28 + $0x28] sm:$0xff] %v1679_v5   ;;  %v1323_v8 = vmax.f32 %v1127_v45, %v1288_v4  ;;  %v1128_v9 = vmax.f32 %v932_v26, %v1095_v2  ;;  %v1919_v10 = vpop.f32.mrb[63].mxu0  ;;  %v1971_v43 = vpop.f32.mrb[63].mxu1 }
 0x199   : > { %v1324_v44 = vmax.f32 %v1128_v9, %v1291_v42  ;;  %v1348_v6 = vadd.f32 %v2496_v20, %v1323_v8 }
 0x19b   : > { %v1349_v16 = vadd.f32 %v2496_v20, %v1324_v44 }
 0x19c   : > { %v1100_v13 = vpop.f32.mrb[64].mxu0  ;;  %v1296_v14 = vpop.f32.mrb[64].mxu1 }
 0x19d   : > { %v1684_v15 = vpack.c.bf16 %v1349_v16, %v1348_v6  ;;  %v1129_v17 = vmax.f32 %v933_v40, %v1100_v13  ;;  %v1922_v27 = vpop.f32.mrb[65].mxu0  ;;  %v1974_v47 = vpop.f32.mrb[65].mxu1 }
 0x19e   : > { %v1103_v48 = vpop.f32.mrb[66].mxu0  ;;  %v1299_v49 = vpop.f32.mrb[66].mxu1 }
 0x19f   : > { %1701 = vst [vmem:[%s2503_s28 + $0x30] sm:$0xff] %v1684_v15   ;;  %v1325_v21 = vmax.f32 %v1129_v17, %v1296_v14  ;;  %v1130_v25 = vmax.f32 %v934_v51, %v1103_v48  ;;  %v1923_v26 = vpop.f32.mrb[67].mxu0  ;;  %v1975_v28 = vpop.f32.mrb[67].mxu1  ;;  %v2593_v51 = vmax.f32 %v2481_v7, %v2483_v11 }
 0x1a1   : > { %v1326_v29 = vmax.f32 %v1130_v25, %v1299_v49  ;;  %v1350_v18 = vadd.f32 %v2496_v20, %v1325_v21 }
 0x1a3   : > { %v1351_v19 = vadd.f32 %v2496_v20, %v1326_v29 }
 0x1a4   : > { %v1108_v35 = vpop.f32.mrb[68].mxu0  ;;  %v1304_v36 = vpop.f32.mrb[68].mxu1 }
 0x1a5   : > { %v1689_v40 = vpack.c.bf16 %v1351_v19, %v1350_v18  ;;  %v1131_v52 = vmax.f32 %v2592_v22, %v1108_v35  ;;  %v1926_v53 = vpop.f32.mrb[69].mxu0  ;;  %v1978_v54 = vpop.f32.mrb[69].mxu1 }
 0x1a6   : > { %v1111_v23 = vpop.f32.mrb[70].mxu0  ;;  %v1307_v46 = vpop.f32.mrb[70].mxu1 }
 0x1a7   : > { %1702 = vst [vmem:[%s2503_s28 + $0x38] sm:$0xff] %v1689_v40   ;;  %v1327_v50 = vmax.f32 %v1131_v52, %v1304_v36  ;;  %v1132_v24 = vmax.f32 %v2593_v51, %v1111_v23  ;;  %v1927_v32 = vpop.f32.mrb[71].mxu0  ;;  %v1979_v33 = vpop.f32.mrb[71].mxu1 }
 0x1a9   : > { %v1352_v57 = vadd.f32 %v2496_v20, %v1327_v50  ;;  %v1328_v58 = vmax.f32 %v1132_v24, %v1307_v46 }
 0x1ab   : > { %v1353_v59 = vadd.f32 %v2496_v20, %v1328_v58 }
 0x1ad   : > { %v1694_v34 = vpack.c.bf16 %v1353_v59, %v1352_v57 }
 0x1af   : > { %1703 = vst [vmem:[%s2503_s28 + $0x40] sm:$0xff] %v1694_v34  }
 0x1b0 PF: > { %p10_p9 = scmp.ge.s32.totalorder %s2115_s16, 4   ;;  %s2594_s12 = smov %s2070_s13 }
 0x1b1   : > { %s2595_s13 = smov %s2124_s19  ;;  %s2596_s14 = smov %s2115_s16 }
 0x1b2   :  { %12 = sbr.rel (!%p10_p9) target bundleno = 2 (0x2), region = 111 }

// kernel: net_forward.4
= control target key start
LH: loop header
LB: loop body
LE: loop exit
PB: predicated region body
PF: predicated region fallthrough
CT: control target
= control target key end

     0   :  { %s1381_s12 = smov 0   ;;  %s1383_s13 = smov 0   ;;  %s1760_s0 = inlined_call_operand.vmem [shape: bf16[4,32,512], index: 0, kind: input, shape index: {}]   ;;  %s1761_s1 = inlined_call_operand.vmem [shape: bf16[512,128], index: 1, kind: input, shape index: {}]   ;;  %s1762_s2 = inlined_call_operand.vmem [shape: f32[1,128], index: 2, kind: input, shape index: {}]   ;;  %s1763_s3 = inlined_call_operand.vmem [shape: bf16[32,128], index: 3, kind: output, shape index: {}]  }
   0x1   :  { %s1385_s14 = smov 0  }
   0x2 LB: > { %s995_s15 = sadd.s32 4294967295, %s1359_s14   ;;  %s1398_s16 = sadd.s32 1, %s1359_s14   ;;  %s1359_s14 = sphi %s1385_s14, %s1766_s14   ;;  %s1355_s13 = sphi %s1383_s13, %s1765_s13   ;;  %s1351_s12 = sphi %s1381_s12, %s1764_s12  }
   0x3   : > { %s17_s17 = ssub.s32 %s1359_s14, %s1398_s16  ;;  %s20_s18 = sadd.s32 1, %s1355_s13 }
   0x4   : > { %p18_p0 = scmp.eq.s32.totalorder %s17_s17, 0  ;;  %p27_p1 = scmp.ne.s32.totalorder %s1355_s13, %s1351_s12 }
   0x5   : > { %p28_p2 = scmp.eq.s32.totalorder %s1359_s14, 0  ;;  %p998_p4 = scmp.ge.s32.totalorder %s1359_s14, 2 }
   0x6   : > { %s1407_s19 = scalar_select %p18_p0, %s1355_s13, %s20_s18  }
   0x7   : > { %p29_p3 = por %p28_p2, %p27_p1  ;;  %127 = sbr.rel (%p998_p4) target bundleno = 26 (0x1a), region = 24 }
   0xe   : > { %130 = sbr.rel (!%p29_p3) target bundleno = 26 (0x1a), region = 28  ;;  %s132_s20 = sand.u32 (%p29_p3), 1, %s1355_s13  }
   0xf   : > { %s1073_s21 = sshll.u32 (%p29_p3), %s1359_s14, 5  ;;  %s999_s22 = sshll.u32 (%p29_p3), %s132_s20, 7 }
  0x10   : > { %s1415_s25 = scalar_lea.vmem (%p29_p3), %s1760_s0, %s1073_s21  ;;  %s134_s26 = scalar_lea.vmem (%p29_p3), [#allocation2], %s999_s22 }
  0x11   : > { %v151_v0 = vld [vmem:[%s1415_s25] sm:$0xff] (%p29_p3)  ;;  %v153_v1 = vld [vmem:[%s1415_s25 + $0x8] sm:$0xff] (%p29_p3)  ;;  %v155_v2 = vld [vmem:[%s1415_s25 + $0x10] sm:$0xff] (%p29_p3) }
  0x12   : > { %152 = vst [vmem:[%s134_s26] sm:$0xff] (%p29_p3), %v151_v0  ;;  %154 = vst [vmem:[%s134_s26 + $0x8] sm:$0xff] (%p29_p3), %v153_v1  ;;  %v157_v3 = vld [vmem:[%s1415_s25 + $0x18] sm:$0xff] (%p29_p3)  ;;  %v159_v4 = vld [vmem:[%s1415_s25 + $0x40] sm:$0xff] (%p29_p3) }
  0x13   : > { %156 = vst [vmem:[%s134_s26 + $0x10] sm:$0xff] (%p29_p3), %v155_v2  ;;  %v161_v5 = vld [vmem:[%s1415_s25 + $0x48] sm:$0xff] (%p29_p3)  ;;  %158 = vst [vmem:[%s134_s26 + $0x18] sm:$0xff] (%p29_p3), %v157_v3  ;;  %v163_v6 = vld [vmem:[%s1415_s25 + $0x50] sm:$0xff] (%p29_p3) }
  0x14   : > { %160 = vst [vmem:[%s134_s26 + $0x20] sm:$0xff] (%p29_p3), %v159_v4  ;;  %162 = vst [vmem:[%s134_s26 + $0x28] sm:$0xff] (%p29_p3), %v161_v5  ;;  %v165_v7 = vld [vmem:[%s1415_s25 + $0x58] sm:$0xff] (%p29_p3)  ;;  %v167_v8 = vld [vmem:[%s1415_s25 + $0x80] sm:$0xff] (%p29_p3) }
  0x15   : > { %164 = vst [vmem:[%s134_s26 + $0x30] sm:$0xff] %v163_v6  ;;  %166 = vst [vmem:[%s134_s26 + $0x38] sm:$0xff] %v165_v7  ;;  %v169_v9 = vld [vmem:[%s1415_s25 + $0x88] sm:$0xff]  ;;  %v171_v10 = vld [vmem:[%s1415_s25 + $0x90] sm:$0xff] }
  0x16   : > { %168 = vst [vmem:[%s134_s26 + $0x40] sm:$0xff] %v167_v8  ;;  %v173_v11 = vld [vmem:[%s1415_s25 + $0x98] sm:$0xff]  ;;  %170 = vst [vmem:[%s134_s26 + $0x48] sm:$0xff] %v169_v9  ;;  %v175_v12 = vld [vmem:[%s1415_s25 + $0xc0] sm:$0xff] }
  0x17   : > { %172 = vst [vmem:[%s134_s26 + $0x50] sm:$0xff] %v171_v10  ;;  %174 = vst [vmem:[%s134_s26 + $0x58] sm:$0xff] %v173_v11  ;;  %v177_v13 = vld [vmem:[%s1415_s25 + $0xc8] sm:$0xff]  ;;  %v179_v14 = vld [vmem:[%s1415_s25 + $0xd0] sm:$0xff] }
  0x18   : > { %176 = vst [vmem:[%s134_s26 + $0x60] sm:$0xff] %v175_v12  ;;  %178 = vst [vmem:[%s134_s26 + $0x68] sm:$0xff] %v177_v13  ;;  %v181_v15 = vld [vmem:[%s1415_s25 + $0xd8] sm:$0xff] }
  0x19   : > { %180 = vst [vmem:[%s134_s26 + $0x70] sm:$0xff] %v179_v14  ;;  %182 = vst [vmem:[%s134_s26 + $0x78] sm:$0xff] %v181_v15 }
  0x1a PF: > { %p1003_p5 = scmp.ge.s32.totalorder %s1359_s14, 1  ;;  %p187_p6 = scmp.lt.s32.totalorder %s1359_s14, 3 }
  0x1c   : > { %p188_p7 = pnand %p1003_p5, %p187_p6 }
  0x1d   : > { %v1438_v16 = vld [vmem:[%s1761_s1 + $0x40] sm:$0xff] (!%p188_p7)   ;;  %v1461_v20 = vld [vmem:[%s1761_s1 + $0x48] sm:$0xff] (!%p188_p7)   ;;  %v1485_v24 = vld [vmem:[%s1761_s1 + $0x50] sm:$0xff] (!%p188_p7)   ;;  %s194_s6 = sand.u32 (!%p188_p7), 1, %s1351_s12   ;;  %s1005_s30 = sshll.u32 (!%p188_p7), %s995_s15, 1 }
  0x1e   : > { %191 = sbr.rel (%p188_p7) target bundleno = 386 (0x182), region = 51  ;;  %v1443_v17 = vld [vmem:[%s1761_s1 + $0xc0] sm:$0xff] (!%p188_p7)   ;;  %1081 = vmatprep.subr.bf16.mxu0 (!%p188_p7), %v1438_v16  ;;  %v1467_v21 = vld [vmem:[%s1761_s1 + $0xc8] sm:$0xff] (!%p188_p7)   ;;  %v1491_v25 = vld [vmem:[%s1761_s1 + $0xd0] sm:$0xff] (!%p188_p7)   ;;  %s1004_s12 = sshll.u32 (!%p188_p7), %s194_s6, 7 }
  0x1f   : > { %v1449_v18 = vld [vmem:[%s1761_s1] sm:$0xff] (!%p188_p7)   ;;  %1103 = vmatprep.subr.bf16.mxu1 (!%p188_p7), %v1443_v17  ;;  %v1473_v22 = vld [vmem:[%s1761_s1 + $0x8] sm:$0xff] (!%p188_p7)   ;;  %v1497_v26 = vld [vmem:[%s1761_s1 + $0x10] sm:$0xff] (!%p188_p7)   ;;  %s1627_s29 = scalar_lea.vmem (!%p188_p7), [#allocation2], %s1004_s12  ;;  %p219_p8 = scmp.lt.s32.totalorder (!%p188_p7), %s1005_s30, 3 }
  0x20   : > { %v1455_v19 = vld [vmem:[%s1761_s1 + $0x80] sm:$0xff] (!%p188_p7)   ;;  %1082 = vmatpush3.bf16.msra.mxu0 (!%p188_p7), %v1449_v18  ;;  %v1479_v23 = vld [vmem:[%s1761_s1 + $0x88] sm:$0xff] (!%p188_p7)   ;;  %v1503_v27 = vld [vmem:[%s1761_s1 + $0x90] sm:$0xff] (!%p188_p7)  }
  0x21   : > { %1104 = vmatpush3.bf16.msra.mxu1 (!%p188_p7), %v1455_v19  ;;  %1083 = vmatprep.subr.bf16.mxu0 (!%p188_p7), %v1461_v20  ;;  %v1509_v28 = vld [vmem:[%s1761_s1 + $0x58] sm:$0xff] (!%p188_p7)   ;;  %v1533_v32 = vld [vmem:[%s1761_s1 + $0x60] sm:$0xff] (!%p188_p7)   ;;  %v1557_v36 = vld [vmem:[%s1761_s1 + $0x68] sm:$0xff] (!%p188_p7)  }
  0x22   : > { %1105 = vmatprep.subr.bf16.mxu1 (!%p188_p7), %v1467_v21  ;;  %v1515_v29 = vld [vmem:[%s1761_s1 + $0xd8] sm:$0xff] (!%p188_p7)   ;;  %v1539_v33 = vld [vmem:[%s1761_s1 + $0xe0] sm:$0xff] (!%p188_p7)   ;;  %v1563_v37 = vld [vmem:[%s1761_s1 + $0xe8] sm:$0xff] (!%p188_p7)  }
  0x23   : > { %v1521_v30 = vld [vmem:[%s1761_s1 + $0x18] sm:$0xff] (!%p188_p7)   ;;  %v1545_v34 = vld [vmem:[%s1761_s1 + $0x20] sm:$0xff] (!%p188_p7)   ;;  %v1569_v38 = vld [vmem:[%s1761_s1 + $0x28] sm:$0xff] (!%p188_p7)  }
  0x24   : > { %1084 = vmatpush3.bf16.msra.mxu0 (!%p188_p7), %v1473_v22  ;;  %v1527_v31 = vld [vmem:[%s1761_s1 + $0x98] sm:$0xff] (!%p188_p7)   ;;  %v1551_v35 = vld [vmem:[%s1761_s1 + $0xa0] sm:$0xff] (!%p188_p7)   ;;  %v1575_v39 = vld [vmem:[%s1761_s1 + $0xa8] sm:$0xff] (!%p188_p7)  }
  0x25   : > { %1106 = vmatpush3.bf16.msra.mxu1 %v1479_v23  ;;  %1085 = vmatprep.subr.bf16.mxu0 %v1485_v24  ;;  %v1582_v40 = vld [vmem:[%s1761_s1 + $0x70] sm:$0xff]   ;;  %v1606_v44 = vld [vmem:[%s1761_s1 + $0x78] sm:$0xff]   ;;  %s1768_s30 = smov (!%p219_p8, %s1005_s30), 3 }
  0x26   : > { %1107 = vmatprep.subr.bf16.mxu1 %v1491_v25  ;;  %v1588_v41 = vld [vmem:[%s1761_s1 + $0xf0] sm:$0xff]   ;;  %v1612_v45 = vld [vmem:[%s1761_s1 + $0xf8] sm:$0xff]   ;;  %s1006_s15 = sshll.u32 %s1768_s30, 2 }
  0x27   : > { %v1594_v42 = vld [vmem:[%s1761_s1 + $0x30] sm:$0xff]   ;;  %v1618_v46 = vld [vmem:[%s1761_s1 + $0x38] sm:$0xff]   ;;  %s222_s7 = scalar_lea.vmem %s1763_s3, %s1006_s15 }
  0x28   : > { %1086 = vmatpush3.bf16.msra.mxu0 %v1497_v26  ;;  %v1600_v43 = vld [vmem:[%s1761_s1 + $0xb0] sm:$0xff]   ;;  %v1624_v47 = vld [vmem:[%s1761_s1 + $0xb8] sm:$0xff]  }
  0x29   : > { %1108 = vmatpush3.bf16.msra.mxu1 %v1503_v27  ;;  %1087 = vmatprep.subr.bf16.mxu0 %v1509_v28  ;;  %v1313_v48 = vld [vmem:[%s1627_s29] ss:$16 sps:$4 sm:$0xff]   ;;  %v1315_v49 = vld [vmem:[%s1627_s29 + $0x4] ss:$16 sps:$4 sm:$0xff]   ;;  %v1316_v50 = vld [vmem:[%s1627_s29 + $0x8] ss:$16 sps:$4 sm:$0xff]  }
  0x2a   : > { %1109 = vmatprep.subr.bf16.mxu1 %v1515_v29  ;;  %v1318_v51 = vld [vmem:[%s1627_s29 + $0xc] ss:$16 sps:$4 sm:$0xff]   ;;  %537 = vmatprep.mubr.bf16.mxu0 %v1315_v49  ;;  %v1321_v52 = vld [vmem:[%s1627_s29 + $0x24] ss:$16 sps:$4 sm:$0xff]   ;;  %v1319_v54 = vld [vmem:[%s1627_s29 + $0x20] ss:$16 sps:$4 sm:$0xff]  }
  0x2b   : > { %578 = vmatprep.mubr.bf16.mxu1 %v1318_v51  ;;  %v1324_v53 = vld [vmem:[%s1627_s29 + $0x2c] ss:$16 sps:$4 sm:$0xff]   ;;  %v1322_v55 = vld [vmem:[%s1627_s29 + $0x28] ss:$16 sps:$4 sm:$0xff]   ;;  %v1327_v56 = vld [vmem:[%s1627_s29 + $0x44] ss:$16 sps:$4 sm:$0xff]  }
  0x2c   : > { %1088 = vmatpush3.bf16.msra.mxu0 %v1521_v30  ;;  %v1330_v57 = vld [vmem:[%s1627_s29 + $0x4c] ss:$16 sps:$4 sm:$0xff]   ;;  %v1325_v58 = vld [vmem:[%s1627_s29 + $0x40] ss:$16 sps:$4 sm:$0xff]   ;;  %v1328_v59 = vld [vmem:[%s1627_s29 + $0x48] ss:$16 sps:$4 sm:$0xff]  }
  0x2d   : > { %1110 = vmatpush3.bf16.msra.mxu1 %v1527_v31  ;;  %1089 = vmatprep.subr.bf16.mxu0 %v1533_v32  ;;  %v1333_v60 = vld [vmem:[%s1627_s29 + $0x64] ss:$16 sps:$4 sm:$0xff]   ;;  %v1336_v61 = vld [vmem:[%s1627_s29 + $0x6c] ss:$16 sps:$4 sm:$0xff]   ;;  %v1331_v62 = vld [vmem:[%s1627_s29 + $0x60] ss:$16 sps:$4 sm:$0xff]  }
  0x2e   : > { %1111 = vmatprep.subr.bf16.mxu1 %v1539_v33  ;;  %v1334_v63 = vld [vmem:[%s1627_s29 + $0x68] ss:$16 sps:$4 sm:$0xff]  }
  0x30   : > { %1090 = vmatpush3.bf16.msra.mxu0 %v1545_v34 }
  0x31   : > { %1112 = vmatpush3.bf16.msra.mxu1 %v1551_v35  ;;  %1091 = vmatprep.subr.bf16.mxu0 %v1557_v36 }
  0x32   : > { %1113 = vmatprep.subr.bf16.mxu1 %v1563_v37 }
  0x34   : > { %1092 = vmatpush3.bf16.msra.mxu0 %v1569_v38 }
  0x35   : > { %1114 = vmatpush3.bf16.msra.mxu1 %v1575_v39  ;;  %1093 = vmatprep.subr.bf16.mxu0 %v1582_v40 }
  0x36   : > { %1115 = vmatprep.subr.bf16.mxu1 %v1588_v41 }
  0x38   : > { %1094 = vmatpush3.bf16.msra.mxu0 %v1594_v42 }
  0x39   : > { %1116 = vmatpush3.bf16.msra.mxu1 %v1600_v43  ;;  %1095 = vmatprep.subr.bf16.mxu0 %v1606_v44 }
  0x3a   : > { %1117 = vmatprep.subr.bf16.mxu1 %v1612_v45 }
  0x3c   : > { %1096 = vmatpush3.bf16.msra.mxu0 %v1618_v46 }
  0x3d   : > { %1118 = vmatpush3.bf16.msra.mxu1 %v1624_v47  ;;  %1125 = vmatprep.subr.bf16.mxu0 %v1438_v16 }
  0x3e   : > { %1147 = vmatprep.subr.bf16.mxu1 %v1443_v17 }
  0x3f   : > { %538 = vmatmul.mubr.bf16.vlgmr.msra.gmra.mrb[0].mxu0 %v1313_v48 }
  0x40   : > { %579 = vmatmul.mubr.bf16.vlgmr.msra.gmra.mrb[0].mxu1 %v1316_v50  ;;  %1126 = vmatpush3.bf16.msra.mxu0 %v1449_v18 }
  0x41   : > { %1148 = vmatpush3.bf16.msra.mxu1 %v1455_v19  ;;  %1127 = vmatprep.subr.bf16.mxu0 %v1461_v20 }
  0x42   : > { %1149 = vmatprep.subr.bf16.mxu1 %v1467_v21  ;;  %644 = vmatprep.mubr.bf16.mxu0 %v1321_v52 }
  0x43   : > { %685 = vmatprep.mubr.bf16.mxu1 %v1324_v53 }
  0x44   : > { %1128 = vmatpush3.bf16.msra.mxu0 %v1473_v22 }
  0x45   : > { %1150 = vmatpush3.bf16.msra.mxu1 %v1479_v23  ;;  %1129 = vmatprep.subr.bf16.mxu0 %v1485_v24 }
  0x46   : > { %1151 = vmatprep.subr.bf16.mxu1 %v1491_v25 }
  0x48   : > { %1130 = vmatpush3.bf16.msra.mxu0 %v1497_v26 }
  0x49   : > { %1152 = vmatpush3.bf16.msra.mxu1 %v1503_v27  ;;  %1131 = vmatprep.subr.bf16.mxu0 %v1509_v28 }
  0x4a   : > { %1153 = vmatprep.subr.bf16.mxu1 %v1515_v29 }
  0x4c   : > { %1132 = vmatpush3.bf16.msra.mxu0 %v1521_v30 }
  0x4d   : > { %1154 = vmatpush3.bf16.msra.mxu1 %v1527_v31  ;;  %1133 = vmatprep.subr.bf16.mxu0 %v1533_v32 }
  0x4e   : > { %1155 = vmatprep.subr.bf16.mxu1 %v1539_v33 }
  0x50   : > { %1134 = vmatpush3.bf16.msra.mxu0 %v1545_v34 }
  0x51   : > { %1156 = vmatpush3.bf16.msra.mxu1 %v1551_v35  ;;  %1135 = vmatprep.subr.bf16.mxu0 %v1557_v36 }
  0x52   : > { %1157 = vmatprep.subr.bf16.mxu1 %v1563_v37 }
  0x54   : > { %1136 = vmatpush3.bf16.msra.mxu0 %v1569_v38 }
  0x55   : > { %1158 = vmatpush3.bf16.msra.mxu1 %v1575_v39  ;;  %1137 = vmatprep.subr.bf16.mxu0 %v1582_v40 }
  0x56   : > { %1159 = vmatprep.subr.bf16.mxu1 %v1588_v41 }
  0x58   : > { %1138 = vmatpush3.bf16.msra.mxu0 %v1594_v42 }
  0x59   : > { %1160 = vmatpush3.bf16.msra.mxu1 %v1600_v43  ;;  %1139 = vmatprep.subr.bf16.mxu0 %v1606_v44 }
  0x5a   : > { %1161 = vmatprep.subr.bf16.mxu1 %v1612_v45 }
  0x5c   : > { %1140 = vmatpush3.bf16.msra.mxu0 %v1618_v46 }
  0x5d   : > { %1162 = vmatpush3.bf16.msra.mxu1 %v1624_v47  ;;  %1169 = vmatprep.subr.bf16.mxu0 %v1438_v16 }
  0x5e   : > { %1191 = vmatprep.subr.bf16.mxu1 %v1443_v17 }
  0x5f   : > { %645 = vmatmul.mubr.bf16.vlgmr.msra.gmra.mrb[4].mxu0 %v1319_v54 }
  0x60   : > { %686 = vmatmul.mubr.bf16.vlgmr.msra.gmra.mrb[4].mxu1 %v1322_v55  ;;  %1170 = vmatpush3.bf16.msra.mxu0 %v1449_v18 }
  0x61   : > { %1192 = vmatpush3.bf16.msra.mxu1 %v1455_v19  ;;  %1171 = vmatprep.subr.bf16.mxu0 %v1461_v20 }
  0x62   : > { %1193 = vmatprep.subr.bf16.mxu1 %v1467_v21  ;;  %753 = vmatprep.mubr.bf16.mxu0 %v1327_v56 }
  0x63   : > { %794 = vmatprep.mubr.bf16.mxu1 %v1330_v57 }
  0x64   : > { %1172 = vmatpush3.bf16.msra.mxu0 %v1473_v22 }
  0x65   : > { %1194 = vmatpush3.bf16.msra.mxu1 %v1479_v23  ;;  %1173 = vmatprep.subr.bf16.mxu0 %v1485_v24 }
  0x66   : > { %1195 = vmatprep.subr.bf16.mxu1 %v1491_v25 }
  0x68   : > { %1174 = vmatpush3.bf16.msra.mxu0 %v1497_v26 }
  0x69   : > { %1196 = vmatpush3.bf16.msra.mxu1 %v1503_v27  ;;  %1175 = vmatprep.subr.bf16.mxu0 %v1509_v28 }
  0x6a   : > { %1197 = vmatprep.subr.bf16.mxu1 %v1515_v29 }
  0x6c   : > { %1176 = vmatpush3.bf16.msra.mxu0 %v1521_v30 }
  0x6d   : > { %1198 = vmatpush3.bf16.msra.mxu1 %v1527_v31  ;;  %1177 = vmatprep.subr.bf16.mxu0 %v1533_v32 }
  0x6e   : > { %1199 = vmatprep.subr.bf16.mxu1 %v1539_v33 }
  0x70   : > { %1178 = vmatpush3.bf16.msra.mxu0 %v1545_v34 }
  0x71   : > { %1200 = vmatpush3.bf16.msra.mxu1 %v1551_v35  ;;  %1179 = vmatprep.subr.bf16.mxu0 %v1557_v36 }
  0x72   : > { %1201 = vmatprep.subr.bf16.mxu1 %v1563_v37 }
  0x74   : > { %1180 = vmatpush3.bf16.msra.mxu0 %v1569_v38 }
  0x75   : > { %1202 = vmatpush3.bf16.msra.mxu1 %v1575_v39  ;;  %1181 = vmatprep.subr.bf16.mxu0 %v1582_v40 }
  0x76   : > { %1203 = vmatprep.subr.bf16.mxu1 %v1588_v41 }
  0x78   : > { %1182 = vmatpush3.bf16.msra.mxu0 %v1594_v42 }
  0x79   : > { %1204 = vmatpush3.bf16.msra.mxu1 %v1600_v43  ;;  %1183 = vmatprep.subr.bf16.mxu0 %v1606_v44 }
  0x7a   : > { %1205 = vmatprep.subr.bf16.mxu1 %v1612_v45 }
  0x7c   : > { %1184 = vmatpush3.bf16.msra.mxu0 %v1618_v46 }
  0x7d   : > { %1206 = vmatpush3.bf16.msra.mxu1 %v1624_v47  ;;  %1213 = vmatprep.subr.bf16.mxu0 %v1438_v16 }
  0x7e   : > { %1235 = vmatprep.subr.bf16.mxu1 %v1443_v17 }
  0x7f   : > { %754 = vmatmul.mubr.bf16.vlgmr.msra.gmra.mrb[8].mxu0 %v1325_v58 }
  0x80   : > { %795 = vmatmul.mubr.bf16.vlgmr.msra.gmra.mrb[8].mxu1 %v1328_v59  ;;  %1214 = vmatpush3.bf16.msra.mxu0 %v1449_v18 }
  0x81   : > { %1236 = vmatpush3.bf16.msra.mxu1 %v1455_v19  ;;  %1215 = vmatprep.subr.bf16.mxu0 %v1461_v20 }
  0x82   : > { %1237 = vmatprep.subr.bf16.mxu1 %v1467_v21  ;;  %862 = vmatprep.mubr.bf16.mxu0 %v1333_v60 }
  0x83   : > { %903 = vmatprep.mubr.bf16.mxu1 %v1336_v61  ;;  %v1067_v61 = vld [vmem:[%s1762_s2] ss:$0 sm:$0xff] }
  0x84   : > { %1216 = vmatpush3.bf16.msra.mxu0 %v1473_v22 }
  0x85   : > { %1238 = vmatpush3.bf16.msra.mxu1 %v1479_v23  ;;  %1217 = vmatprep.subr.bf16.mxu0 %v1485_v24 }
  0x86   : > { %1239 = vmatprep.subr.bf16.mxu1 %v1491_v25 }
  0x88   : > { %1218 = vmatpush3.bf16.msra.mxu0 %v1497_v26 }
  0x89   : > { %1240 = vmatpush3.bf16.msra.mxu1 %v1503_v27  ;;  %1219 = vmatprep.subr.bf16.mxu0 %v1509_v28 }
  0x8a   : > { %1241 = vmatprep.subr.bf16.mxu1 %v1515_v29 }
  0x8c   : > { %1220 = vmatpush3.bf16.msra.mxu0 %v1521_v30 }
  0x8d   : > { %1242 = vmatpush3.bf16.msra.mxu1 %v1527_v31  ;;  %1221 = vmatprep.subr.bf16.mxu0 %v1533_v32 }
  0x8e   : > { %1243 = vmatprep.subr.bf16.mxu1 %v1539_v33 }
  0x90   : > { %1222 = vmatpush3.bf16.msra.mxu0 %v1545_v34 }
  0x91   : > { %1244 = vmatpush3.bf16.msra.mxu1 %v1551_v35  ;;  %1223 = vmatprep.subr.bf16.mxu0 %v1557_v36 }
  0x92   : > { %1245 = vmatprep.subr.bf16.mxu1 %v1563_v37 }
  0x94   : > { %1224 = vmatpush3.bf16.msra.mxu0 %v1569_v38 }
  0x95   : > { %1246 = vmatpush3.bf16.msra.mxu1 %v1575_v39  ;;  %1225 = vmatprep.subr.bf16.mxu0 %v1582_v40 }
  0x96   : > { %1247 = vmatprep.subr.bf16.mxu1 %v1588_v41 }
  0x98   : > { %1226 = vmatpush3.bf16.msra.mxu0 %v1594_v42 }
  0x99   : > { %1248 = vmatpush3.bf16.msra.mxu1 %v1600_v43  ;;  %1227 = vmatprep.subr.bf16.mxu0 %v1606_v44 }
  0x9a   : > { %1249 = vmatprep.subr.bf16.mxu1 %v1612_v45 }
  0x9c   : > { %1228 = vmatpush3.bf16.msra.mxu0 %v1618_v46 }
  0x9d   : > { %1250 = vmatpush3.bf16.msra.mxu1 %v1624_v47 }
  0x9f   : > { %863 = vmatmul.mubr.bf16.vlgmr.msra.gmra.mrb[12].mxu0 %v1331_v62 }
  0xa0   : > { %904 = vmatmul.mubr.bf16.vlgmr.msra.gmra.mrb[12].mxu1 %v1334_v63 }
 0x112   : > { %v1097_v0 = vpop.f32.mrb[0].mxu0 }
 0x113   : > { %v1119_v1 = vpop.f32.mrb[0].mxu1  ;;  %v1098_v2 = vpop.f32.mrb[1].mxu0 }
 0x114   : > { %v1099_v3 = vadd.f32 %v1098_v2, %v1097_v0  ;;  %v1120_v4 = vpop.f32.mrb[1].mxu1  ;;  %v1100_v5 = vpop.f32.mrb[2].mxu0 }
 0x115   : > { %v1121_v6 = vadd.f32 %v1120_v4, %v1119_v1  ;;  %v1122_v7 = vpop.f32.mrb[2].mxu1  ;;  %v1101_v8 = vpop.f32.mrb[3].mxu0 }
 0x116   : > { %v1102_v9 = vadd.f32 %v1101_v8, %v1100_v5  ;;  %v1123_v10 = vpop.f32.mrb[3].mxu1 }
 0x117   : > { %v581_v11 = vadd.f32 %v1121_v6, %v1099_v3  ;;  %v1124_v12 = vadd.f32 %v1123_v10, %v1122_v7 }
 0x119   : > { %v584_v13 = vadd.f32 %v1124_v12, %v1102_v9 }
 0x132   : > { %v1141_v14 = vpop.f32.mrb[4].mxu0 }
 0x133   : > { %v1163_v15 = vpop.f32.mrb[4].mxu1  ;;  %v1142_v16 = vpop.f32.mrb[5].mxu0 }
 0x134   : > { %v1143_v17 = vadd.f32 %v1142_v16, %v1141_v14  ;;  %v1164_v18 = vpop.f32.mrb[5].mxu1  ;;  %v1144_v19 = vpop.f32.mrb[6].mxu0 }
 0x135   : > { %v1165_v20 = vadd.f32 %v1164_v18, %v1163_v15  ;;  %v1166_v21 = vpop.f32.mrb[6].mxu1  ;;  %v1145_v22 = vpop.f32.mrb[7].mxu0 }
 0x136   : > { %v1146_v23 = vadd.f32 %v1145_v22, %v1144_v19  ;;  %v1167_v24 = vpop.f32.mrb[7].mxu1 }
 0x137   : > { %v688_v25 = vadd.f32 %v1165_v20, %v1143_v17  ;;  %v1168_v26 = vadd.f32 %v1167_v24, %v1166_v21 }
 0x139   : > { %v694_v27 = vmax.f32 %v581_v11, %v688_v25  ;;  %v691_v28 = vadd.f32 %v1168_v26, %v1146_v23 }
 0x13b   : > { %v695_v29 = vmax.f32 %v584_v13, %v691_v28 }
 0x152   : > { %v1185_v30 = vpop.f32.mrb[8].mxu0 }
 0x153   : > { %v1207_v31 = vpop.f32.mrb[8].mxu1  ;;  %v1186_v32 = vpop.f32.mrb[9].mxu0 }
 0x154   : > { %v1187_v33 = vadd.f32 %v1186_v32, %v1185_v30  ;;  %v1208_v34 = vpop.f32.mrb[9].mxu1  ;;  %v1188_v35 = vpop.f32.mrb[10].mxu0 }
 0x155   : > { %v1209_v36 = vadd.f32 %v1208_v34, %v1207_v31  ;;  %v1210_v37 = vpop.f32.mrb[10].mxu1  ;;  %v1189_v38 = vpop.f32.mrb[11].mxu0 }
 0x156   : > { %v1190_v39 = vadd.f32 %v1189_v38, %v1188_v35  ;;  %v1211_v40 = vpop.f32.mrb[11].mxu1 }
 0x157   : > { %v797_v41 = vadd.f32 %v1209_v36, %v1187_v33  ;;  %v1212_v42 = vadd.f32 %v1211_v40, %v1210_v37 }
 0x159   : > { %v803_v43 = vmax.f32 %v694_v27, %v797_v41  ;;  %v800_v44 = vadd.f32 %v1212_v42, %v1190_v39 }
 0x15b   : > { %v804_v45 = vmax.f32 %v695_v29, %v800_v44 }
 0x172   : > { %v1229_v46 = vpop.f32.mrb[12].mxu0 }
 0x173   : > { %v1251_v47 = vpop.f32.mrb[12].mxu1  ;;  %v1230_v48 = vpop.f32.mrb[13].mxu0 }
 0x174   : > { %v1231_v49 = vadd.f32 %v1230_v48, %v1229_v46  ;;  %v1252_v50 = vpop.f32.mrb[13].mxu1  ;;  %v1232_v51 = vpop.f32.mrb[14].mxu0 }
 0x175   : > { %v1253_v52 = vadd.f32 %v1252_v50, %v1251_v47  ;;  %v1254_v53 = vpop.f32.mrb[14].mxu1  ;;  %v1233_v54 = vpop.f32.mrb[15].mxu0 }
 0x176   : > { %v1234_v55 = vadd.f32 %v1233_v54, %v1232_v51  ;;  %v1255_v56 = vpop.f32.mrb[15].mxu1 }
 0x177   : > { %v906_v57 = vadd.f32 %v1253_v52, %v1231_v49  ;;  %v1256_v58 = vadd.f32 %v1255_v56, %v1254_v53 }
 0x179   : > { %v912_v59 = vmax.f32 %v803_v43, %v906_v57  ;;  %v909_v60 = vadd.f32 %v1256_v58, %v1234_v55 }
 0x17b   : > { %v913_v62 = vmax.f32 %v804_v45, %v909_v60  ;;  %v921_v63 = vadd.f32 %v1067_v61, %v912_v59 }
 0x17d   : > { %v922_v0 = vadd.f32 %v1067_v61, %v913_v62 }
 0x17f   : > { %v1079_v1 = vpack.c.bf16 %v922_v0, %v921_v63 }
 0x181   : > { %1080 = vst [vmem:[%s222_s7] sm:$0xff] %v1079_v1  }
 0x182 PF: > { %p10_p9 = scmp.ge.s32.totalorder %s1398_s16, 4   ;;  %s1764_s12 = smov %s1355_s13 }
 0x183   : > { %s1765_s13 = smov %s1407_s19  ;;  %s1766_s14 = smov %s1398_s16 }
 0x184   :  { %12 = sbr.rel (!%p10_p9) target bundleno = 2 (0x2), region = 93 }

// kernel: net_forward.5
= control target key start
LH: loop header
LB: loop body
LE: loop exit
PB: predicated region body
PF: predicated region fallthrough
CT: control target
= control target key end

     0   :  { %v538_v36 = vlaneseq  ;;  %v5733_v37 = vmov 1966171168   ;;  %s7509_s0 = inlined_call_operand.vmem [shape: bf16[2,2048], index: 0, kind: input, shape index: {}]   ;;  %s7510_s1 = inlined_call_operand.vmem [shape: bf16[2048,512], index: 1, kind: input, shape index: {}]   ;;  %s7511_s2 = inlined_call_operand.vmem [shape: f32[1,512], index: 2, kind: input, shape index: {}]   ;;  %s7512_s3 = inlined_call_operand.vmem [shape: bf16[512,128], index: 3, kind: input, shape index: {}]   ;;  %s7513_s4 = inlined_call_operand.vmem [shape: f32[1,128], index: 4, kind: input, shape index: {}]   ;;  %s7514_s5 = inlined_call_operand.hbm [shape: f32[2,128], index: 5, kind: output, shape index: {}]  }
   0x1   :  { %v4907_v0 = vld [vmem:[%s7510_s1 + $0x4] ss:$16 sps:$4 sm:$0xff]   ;;  %v4909_v1 = vld [vmem:[%s7510_s1 + $0xc] ss:$16 sps:$4 sm:$0xff]   ;;  %v4911_v2 = vld [vmem:[%s7510_s1] ss:$16 sps:$4 sm:$0xff]   ;;  %v562_v38 = vunpack.c.l.s4 %v5733_v37 }
   0x2   :  { %3234 = vmatprep.subr.bf16.mxu0 %v4907_v0  ;;  %v4912_v3 = vld [vmem:[%s7510_s1 + $0x8] ss:$16 sps:$4 sm:$0xff]   ;;  %3562 = vmatprep.subr.bf16.mxu1 %v4909_v1  ;;  %v4913_v4 = vld [vmem:[%s7510_s1 + $0x24] ss:$16 sps:$4 sm:$0xff]   ;;  %v4915_v5 = vld [vmem:[%s7510_s1 + $0x2c] ss:$16 sps:$4 sm:$0xff]  }
   0x3   :  { %3235 = vmatpush1.bf16.msra.mxu0 %v4911_v2  ;;  %3563 = vmatpush1.bf16.msra.mxu1 %v4912_v3  ;;  %v4917_v6 = vld [vmem:[%s7510_s1 + $0x20] ss:$16 sps:$4 sm:$0xff]   ;;  %v4918_v7 = vld [vmem:[%s7510_s1 + $0x28] ss:$16 sps:$4 sm:$0xff]   ;;  %v4919_v8 = vld [vmem:[%s7510_s1 + $0x44] ss:$16 sps:$4 sm:$0xff]   ;;  %v563_v43 = vunpack.c.0.s8 %v562_v38 }
   0x4   :  { %3236 = vmatprep.subr.bf16.mxu0 %v4913_v4  ;;  %3564 = vmatprep.subr.bf16.mxu1 %v4915_v5  ;;  %v4921_v9 = vld [vmem:[%s7510_s1 + $0x4c] ss:$16 sps:$4 sm:$0xff]   ;;  %v4923_v10 = vld [vmem:[%s7510_s1 + $0x40] ss:$16 sps:$4 sm:$0xff]   ;;  %v4924_v11 = vld [vmem:[%s7510_s1 + $0x48] ss:$16 sps:$4 sm:$0xff]  }
   0x5   :  { %v4925_v12 = vld [vmem:[%s7510_s1 + $0x64] ss:$16 sps:$4 sm:$0xff]   ;;  %v4927_v13 = vld [vmem:[%s7510_s1 + $0x6c] ss:$16 sps:$4 sm:$0xff]   ;;  %v4929_v14 = vld [vmem:[%s7510_s1 + $0x60] ss:$16 sps:$4 sm:$0xff]  }
   0x6   :  { %v4930_v15 = vld [vmem:[%s7510_s1 + $0x68] ss:$16 sps:$4 sm:$0xff]   ;;  %v4931_v16 = vld [vmem:[%s7510_s1 + $0x84] ss:$16 sps:$4 sm:$0xff]   ;;  %v4933_v17 = vld [vmem:[%s7510_s1 + $0x8c] ss:$16 sps:$4 sm:$0xff]  }
   0x7   :  { %3237 = vmatpush1.bf16.msra.mxu0 %v4917_v6  ;;  %3565 = vmatpush1.bf16.msra.mxu1 %v4918_v7  ;;  %v4935_v18 = vld [vmem:[%s7510_s1 + $0x80] ss:$16 sps:$4 sm:$0xff]   ;;  %v4936_v19 = vld [vmem:[%s7510_s1 + $0x88] ss:$16 sps:$4 sm:$0xff]   ;;  %v4937_v20 = vld [vmem:[%s7510_s1 + $0xa4] ss:$16 sps:$4 sm:$0xff]  }
   0x8   :  { %3238 = vmatprep.subr.bf16.mxu0 %v4919_v8  ;;  %3566 = vmatprep.subr.bf16.mxu1 %v4921_v9  ;;  %v4939_v21 = vld [vmem:[%s7510_s1 + $0xac] ss:$16 sps:$4 sm:$0xff]   ;;  %v4941_v22 = vld [vmem:[%s7510_s1 + $0xa0] ss:$16 sps:$4 sm:$0xff]   ;;  %v4942_v23 = vld [vmem:[%s7510_s1 + $0xa8] ss:$16 sps:$4 sm:$0xff]  }
   0x9   :  { %v4943_v24 = vld [vmem:[%s7510_s1 + $0xc4] ss:$16 sps:$4 sm:$0xff]   ;;  %v4945_v25 = vld [vmem:[%s7510_s1 + $0xcc] ss:$16 sps:$4 sm:$0xff]   ;;  %v4947_v26 = vld [vmem:[%s7510_s1 + $0xc0] ss:$16 sps:$4 sm:$0xff]  }
   0xa   :  { %v4948_v27 = vld [vmem:[%s7510_s1 + $0xc8] ss:$16 sps:$4 sm:$0xff]   ;;  %v4949_v28 = vld [vmem:[%s7510_s1 + $0xe4] ss:$16 sps:$4 sm:$0xff]   ;;  %v4951_v29 = vld [vmem:[%s7510_s1 + $0xec] ss:$16 sps:$4 sm:$0xff]  }
   0xb   :  { %3239 = vmatpush1.bf16.msra.mxu0 %v4923_v10  ;;  %3567 = vmatpush1.bf16.msra.mxu1 %v4924_v11  ;;  %v4953_v30 = vld [vmem:[%s7510_s1 + $0xe0] ss:$16 sps:$4 sm:$0xff]   ;;  %v4954_v31 = vld [vmem:[%s7510_s1 + $0xe8] ss:$16 sps:$4 sm:$0xff]   ;;  %v4955_v32 = vld [vmem:[%s7510_s1 + $0x104] ss:$16 sps:$4 sm:$0xff]  }
   0xc   :  { %3240 = vmatprep.subr.bf16.mxu0 %v4925_v12  ;;  %3568 = vmatprep.subr.bf16.mxu1 %v4927_v13  ;;  %v4957_v33 = vld [vmem:[%s7510_s1 + $0x10c] ss:$16 sps:$4 sm:$0xff]   ;;  %v4959_v34 = vld [vmem:[%s7510_s1 + $0x100] ss:$16 sps:$4 sm:$0xff]   ;;  %v4960_v35 = vld [vmem:[%s7510_s1 + $0x108] ss:$16 sps:$4 sm:$0xff]  }
   0xd   :  { %v4961_v39 = vld [vmem:[%s7510_s1 + $0x124] ss:$16 sps:$4 sm:$0xff]   ;;  %v4963_v40 = vld [vmem:[%s7510_s1 + $0x12c] ss:$16 sps:$4 sm:$0xff]   ;;  %v4965_v41 = vld [vmem:[%s7510_s1 + $0x120] ss:$16 sps:$4 sm:$0xff]  }
   0xe   :  { %v5882_v42 = vshrl.u32 %v538_v36, 7  ;;  %v4966_v44 = vld [vmem:[%s7510_s1 + $0x128] ss:$16 sps:$4 sm:$0xff]   ;;  %v4967_v45 = vld [vmem:[%s7510_s1 + $0x144] ss:$16 sps:$4 sm:$0xff]  }
   0xf   :  { %3241 = vmatpush1.bf16.msra.mxu0 %v4929_v14  ;;  %3569 = vmatpush1.bf16.msra.mxu1 %v4930_v15  ;;  %v4969_v46 = vld [vmem:[%s7510_s1 + $0x14c] ss:$16 sps:$4 sm:$0xff]   ;;  %v4971_v47 = vld [vmem:[%s7510_s1 + $0x140] ss:$16 sps:$4 sm:$0xff]   ;;  %v4972_v48 = vld [vmem:[%s7510_s1 + $0x148] ss:$16 sps:$4 sm:$0xff]  }
  0x10   :  { %3242 = vmatprep.subr.bf16.mxu0 %v4931_v16  ;;  %3570 = vmatprep.subr.bf16.mxu1 %v4933_v17  ;;  %v5900_v49 = vsub.s32 %v563_v43, %v5882_v42  ;;  %v4973_v50 = vld [vmem:[%s7510_s1 + $0x164] ss:$16 sps:$4 sm:$0xff]   ;;  %v4975_v51 = vld [vmem:[%s7510_s1 + $0x16c] ss:$16 sps:$4 sm:$0xff]   ;;  %v4977_v53 = vld [vmem:[%s7510_s1 + $0x160] ss:$16 sps:$4 sm:$0xff]  }
  0x11   :  { %v5911_v52 = vld [vmem:[%s7509_s0] sm:$0xff]  ;;  %v4978_v55 = vld [vmem:[%s7510_s1 + $0x168] ss:$16 sps:$4 sm:$0xff]   ;;  %v4981_v57 = vld [vmem:[%s7510_s1 + $0x18c] ss:$16 sps:$4 sm:$0xff]  }
  0x12   :  { %v567_v54 = vrot.slane %v5911_v52, %v5900_v49  ;;  %v4979_v56 = vld [vmem:[%s7510_s1 + $0x184] ss:$16 sps:$4 sm:$0xff]   ;;  %v4983_v59 = vld [vmem:[%s7510_s1 + $0x180] ss:$16 sps:$4 sm:$0xff]   ;;  %v4984_v61 = vld [vmem:[%s7510_s1 + $0x188] ss:$16 sps:$4 sm:$0xff]  }
  0x13   :  { %3243 = vmatpush1.bf16.msra.mxu0 %v4935_v18  ;;  %3571 = vmatpush1.bf16.msra.mxu1 %v4936_v19  ;;  %v4985_v62 = vld [vmem:[%s7510_s1 + $0x1a4] ss:$16 sps:$4 sm:$0xff]   ;;  %v4987_v63 = vld [vmem:[%s7510_s1 + $0x1ac] ss:$16 sps:$4 sm:$0xff]   ;;  %v4989_v0 = vld [vmem:[%s7510_s1 + $0x1a0] ss:$16 sps:$4 sm:$0xff]  }
  0x14   :  { %3244 = vmatprep.subr.bf16.mxu0 %v4937_v20  ;;  %3572 = vmatprep.subr.bf16.mxu1 %v4939_v21  ;;  %v575_v58 = vcombine.high %v567_v54, %v567_v54  ;;  %v4990_v1 = vld [vmem:[%s7510_s1 + $0x1a8] ss:$16 sps:$4 sm:$0xff]   ;;  %v4991_v2 = vld [vmem:[%s7510_s1 + $0x1c4] ss:$16 sps:$4 sm:$0xff]   ;;  %v4993_v3 = vld [vmem:[%s7510_s1 + $0x1cc] ss:$16 sps:$4 sm:$0xff]   ;;  %v5980_v13 = vrot.slane %v567_v54, %v5900_v49 }
  0x15   :  { %v4995_v4 = vld [vmem:[%s7510_s1 + $0x1c0] ss:$16 sps:$4 sm:$0xff]   ;;  %v4996_v5 = vld [vmem:[%s7510_s1 + $0x1c8] ss:$16 sps:$4 sm:$0xff]   ;;  %v4997_v6 = vld [vmem:[%s7510_s1 + $0x1e4] ss:$16 sps:$4 sm:$0xff]  }
  0x16   :  { %v597_v60 = vrot.slane %v575_v58, %v5900_v49  ;;  %v4999_v7 = vld [vmem:[%s7510_s1 + $0x1ec] ss:$16 sps:$4 sm:$0xff]   ;;  %v5001_v8 = vld [vmem:[%s7510_s1 + $0x1e0] ss:$16 sps:$4 sm:$0xff]   ;;  %v5002_v9 = vld [vmem:[%s7510_s1 + $0x1e8] ss:$16 sps:$4 sm:$0xff]  }
  0x17   :  { %3245 = vmatpush1.bf16.msra.mxu0 %v4941_v22  ;;  %3573 = vmatpush1.bf16.msra.mxu1 %v4942_v23  ;;  %v5005_v10 = vld [vmem:[%s7510_s1 + $0x204] ss:$16 sps:$4 sm:$0xff]   ;;  %v5008_v11 = vld [vmem:[%s7510_s1 + $0x20c] ss:$16 sps:$4 sm:$0xff]   ;;  %v5003_v12 = vld [vmem:[%s7510_s1 + $0x200] ss:$16 sps:$4 sm:$0xff]  }
  0x18   :  { %3246 = vmatprep.subr.bf16.mxu0 %v4943_v24  ;;  %3574 = vmatprep.subr.bf16.mxu1 %v4945_v25  ;;  %v5006_v14 = vld [vmem:[%s7510_s1 + $0x208] ss:$16 sps:$4 sm:$0xff]   ;;  %v5011_v15 = vld [vmem:[%s7510_s1 + $0x224] ss:$16 sps:$4 sm:$0xff]   ;;  %v5014_v16 = vld [vmem:[%s7510_s1 + $0x22c] ss:$16 sps:$4 sm:$0xff]   ;;  %v607_v17 = vcombine.high %v597_v60, %v597_v60 }
  0x19   :  { %3266 = vmatprep.mubr.bf16.mxu0 %v597_v60  ;;  %3594 = vmatprep.mubr.bf16.mxu1 %v597_v60  ;;  %v5009_v18 = vld [vmem:[%s7510_s1 + $0x220] ss:$16 sps:$4 sm:$0xff]   ;;  %v5012_v19 = vld [vmem:[%s7510_s1 + $0x228] ss:$16 sps:$4 sm:$0xff]   ;;  %v5017_v20 = vld [vmem:[%s7510_s1 + $0x244] ss:$16 sps:$4 sm:$0xff]  }
  0x1a   :  { %v5020_v21 = vld [vmem:[%s7510_s1 + $0x24c] ss:$16 sps:$4 sm:$0xff]   ;;  %v5015_v22 = vld [vmem:[%s7510_s1 + $0x240] ss:$16 sps:$4 sm:$0xff]   ;;  %v5018_v23 = vld [vmem:[%s7510_s1 + $0x248] ss:$16 sps:$4 sm:$0xff]  }
  0x1b   :  { %3247 = vmatpush1.bf16.msra.mxu0 %v4947_v26  ;;  %3575 = vmatpush1.bf16.msra.mxu1 %v4948_v27  ;;  %v5023_v24 = vld [vmem:[%s7510_s1 + $0x264] ss:$16 sps:$4 sm:$0xff]   ;;  %v5026_v25 = vld [vmem:[%s7510_s1 + $0x26c] ss:$16 sps:$4 sm:$0xff]   ;;  %v5021_v26 = vld [vmem:[%s7510_s1 + $0x260] ss:$16 sps:$4 sm:$0xff]  }
  0x1c   :  { %3248 = vmatprep.subr.bf16.mxu0 %v4949_v28  ;;  %3576 = vmatprep.subr.bf16.mxu1 %v4951_v29  ;;  %v5024_v27 = vld [vmem:[%s7510_s1 + $0x268] ss:$16 sps:$4 sm:$0xff]   ;;  %v5029_v28 = vld [vmem:[%s7510_s1 + $0x284] ss:$16 sps:$4 sm:$0xff]   ;;  %v5032_v29 = vld [vmem:[%s7510_s1 + $0x28c] ss:$16 sps:$4 sm:$0xff]  }
  0x1d   :  { %v5041_v36 = vld [vmem:[%s7510_s1 + $0x2c4] ss:$16 sps:$4 sm:$0xff]   ;;  %v5044_v37 = vld [vmem:[%s7510_s1 + $0x2cc] ss:$16 sps:$4 sm:$0xff]   ;;  %v5039_v38 = vld [vmem:[%s7510_s1 + $0x2c0] ss:$16 sps:$4 sm:$0xff]  }
  0x1e   :  { %v5045_v43 = vld [vmem:[%s7510_s1 + $0x2e0] ss:$16 sps:$4 sm:$0xff]   ;;  %v5060_v54 = vld [vmem:[%s7510_s1 + $0x328] ss:$16 sps:$4 sm:$0xff]   ;;  %v5074_v60 = vld [vmem:[%s7510_s1 + $0x36c] ss:$16 sps:$4 sm:$0xff]  }
  0x1f   :  { %3249 = vmatpush1.bf16.msra.mxu0 %v4953_v30  ;;  %3577 = vmatpush1.bf16.msra.mxu1 %v4954_v31  ;;  %v5027_v30 = vld [vmem:[%s7510_s1 + $0x280] ss:$16 sps:$4 sm:$0xff]   ;;  %v5030_v31 = vld [vmem:[%s7510_s1 + $0x288] ss:$16 sps:$4 sm:$0xff]  }
  0x20   :  { %3250 = vmatprep.subr.bf16.mxu0 %v4955_v32  ;;  %3578 = vmatprep.subr.bf16.mxu1 %v4957_v33  ;;  %v5035_v32 = vld [vmem:[%s7510_s1 + $0x2a4] ss:$16 sps:$4 sm:$0xff]   ;;  %v5038_v33 = vld [vmem:[%s7510_s1 + $0x2ac] ss:$16 sps:$4 sm:$0xff]   ;;  %v5066_v58 = vld [vmem:[%s7510_s1 + $0x348] ss:$16 sps:$4 sm:$0xff]  }
  0x23   :  { %3251 = vmatpush1.bf16.msra.mxu0 %v4959_v34  ;;  %3579 = vmatpush1.bf16.msra.mxu1 %v4960_v35  ;;  %v5033_v34 = vld [vmem:[%s7510_s1 + $0x2a0] ss:$16 sps:$4 sm:$0xff]   ;;  %v5036_v35 = vld [vmem:[%s7510_s1 + $0x2a8] ss:$16 sps:$4 sm:$0xff]  }
  0x24   :  { %3252 = vmatprep.subr.bf16.mxu0 %v4961_v39  ;;  %3580 = vmatprep.subr.bf16.mxu1 %v4963_v40  ;;  %v5042_v39 = vld [vmem:[%s7510_s1 + $0x2c8] ss:$16 sps:$4 sm:$0xff]   ;;  %v5047_v40 = vld [vmem:[%s7510_s1 + $0x2e4] ss:$16 sps:$4 sm:$0xff]  }
  0x27   :  { %3253 = vmatpush1.bf16.msra.mxu0 %v4965_v41  ;;  %3581 = vmatpush1.bf16.msra.mxu1 %v4966_v44  ;;  %v5050_v41 = vld [vmem:[%s7510_s1 + $0x2ec] ss:$16 sps:$4 sm:$0xff]   ;;  %v5048_v44 = vld [vmem:[%s7510_s1 + $0x2e8] ss:$16 sps:$4 sm:$0xff]  }
  0x28   :  { %3254 = vmatprep.subr.bf16.mxu0 %v4967_v45  ;;  %3582 = vmatprep.subr.bf16.mxu1 %v4969_v46  ;;  %v5053_v45 = vld [vmem:[%s7510_s1 + $0x304] ss:$16 sps:$4 sm:$0xff]   ;;  %v5056_v46 = vld [vmem:[%s7510_s1 + $0x30c] ss:$16 sps:$4 sm:$0xff]  }
  0x2b   :  { %3255 = vmatpush1.bf16.msra.mxu0 %v4971_v47  ;;  %3583 = vmatpush1.bf16.msra.mxu1 %v4972_v48  ;;  %v5051_v47 = vld [vmem:[%s7510_s1 + $0x300] ss:$16 sps:$4 sm:$0xff]   ;;  %v5054_v48 = vld [vmem:[%s7510_s1 + $0x308] ss:$16 sps:$4 sm:$0xff]  }
  0x2c   :  { %3256 = vmatprep.subr.bf16.mxu0 %v4973_v50  ;;  %3584 = vmatprep.subr.bf16.mxu1 %v4975_v51  ;;  %v5059_v50 = vld [vmem:[%s7510_s1 + $0x324] ss:$16 sps:$4 sm:$0xff]   ;;  %v5062_v51 = vld [vmem:[%s7510_s1 + $0x32c] ss:$16 sps:$4 sm:$0xff]  }
  0x2f   :  { %3257 = vmatpush1.bf16.msra.mxu0 %v4977_v53  ;;  %3585 = vmatpush1.bf16.msra.mxu1 %v4978_v55  ;;  %v5057_v53 = vld [vmem:[%s7510_s1 + $0x320] ss:$16 sps:$4 sm:$0xff]   ;;  %v5065_v55 = vld [vmem:[%s7510_s1 + $0x344] ss:$16 sps:$4 sm:$0xff]  }
  0x30   :  { %3258 = vmatprep.subr.bf16.mxu0 %v4979_v56  ;;  %3586 = vmatprep.subr.bf16.mxu1 %v4981_v57  ;;  %v5068_v56 = vld [vmem:[%s7510_s1 + $0x34c] ss:$16 sps:$4 sm:$0xff]   ;;  %v5063_v57 = vld [vmem:[%s7510_s1 + $0x340] ss:$16 sps:$4 sm:$0xff]  }
  0x33   :  { %3259 = vmatpush1.bf16.msra.mxu0 %v4983_v59  ;;  %3587 = vmatpush1.bf16.msra.mxu1 %v4984_v61  ;;  %v5071_v59 = vld [vmem:[%s7510_s1 + $0x364] ss:$16 sps:$4 sm:$0xff]   ;;  %v5069_v61 = vld [vmem:[%s7510_s1 + $0x360] ss:$16 sps:$4 sm:$0xff]  }
  0x34   :  { %3260 = vmatprep.subr.bf16.mxu0 %v4985_v62  ;;  %3588 = vmatprep.subr.bf16.mxu1 %v4987_v63  ;;  %v5072_v62 = vld [vmem:[%s7510_s1 + $0x368] ss:$16 sps:$4 sm:$0xff]   ;;  %v5077_v63 = vld [vmem:[%s7510_s1 + $0x384] ss:$16 sps:$4 sm:$0xff]  }
  0x37   :  { %3261 = vmatpush1.bf16.msra.mxu0 %v4989_v0  ;;  %3589 = vmatpush1.bf16.msra.mxu1 %v4990_v1  ;;  %v5080_v0 = vld [vmem:[%s7510_s1 + $0x38c] ss:$16 sps:$4 sm:$0xff]   ;;  %v5075_v1 = vld [vmem:[%s7510_s1 + $0x380] ss:$16 sps:$4 sm:$0xff]  }
  0x38   :  { %3262 = vmatprep.subr.bf16.mxu0 %v4991_v2  ;;  %3590 = vmatprep.subr.bf16.mxu1 %v4993_v3  ;;  %v5078_v2 = vld [vmem:[%s7510_s1 + $0x388] ss:$16 sps:$4 sm:$0xff]   ;;  %v5083_v3 = vld [vmem:[%s7510_s1 + $0x3a4] ss:$16 sps:$4 sm:$0xff]  }
  0x3b   :  { %3263 = vmatpush1.bf16.msra.mxu0 %v4995_v4  ;;  %3591 = vmatpush1.bf16.msra.mxu1 %v4996_v5  ;;  %v5086_v4 = vld [vmem:[%s7510_s1 + $0x3ac] ss:$16 sps:$4 sm:$0xff]   ;;  %v5081_v5 = vld [vmem:[%s7510_s1 + $0x3a0] ss:$16 sps:$4 sm:$0xff]  }
  0x3c   :  { %3264 = vmatprep.subr.bf16.mxu0 %v4997_v6  ;;  %3592 = vmatprep.subr.bf16.mxu1 %v4999_v7  ;;  %v5084_v6 = vld [vmem:[%s7510_s1 + $0x3a8] ss:$16 sps:$4 sm:$0xff]   ;;  %v5089_v7 = vld [vmem:[%s7510_s1 + $0x3c4] ss:$16 sps:$4 sm:$0xff]  }
  0x3f   :  { %3265 = vmatpush1.bf16.msra.mxu0 %v5001_v8  ;;  %3593 = vmatpush1.bf16.msra.mxu1 %v5002_v9  ;;  %v5092_v8 = vld [vmem:[%s7510_s1 + $0x3cc] ss:$16 sps:$4 sm:$0xff]   ;;  %v560_v9 = vcombine.high %v5911_v52, %v5911_v52 }
  0x40   :  { %3275 = vmatprep.subr.bf16.mxu0 %v5005_v10  ;;  %3603 = vmatprep.subr.bf16.mxu1 %v5008_v11  ;;  %v5087_v10 = vld [vmem:[%s7510_s1 + $0x3c0] ss:$16 sps:$4 sm:$0xff]   ;;  %v5090_v11 = vld [vmem:[%s7510_s1 + $0x3c8] ss:$16 sps:$4 sm:$0xff]   ;;  %v5098_v52 = vld [vmem:[%s7510_s1 + $0x3ec] ss:$16 sps:$4 sm:$0xff]  }
  0x42   :  { %3267 = vmatmul.mubr.bf16.vlgmr.msra.gmra.mrb[0].mxu0 %v5980_v13  ;;  %3595 = vmatmul.mubr.bf16.vlgmr.msra.gmra.mrb[0].mxu1 %v5980_v13 }
  0x43   :  { %3276 = vmatpush1.bf16.msra.mxu0 %v5003_v12  ;;  %3604 = vmatpush1.bf16.msra.mxu1 %v5006_v14  ;;  %v5095_v12 = vld [vmem:[%s7510_s1 + $0x3e4] ss:$16 sps:$4 sm:$0xff]   ;;  %v6164_v14 = vrot.slane %v560_v9, %v5900_v49  ;;  %v5174_v9 = vld [vmem:[%s7510_s1 + $0x588] ss:$16 sps:$4 sm:$0xff]  }
  0x44   :  { %3277 = vmatprep.subr.bf16.mxu0 %v5011_v15  ;;  %3605 = vmatprep.subr.bf16.mxu1 %v5014_v16  ;;  %v5093_v15 = vld [vmem:[%s7510_s1 + $0x3e0] ss:$16 sps:$4 sm:$0xff]   ;;  %v5096_v16 = vld [vmem:[%s7510_s1 + $0x3e8] ss:$16 sps:$4 sm:$0xff]  }
  0x45   :  { %3307 = vmatprep.mubr.bf16.mxu0 %v607_v17  ;;  %3635 = vmatprep.mubr.bf16.mxu1 %v607_v17  ;;  %v5101_v17 = vld [vmem:[%s7510_s1 + $0x404] ss:$16 sps:$4 sm:$0xff]  }
  0x47   :  { %3278 = vmatpush1.bf16.msra.mxu0 %v5009_v18  ;;  %3606 = vmatpush1.bf16.msra.mxu1 %v5012_v19  ;;  %v5104_v18 = vld [vmem:[%s7510_s1 + $0x40c] ss:$16 sps:$4 sm:$0xff]   ;;  %v576_v19 = vcombine.high %v6164_v14, %v6164_v14 }
  0x48   :  { %3279 = vmatprep.subr.bf16.mxu0 %v5017_v20  ;;  %3607 = vmatprep.subr.bf16.mxu1 %v5020_v21  ;;  %v5099_v20 = vld [vmem:[%s7510_s1 + $0x400] ss:$16 sps:$4 sm:$0xff]   ;;  %v605_v21 = vcombine.high %v5980_v13, %v5980_v13 }
  0x49   :  { %v5105_v13 = vld [vmem:[%s7510_s1 + $0x420] ss:$16 sps:$4 sm:$0xff]  }
  0x4b   :  { %3280 = vmatpush1.bf16.msra.mxu0 %v5015_v22  ;;  %3608 = vmatpush1.bf16.msra.mxu1 %v5018_v23  ;;  %v5102_v22 = vld [vmem:[%s7510_s1 + $0x408] ss:$16 sps:$4 sm:$0xff]   ;;  %v5107_v23 = vld [vmem:[%s7510_s1 + $0x424] ss:$16 sps:$4 sm:$0xff]  }
  0x4c   :  { %3281 = vmatprep.subr.bf16.mxu0 %v5023_v24  ;;  %3609 = vmatprep.subr.bf16.mxu1 %v5026_v25  ;;  %v5110_v24 = vld [vmem:[%s7510_s1 + $0x42c] ss:$16 sps:$4 sm:$0xff]   ;;  %v6195_v25 = vrot.slane %v576_v19, %v5900_v49  ;;  %v5191_v19 = vld [vmem:[%s7510_s1 + $0x5e4] ss:$16 sps:$4 sm:$0xff]  }
  0x4f   :  { %3282 = vmatpush1.bf16.msra.mxu0 %v5021_v26  ;;  %3610 = vmatpush1.bf16.msra.mxu1 %v5024_v27  ;;  %v5108_v26 = vld [vmem:[%s7510_s1 + $0x428] ss:$16 sps:$4 sm:$0xff]   ;;  %v5113_v27 = vld [vmem:[%s7510_s1 + $0x444] ss:$16 sps:$4 sm:$0xff]  }
  0x50   :  { %3283 = vmatprep.subr.bf16.mxu0 %v5029_v28  ;;  %3611 = vmatprep.subr.bf16.mxu1 %v5032_v29  ;;  %v5116_v28 = vld [vmem:[%s7510_s1 + $0x44c] ss:$16 sps:$4 sm:$0xff]   ;;  %v5111_v29 = vld [vmem:[%s7510_s1 + $0x440] ss:$16 sps:$4 sm:$0xff]  }
  0x53   :  { %3284 = vmatpush1.bf16.msra.mxu0 %v5027_v30  ;;  %3612 = vmatpush1.bf16.msra.mxu1 %v5030_v31  ;;  %v5114_v30 = vld [vmem:[%s7510_s1 + $0x448] ss:$16 sps:$4 sm:$0xff]   ;;  %v5119_v31 = vld [vmem:[%s7510_s1 + $0x464] ss:$16 sps:$4 sm:$0xff]  }
  0x54   :  { %3285 = vmatprep.subr.bf16.mxu0 %v5035_v32  ;;  %3613 = vmatprep.subr.bf16.mxu1 %v5038_v33  ;;  %v5122_v32 = vld [vmem:[%s7510_s1 + $0x46c] ss:$16 sps:$4 sm:$0xff]   ;;  %v5117_v33 = vld [vmem:[%s7510_s1 + $0x460] ss:$16 sps:$4 sm:$0xff]  }
  0x57   :  { %3286 = vmatpush1.bf16.msra.mxu0 %v5033_v34  ;;  %3614 = vmatpush1.bf16.msra.mxu1 %v5036_v35  ;;  %v5120_v34 = vld [vmem:[%s7510_s1 + $0x468] ss:$16 sps:$4 sm:$0xff]   ;;  %v5125_v35 = vld [vmem:[%s7510_s1 + $0x484] ss:$16 sps:$4 sm:$0xff]  }
  0x58   :  { %3287 = vmatprep.subr.bf16.mxu0 %v5041_v36  ;;  %3615 = vmatprep.subr.bf16.mxu1 %v5044_v37  ;;  %v5128_v36 = vld [vmem:[%s7510_s1 + $0x48c] ss:$16 sps:$4 sm:$0xff]   ;;  %v5123_v37 = vld [vmem:[%s7510_s1 + $0x480] ss:$16 sps:$4 sm:$0xff]  }
  0x5b   :  { %3288 = vmatpush1.bf16.msra.mxu0 %v5039_v38  ;;  %3616 = vmatpush1.bf16.msra.mxu1 %v5042_v39  ;;  %v5126_v38 = vld [vmem:[%s7510_s1 + $0x488] ss:$16 sps:$4 sm:$0xff]   ;;  %v5131_v39 = vld [vmem:[%s7510_s1 + $0x4a4] ss:$16 sps:$4 sm:$0xff]  }
  0x5c   :  { %3289 = vmatprep.subr.bf16.mxu0 %v5047_v40  ;;  %3617 = vmatprep.subr.bf16.mxu1 %v5050_v41  ;;  %v5134_v40 = vld [vmem:[%s7510_s1 + $0x4ac] ss:$16 sps:$4 sm:$0xff]   ;;  %v5129_v41 = vld [vmem:[%s7510_s1 + $0x4a0] ss:$16 sps:$4 sm:$0xff]  }
  0x5f   :  { %3290 = vmatpush1.bf16.msra.mxu0 %v5045_v43  ;;  %3618 = vmatpush1.bf16.msra.mxu1 %v5048_v44  ;;  %v5132_v43 = vld [vmem:[%s7510_s1 + $0x4a8] ss:$16 sps:$4 sm:$0xff]   ;;  %v5137_v44 = vld [vmem:[%s7510_s1 + $0x4c4] ss:$16 sps:$4 sm:$0xff]  }
  0x60   :  { %3291 = vmatprep.subr.bf16.mxu0 %v5053_v45  ;;  %3619 = vmatprep.subr.bf16.mxu1 %v5056_v46  ;;  %v5140_v45 = vld [vmem:[%s7510_s1 + $0x4cc] ss:$16 sps:$4 sm:$0xff]   ;;  %v5135_v46 = vld [vmem:[%s7510_s1 + $0x4c0] ss:$16 sps:$4 sm:$0xff]  }
  0x63   :  { %3292 = vmatpush1.bf16.msra.mxu0 %v5051_v47  ;;  %3620 = vmatpush1.bf16.msra.mxu1 %v5054_v48  ;;  %v5138_v47 = vld [vmem:[%s7510_s1 + $0x4c8] ss:$16 sps:$4 sm:$0xff]   ;;  %v5143_v48 = vld [vmem:[%s7510_s1 + $0x4e4] ss:$16 sps:$4 sm:$0xff]  }
  0x64   :  { %3293 = vmatprep.subr.bf16.mxu0 %v5059_v50  ;;  %3621 = vmatprep.subr.bf16.mxu1 %v5062_v51  ;;  %v5146_v50 = vld [vmem:[%s7510_s1 + $0x4ec] ss:$16 sps:$4 sm:$0xff]   ;;  %v5141_v51 = vld [vmem:[%s7510_s1 + $0x4e0] ss:$16 sps:$4 sm:$0xff]  }
  0x67   :  { %3294 = vmatpush1.bf16.msra.mxu0 %v5057_v53  ;;  %3622 = vmatpush1.bf16.msra.mxu1 %v5060_v54  ;;  %v5144_v53 = vld [vmem:[%s7510_s1 + $0x4e8] ss:$16 sps:$4 sm:$0xff]   ;;  %v5149_v54 = vld [vmem:[%s7510_s1 + $0x504] ss:$16 sps:$4 sm:$0xff]  }
  0x68   :  { %3295 = vmatprep.subr.bf16.mxu0 %v5065_v55  ;;  %3623 = vmatprep.subr.bf16.mxu1 %v5068_v56  ;;  %v5152_v55 = vld [vmem:[%s7510_s1 + $0x50c] ss:$16 sps:$4 sm:$0xff]   ;;  %v5147_v56 = vld [vmem:[%s7510_s1 + $0x500] ss:$16 sps:$4 sm:$0xff]  }
  0x6b   :  { %3296 = vmatpush1.bf16.msra.mxu0 %v5063_v57  ;;  %3624 = vmatpush1.bf16.msra.mxu1 %v5066_v58  ;;  %v5150_v57 = vld [vmem:[%s7510_s1 + $0x508] ss:$16 sps:$4 sm:$0xff]   ;;  %v5155_v58 = vld [vmem:[%s7510_s1 + $0x524] ss:$16 sps:$4 sm:$0xff]  }
  0x6c   :  { %3297 = vmatprep.subr.bf16.mxu0 %v5071_v59  ;;  %3625 = vmatprep.subr.bf16.mxu1 %v5074_v60  ;;  %v5158_v59 = vld [vmem:[%s7510_s1 + $0x52c] ss:$16 sps:$4 sm:$0xff]   ;;  %v5153_v60 = vld [vmem:[%s7510_s1 + $0x520] ss:$16 sps:$4 sm:$0xff]  }
  0x6f   :  { %3298 = vmatpush1.bf16.msra.mxu0 %v5069_v61  ;;  %3626 = vmatpush1.bf16.msra.mxu1 %v5072_v62  ;;  %v5156_v61 = vld [vmem:[%s7510_s1 + $0x528] ss:$16 sps:$4 sm:$0xff]   ;;  %v5161_v62 = vld [vmem:[%s7510_s1 + $0x544] ss:$16 sps:$4 sm:$0xff]  }
  0x70   :  { %3299 = vmatprep.subr.bf16.mxu0 %v5077_v63  ;;  %3627 = vmatprep.subr.bf16.mxu1 %v5080_v0  ;;  %v5164_v63 = vld [vmem:[%s7510_s1 + $0x54c] ss:$16 sps:$4 sm:$0xff]   ;;  %v5159_v0 = vld [vmem:[%s7510_s1 + $0x540] ss:$16 sps:$4 sm:$0xff]  }
  0x73   :  { %3300 = vmatpush1.bf16.msra.mxu0 %v5075_v1  ;;  %3628 = vmatpush1.bf16.msra.mxu1 %v5078_v2  ;;  %v5162_v1 = vld [vmem:[%s7510_s1 + $0x548] ss:$16 sps:$4 sm:$0xff]   ;;  %v5167_v2 = vld [vmem:[%s7510_s1 + $0x564] ss:$16 sps:$4 sm:$0xff]  }
  0x74   :  { %3301 = vmatprep.subr.bf16.mxu0 %v5083_v3  ;;  %3629 = vmatprep.subr.bf16.mxu1 %v5086_v4  ;;  %v5170_v3 = vld [vmem:[%s7510_s1 + $0x56c] ss:$16 sps:$4 sm:$0xff]   ;;  %v5165_v4 = vld [vmem:[%s7510_s1 + $0x560] ss:$16 sps:$4 sm:$0xff]  }
  0x77   :  { %3302 = vmatpush1.bf16.msra.mxu0 %v5081_v5  ;;  %3630 = vmatpush1.bf16.msra.mxu1 %v5084_v6  ;;  %v5168_v5 = vld [vmem:[%s7510_s1 + $0x568] ss:$16 sps:$4 sm:$0xff]   ;;  %v5173_v6 = vld [vmem:[%s7510_s1 + $0x584] ss:$16 sps:$4 sm:$0xff]  }
  0x78   :  { %3303 = vmatprep.subr.bf16.mxu0 %v5089_v7  ;;  %3631 = vmatprep.subr.bf16.mxu1 %v5092_v8  ;;  %v5176_v7 = vld [vmem:[%s7510_s1 + $0x58c] ss:$16 sps:$4 sm:$0xff]   ;;  %v5171_v8 = vld [vmem:[%s7510_s1 + $0x580] ss:$16 sps:$4 sm:$0xff]  }
  0x7b   :  { %3304 = vmatpush1.bf16.msra.mxu0 %v5087_v10  ;;  %3632 = vmatpush1.bf16.msra.mxu1 %v5090_v11  ;;  %v5179_v10 = vld [vmem:[%s7510_s1 + $0x5a4] ss:$16 sps:$4 sm:$0xff]   ;;  %v5182_v11 = vld [vmem:[%s7510_s1 + $0x5ac] ss:$16 sps:$4 sm:$0xff]  }
  0x7c   :  { %3305 = vmatprep.subr.bf16.mxu0 %v5095_v12  ;;  %3633 = vmatprep.subr.bf16.mxu1 %v5098_v52  ;;  %v5177_v12 = vld [vmem:[%s7510_s1 + $0x5a0] ss:$16 sps:$4 sm:$0xff]   ;;  %v5180_v52 = vld [vmem:[%s7510_s1 + $0x5a8] ss:$16 sps:$4 sm:$0xff]  }
  0x7f   :  { %3306 = vmatpush1.bf16.msra.mxu0 %v5093_v15  ;;  %3634 = vmatpush1.bf16.msra.mxu1 %v5096_v16  ;;  %v5185_v15 = vld [vmem:[%s7510_s1 + $0x5c4] ss:$16 sps:$4 sm:$0xff]   ;;  %v5188_v16 = vld [vmem:[%s7510_s1 + $0x5cc] ss:$16 sps:$4 sm:$0xff]  }
  0x80   :  { %3316 = vmatprep.subr.bf16.mxu0 %v5101_v17  ;;  %3644 = vmatprep.subr.bf16.mxu1 %v5104_v18  ;;  %v5183_v17 = vld [vmem:[%s7510_s1 + $0x5c0] ss:$16 sps:$4 sm:$0xff]   ;;  %v5186_v18 = vld [vmem:[%s7510_s1 + $0x5c8] ss:$16 sps:$4 sm:$0xff]  }
  0x82   :  { %3308 = vmatmul.mubr.bf16.vlgmr.msra.gmra.mrb[0].mxu0 %v605_v21  ;;  %3636 = vmatmul.mubr.bf16.vlgmr.msra.gmra.mrb[0].mxu1 %v605_v21  ;;  %v5189_v21 = vld [vmem:[%s7510_s1 + $0x5e0] ss:$16 sps:$4 sm:$0xff]  }
  0x83   :  { %3317 = vmatpush1.bf16.msra.mxu0 %v5099_v20  ;;  %3645 = vmatpush1.bf16.msra.mxu1 %v5102_v22  ;;  %v5194_v20 = vld [vmem:[%s7510_s1 + $0x5ec] ss:$16 sps:$4 sm:$0xff]   ;;  %v5192_v22 = vld [vmem:[%s7510_s1 + $0x5e8] ss:$16 sps:$4 sm:$0xff]  }
  0x84   :  { %3318 = vmatprep.subr.bf16.mxu0 %v5107_v23  ;;  %3646 = vmatprep.subr.bf16.mxu1 %v5110_v24  ;;  %v5198_v23 = vld [vmem:[%s7510_s1 + $0x604] ss:$16 sps:$4 sm:$0xff]   ;;  %v5201_v24 = vld [vmem:[%s7510_s1 + $0x60c] ss:$16 sps:$4 sm:$0xff]  }
  0x85   :  { %3348 = vmatprep.mubr.bf16.mxu0 %v6195_v25  ;;  %3676 = vmatprep.mubr.bf16.mxu1 %v6195_v25 }
  0x87   :  { %3319 = vmatpush1.bf16.msra.mxu0 %v5105_v13  ;;  %3647 = vmatpush1.bf16.msra.mxu1 %v5108_v26  ;;  %v5196_v13 = vld [vmem:[%s7510_s1 + $0x600] ss:$16 sps:$4 sm:$0xff]   ;;  %v6384_v26 = vrot.slane %v6164_v14, %v5900_v49  ;;  %v608_v14 = vcombine.high %v6195_v25, %v6195_v25  ;;  %v5210_v25 = vld [vmem:[%s7510_s1 + $0x644] ss:$16 sps:$4 sm:$0xff]  }
  0x88   :  { %3320 = vmatprep.subr.bf16.mxu0 %v5113_v27  ;;  %3648 = vmatprep.subr.bf16.mxu1 %v5116_v28  ;;  %v5199_v27 = vld [vmem:[%s7510_s1 + $0x608] ss:$16 sps:$4 sm:$0xff]   ;;  %v5204_v28 = vld [vmem:[%s7510_s1 + $0x624] ss:$16 sps:$4 sm:$0xff]  }
  0x8b   :  { %3321 = vmatpush1.bf16.msra.mxu0 %v5111_v29  ;;  %3649 = vmatpush1.bf16.msra.mxu1 %v5114_v30  ;;  %v5207_v29 = vld [vmem:[%s7510_s1 + $0x62c] ss:$16 sps:$4 sm:$0xff]   ;;  %v5202_v30 = vld [vmem:[%s7510_s1 + $0x620] ss:$16 sps:$4 sm:$0xff]  }
  0x8c   :  { %3322 = vmatprep.subr.bf16.mxu0 %v5119_v31  ;;  %3650 = vmatprep.subr.bf16.mxu1 %v5122_v32  ;;  %v5205_v31 = vld [vmem:[%s7510_s1 + $0x628] ss:$16 sps:$4 sm:$0xff]   ;;  %v5213_v32 = vld [vmem:[%s7510_s1 + $0x64c] ss:$16 sps:$4 sm:$0xff]  }
  0x8f   :  { %3323 = vmatpush1.bf16.msra.mxu0 %v5117_v33  ;;  %3651 = vmatpush1.bf16.msra.mxu1 %v5120_v34  ;;  %v5208_v33 = vld [vmem:[%s7510_s1 + $0x640] ss:$16 sps:$4 sm:$0xff]   ;;  %v5211_v34 = vld [vmem:[%s7510_s1 + $0x648] ss:$16 sps:$4 sm:$0xff]  }
  0x90   :  { %3324 = vmatprep.subr.bf16.mxu0 %v5125_v35  ;;  %3652 = vmatprep.subr.bf16.mxu1 %v5128_v36  ;;  %v5216_v35 = vld [vmem:[%s7510_s1 + $0x664] ss:$16 sps:$4 sm:$0xff]   ;;  %v5219_v36 = vld [vmem:[%s7510_s1 + $0x66c] ss:$16 sps:$4 sm:$0xff]  }
  0x93   :  { %3325 = vmatpush1.bf16.msra.mxu0 %v5123_v37  ;;  %3653 = vmatpush1.bf16.msra.mxu1 %v5126_v38  ;;  %v5214_v37 = vld [vmem:[%s7510_s1 + $0x660] ss:$16 sps:$4 sm:$0xff]   ;;  %v5217_v38 = vld [vmem:[%s7510_s1 + $0x668] ss:$16 sps:$4 sm:$0xff]  }
  0x94   :  { %3326 = vmatprep.subr.bf16.mxu0 %v5131_v39  ;;  %3654 = vmatprep.subr.bf16.mxu1 %v5134_v40  ;;  %v5222_v39 = vld [vmem:[%s7510_s1 + $0x684] ss:$16 sps:$4 sm:$0xff]   ;;  %v5225_v40 = vld [vmem:[%s7510_s1 + $0x68c] ss:$16 sps:$4 sm:$0xff]  }
  0x97   :  { %3327 = vmatpush1.bf16.msra.mxu0 %v5129_v41  ;;  %3655 = vmatpush1.bf16.msra.mxu1 %v5132_v43  ;;  %v5220_v41 = vld [vmem:[%s7510_s1 + $0x680] ss:$16 sps:$4 sm:$0xff]   ;;  %v5223_v43 = vld [vmem:[%s7510_s1 + $0x688] ss:$16 sps:$4 sm:$0xff]  }
  0x98   :  { %3328 = vmatprep.subr.bf16.mxu0 %v5137_v44  ;;  %3656 = vmatprep.subr.bf16.mxu1 %v5140_v45  ;;  %v5228_v44 = vld [vmem:[%s7510_s1 + $0x6a4] ss:$16 sps:$4 sm:$0xff]   ;;  %v5231_v45 = vld [vmem:[%s7510_s1 + $0x6ac] ss:$16 sps:$4 sm:$0xff]  }
  0x9b   :  { %3329 = vmatpush1.bf16.msra.mxu0 %v5135_v46  ;;  %3657 = vmatpush1.bf16.msra.mxu1 %v5138_v47  ;;  %v5226_v46 = vld [vmem:[%s7510_s1 + $0x6a0] ss:$16 sps:$4 sm:$0xff]   ;;  %v5229_v47 = vld [vmem:[%s7510_s1 + $0x6a8] ss:$16 sps:$4 sm:$0xff]  }
  0x9c   :  { %3330 = vmatprep.subr.bf16.mxu0 %v5143_v48  ;;  %3658 = vmatprep.subr.bf16.mxu1 %v5146_v50  ;;  %v5234_v48 = vld [vmem:[%s7510_s1 + $0x6c4] ss:$16 sps:$4 sm:$0xff]   ;;  %v5237_v50 = vld [vmem:[%s7510_s1 + $0x6cc] ss:$16 sps:$4 sm:$0xff]  }
  0x9f   :  { %3331 = vmatpush1.bf16.msra.mxu0 %v5141_v51  ;;  %3659 = vmatpush1.bf16.msra.mxu1 %v5144_v53  ;;  %v5232_v51 = vld [vmem:[%s7510_s1 + $0x6c0] ss:$16 sps:$4 sm:$0xff]   ;;  %v5235_v53 = vld [vmem:[%s7510_s1 + $0x6c8] ss:$16 sps:$4 sm:$0xff]  }
  0xa0   :  { %3332 = vmatprep.subr.bf16.mxu0 %v5149_v54  ;;  %3660 = vmatprep.subr.bf16.mxu1 %v5152_v55  ;;  %v5240_v54 = vld [vmem:[%s7510_s1 + $0x6e4] ss:$16 sps:$4 sm:$0xff]   ;;  %v5243_v55 = vld [vmem:[%s7510_s1 + $0x6ec] ss:$16 sps:$4 sm:$0xff]  }
  0xa3   :  { %3333 = vmatpush1.bf16.msra.mxu0 %v5147_v56  ;;  %3661 = vmatpush1.bf16.msra.mxu1 %v5150_v57  ;;  %v5238_v56 = vld [vmem:[%s7510_s1 + $0x6e0] ss:$16 sps:$4 sm:$0xff]   ;;  %v5241_v57 = vld [vmem:[%s7510_s1 + $0x6e8] ss:$16 sps:$4 sm:$0xff]  }
  0xa4   :  { %3334 = vmatprep.subr.bf16.mxu0 %v5155_v58  ;;  %3662 = vmatprep.subr.bf16.mxu1 %v5158_v59  ;;  %v5246_v58 = vld [vmem:[%s7510_s1 + $0x704] ss:$16 sps:$4 sm:$0xff]   ;;  %v5249_v59 = vld [vmem:[%s7510_s1 + $0x70c] ss:$16 sps:$4 sm:$0xff]  }
  0xa7   :  { %3335 = vmatpush1.bf16.msra.mxu0 %v5153_v60  ;;  %3663 = vmatpush1.bf16.msra.mxu1 %v5156_v61  ;;  %v5244_v60 = vld [vmem:[%s7510_s1 + $0x700] ss:$16 sps:$4 sm:$0xff]   ;;  %v5247_v61 = vld [vmem:[%s7510_s1 + $0x708] ss:$16 sps:$4 sm:$0xff]  }
  0xa8   :  { %3336 = vmatprep.subr.bf16.mxu0 %v5161_v62  ;;  %3664 = vmatprep.subr.bf16.mxu1 %v5164_v63  ;;  %v5252_v62 = vld [vmem:[%s7510_s1 + $0x724] ss:$16 sps:$4 sm:$0xff]   ;;  %v5255_v63 = vld [vmem:[%s7510_s1 + $0x72c] ss:$16 sps:$4 sm:$0xff]  }
  0xab   :  { %3337 = vmatpush1.bf16.msra.mxu0 %v5159_v0  ;;  %3665 = vmatpush1.bf16.msra.mxu1 %v5162_v1  ;;  %v5250_v0 = vld [vmem:[%s7510_s1 + $0x720] ss:$16 sps:$4 sm:$0xff]   ;;  %v5253_v1 = vld [vmem:[%s7510_s1 + $0x728] ss:$16 sps:$4 sm:$0xff]  }
  0xac   :  { %3338 = vmatprep.subr.bf16.mxu0 %v5167_v2  ;;  %3666 = vmatprep.subr.bf16.mxu1 %v5170_v3  ;;  %v5258_v2 = vld [vmem:[%s7510_s1 + $0x744] ss:$16 sps:$4 sm:$0xff]   ;;  %v5261_v3 = vld [vmem:[%s7510_s1 + $0x74c] ss:$16 sps:$4 sm:$0xff]  }
  0xaf   :  { %3339 = vmatpush1.bf16.msra.mxu0 %v5165_v4  ;;  %3667 = vmatpush1.bf16.msra.mxu1 %v5168_v5  ;;  %v5256_v4 = vld [vmem:[%s7510_s1 + $0x740] ss:$16 sps:$4 sm:$0xff]   ;;  %v5259_v5 = vld [vmem:[%s7510_s1 + $0x748] ss:$16 sps:$4 sm:$0xff]  }
  0xb0   :  { %3340 = vmatprep.subr.bf16.mxu0 %v5173_v6  ;;  %3668 = vmatprep.subr.bf16.mxu1 %v5176_v7  ;;  %v5264_v6 = vld [vmem:[%s7510_s1 + $0x764] ss:$16 sps:$4 sm:$0xff]   ;;  %v5267_v7 = vld [vmem:[%s7510_s1 + $0x76c] ss:$16 sps:$4 sm:$0xff]  }
  0xb3   :  { %3341 = vmatpush1.bf16.msra.mxu0 %v5171_v8  ;;  %3669 = vmatpush1.bf16.msra.mxu1 %v5174_v9  ;;  %v5262_v8 = vld [vmem:[%s7510_s1 + $0x760] ss:$16 sps:$4 sm:$0xff]   ;;  %v5265_v9 = vld [vmem:[%s7510_s1 + $0x768] ss:$16 sps:$4 sm:$0xff]  }
  0xb4   :  { %3342 = vmatprep.subr.bf16.mxu0 %v5179_v10  ;;  %3670 = vmatprep.subr.bf16.mxu1 %v5182_v11  ;;  %v5270_v10 = vld [vmem:[%s7510_s1 + $0x784] ss:$16 sps:$4 sm:$0xff]   ;;  %v5273_v11 = vld [vmem:[%s7510_s1 + $0x78c] ss:$16 sps:$4 sm:$0xff]  }
  0xb7   :  { %3343 = vmatpush1.bf16.msra.mxu0 %v5177_v12  ;;  %3671 = vmatpush1.bf16.msra.mxu1 %v5180_v52  ;;  %v5268_v12 = vld [vmem:[%s7510_s1 + $0x780] ss:$16 sps:$4 sm:$0xff]   ;;  %v5271_v52 = vld [vmem:[%s7510_s1 + $0x788] ss:$16 sps:$4 sm:$0xff]  }
  0xb8   :  { %3344 = vmatprep.subr.bf16.mxu0 %v5185_v15  ;;  %3672 = vmatprep.subr.bf16.mxu1 %v5188_v16  ;;  %v5276_v15 = vld [vmem:[%s7510_s1 + $0x7a4] ss:$16 sps:$4 sm:$0xff]   ;;  %v5279_v16 = vld [vmem:[%s7510_s1 + $0x7ac] ss:$16 sps:$4 sm:$0xff]  }
  0xbb   :  { %3345 = vmatpush1.bf16.msra.mxu0 %v5183_v17  ;;  %3673 = vmatpush1.bf16.msra.mxu1 %v5186_v18  ;;  %v5274_v17 = vld [vmem:[%s7510_s1 + $0x7a0] ss:$16 sps:$4 sm:$0xff]   ;;  %v5277_v18 = vld [vmem:[%s7510_s1 + $0x7a8] ss:$16 sps:$4 sm:$0xff]  }
  0xbc   :  { %3346 = vmatprep.subr.bf16.mxu0 %v5191_v19  ;;  %3674 = vmatprep.subr.bf16.mxu1 %v5194_v20  ;;  %v5282_v19 = vld [vmem:[%s7510_s1 + $0x7c4] ss:$16 sps:$4 sm:$0xff]   ;;  %v5285_v20 = vld [vmem:[%s7510_s1 + $0x7cc] ss:$16 sps:$4 sm:$0xff]  }
  0xbf   :  { %3347 = vmatpush1.bf16.msra.mxu0 %v5189_v21  ;;  %3675 = vmatpush1.bf16.msra.mxu1 %v5192_v22  ;;  %v6558_v21 = vld [vmem:[%s7509_s0 + $0x8] sm:$0xff]  ;;  %v5280_v22 = vld [vmem:[%s7510_s1 + $0x7c0] ss:$16 sps:$4 sm:$0xff]  }
  0xc0   :  { %3357 = vmatprep.subr.bf16.mxu0 %v5198_v23  ;;  %3685 = vmatprep.subr.bf16.mxu1 %v5201_v24  ;;  %v5283_v23 = vld [vmem:[%s7510_s1 + $0x7c8] ss:$16 sps:$4 sm:$0xff]   ;;  %v5288_v24 = vld [vmem:[%s7510_s1 + $0x7e4] ss:$16 sps:$4 sm:$0xff]  }
  0xc2   :  { %3349 = vmatmul.mubr.bf16.vlgmr.msra.gmra.mrb[0].mxu0 %v6384_v26  ;;  %3677 = vmatmul.mubr.bf16.vlgmr.msra.gmra.mrb[0].mxu1 %v6384_v26 }
  0xc3   :  { %3358 = vmatpush1.bf16.msra.mxu0 %v5196_v13  ;;  %3686 = vmatpush1.bf16.msra.mxu1 %v5199_v27  ;;  %v5291_v13 = vld [vmem:[%s7510_s1 + $0x7ec] ss:$16 sps:$4 sm:$0xff]   ;;  %v6574_v27 = vrot.slane %v6558_v21, %v5900_v49 }
  0xc4   :  { %3359 = vmatprep.subr.bf16.mxu0 %v5204_v28  ;;  %3687 = vmatprep.subr.bf16.mxu1 %v5207_v29  ;;  %v5286_v28 = vld [vmem:[%s7510_s1 + $0x7e0] ss:$16 sps:$4 sm:$0xff]   ;;  %v5289_v29 = vld [vmem:[%s7510_s1 + $0x7e8] ss:$16 sps:$4 sm:$0xff]  }
  0xc5   :  { %3389 = vmatprep.mubr.bf16.mxu0 %v608_v14  ;;  %3717 = vmatprep.mubr.bf16.mxu1 %v608_v14  ;;  %v5294_v14 = vld [vmem:[%s7510_s1 + $0x804] ss:$16 sps:$4 sm:$0xff]  }
  0xc7   :  { %3360 = vmatpush1.bf16.msra.mxu0 %v5202_v30  ;;  %3688 = vmatpush1.bf16.msra.mxu1 %v5205_v31  ;;  %v5297_v30 = vld [vmem:[%s7510_s1 + $0x80c] ss:$16 sps:$4 sm:$0xff]   ;;  %v624_v31 = vcombine.high %v6574_v27, %v6574_v27 }
  0xc8   :  { %3361 = vmatprep.subr.bf16.mxu0 %v5210_v25  ;;  %3689 = vmatprep.subr.bf16.mxu1 %v5213_v32  ;;  %v606_v25 = vcombine.high %v6384_v26, %v6384_v26  ;;  %v5292_v32 = vld [vmem:[%s7510_s1 + $0x800] ss:$16 sps:$4 sm:$0xff]   ;;  %v5303_v26 = vld [vmem:[%s7510_s1 + $0x82c] ss:$16 sps:$4 sm:$0xff]  }
  0xcb   :  { %3362 = vmatpush1.bf16.msra.mxu0 %v5208_v33  ;;  %3690 = vmatpush1.bf16.msra.mxu1 %v5211_v34  ;;  %v5295_v33 = vld [vmem:[%s7510_s1 + $0x808] ss:$16 sps:$4 sm:$0xff]   ;;  %v5300_v34 = vld [vmem:[%s7510_s1 + $0x824] ss:$16 sps:$4 sm:$0xff]  }
  0xcc   :  { %3363 = vmatprep.subr.bf16.mxu0 %v5216_v35  ;;  %3691 = vmatprep.subr.bf16.mxu1 %v5219_v36  ;;  %v6605_v35 = vrot.slane %v624_v31, %v5900_v49  ;;  %v5298_v36 = vld [vmem:[%s7510_s1 + $0x820] ss:$16 sps:$4 sm:$0xff]   ;;  %v5379_v31 = vld [vmem:[%s7510_s1 + $0x9c8] ss:$16 sps:$4 sm:$0xff]  }
  0xcf   :  { %3364 = vmatpush1.bf16.msra.mxu0 %v5214_v37  ;;  %3692 = vmatpush1.bf16.msra.mxu1 %v5217_v38  ;;  %v5301_v37 = vld [vmem:[%s7510_s1 + $0x828] ss:$16 sps:$4 sm:$0xff]   ;;  %v5306_v38 = vld [vmem:[%s7510_s1 + $0x844] ss:$16 sps:$4 sm:$0xff]  }
  0xd0   :  { %3365 = vmatprep.subr.bf16.mxu0 %v5222_v39  ;;  %3693 = vmatprep.subr.bf16.mxu1 %v5225_v40  ;;  %v5309_v39 = vld [vmem:[%s7510_s1 + $0x84c] ss:$16 sps:$4 sm:$0xff]   ;;  %v5304_v40 = vld [vmem:[%s7510_s1 + $0x840] ss:$16 sps:$4 sm:$0xff]  }
  0xd3   :  { %3366 = vmatpush1.bf16.msra.mxu0 %v5220_v41  ;;  %3694 = vmatpush1.bf16.msra.mxu1 %v5223_v43  ;;  %v5307_v41 = vld [vmem:[%s7510_s1 + $0x848] ss:$16 sps:$4 sm:$0xff]   ;;  %v5312_v43 = vld [vmem:[%s7510_s1 + $0x864] ss:$16 sps:$4 sm:$0xff]  }
  0xd4   :  { %3367 = vmatprep.subr.bf16.mxu0 %v5228_v44  ;;  %3695 = vmatprep.subr.bf16.mxu1 %v5231_v45  ;;  %v5315_v44 = vld [vmem:[%s7510_s1 + $0x86c] ss:$16 sps:$4 sm:$0xff]   ;;  %v5310_v45 = vld [vmem:[%s7510_s1 + $0x860] ss:$16 sps:$4 sm:$0xff]  }
  0xd7   :  { %3368 = vmatpush1.bf16.msra.mxu0 %v5226_v46  ;;  %3696 = vmatpush1.bf16.msra.mxu1 %v5229_v47  ;;  %v5313_v46 = vld [vmem:[%s7510_s1 + $0x868] ss:$16 sps:$4 sm:$0xff]   ;;  %v5318_v47 = vld [vmem:[%s7510_s1 + $0x884] ss:$16 sps:$4 sm:$0xff]  }
  0xd8   :  { %3369 = vmatprep.subr.bf16.mxu0 %v5234_v48  ;;  %3697 = vmatprep.subr.bf16.mxu1 %v5237_v50  ;;  %v5321_v48 = vld [vmem:[%s7510_s1 + $0x88c] ss:$16 sps:$4 sm:$0xff]   ;;  %v5316_v50 = vld [vmem:[%s7510_s1 + $0x880] ss:$16 sps:$4 sm:$0xff]  }
  0xdb   :  { %3370 = vmatpush1.bf16.msra.mxu0 %v5232_v51  ;;  %3698 = vmatpush1.bf16.msra.mxu1 %v5235_v53  ;;  %v5319_v51 = vld [vmem:[%s7510_s1 + $0x888] ss:$16 sps:$4 sm:$0xff]   ;;  %v5324_v53 = vld [vmem:[%s7510_s1 + $0x8a4] ss:$16 sps:$4 sm:$0xff]  }
  0xdc   :  { %3371 = vmatprep.subr.bf16.mxu0 %v5240_v54  ;;  %3699 = vmatprep.subr.bf16.mxu1 %v5243_v55  ;;  %v5327_v54 = vld [vmem:[%s7510_s1 + $0x8ac] ss:$16 sps:$4 sm:$0xff]   ;;  %v5322_v55 = vld [vmem:[%s7510_s1 + $0x8a0] ss:$16 sps:$4 sm:$0xff]  }
  0xdf   :  { %3372 = vmatpush1.bf16.msra.mxu0 %v5238_v56  ;;  %3700 = vmatpush1.bf16.msra.mxu1 %v5241_v57  ;;  %v5325_v56 = vld [vmem:[%s7510_s1 + $0x8a8] ss:$16 sps:$4 sm:$0xff]   ;;  %v5330_v57 = vld [vmem:[%s7510_s1 + $0x8c4] ss:$16 sps:$4 sm:$0xff]  }
  0xe0   :  { %3373 = vmatprep.subr.bf16.mxu0 %v5246_v58  ;;  %3701 = vmatprep.subr.bf16.mxu1 %v5249_v59  ;;  %v5333_v58 = vld [vmem:[%s7510_s1 + $0x8cc] ss:$16 sps:$4 sm:$0xff]   ;;  %v5328_v59 = vld [vmem:[%s7510_s1 + $0x8c0] ss:$16 sps:$4 sm:$0xff]  }
  0xe3   :  { %3374 = vmatpush1.bf16.msra.mxu0 %v5244_v60  ;;  %3702 = vmatpush1.bf16.msra.mxu1 %v5247_v61  ;;  %v5331_v60 = vld [vmem:[%s7510_s1 + $0x8c8] ss:$16 sps:$4 sm:$0xff]   ;;  %v5336_v61 = vld [vmem:[%s7510_s1 + $0x8e4] ss:$16 sps:$4 sm:$0xff]  }
  0xe4   :  { %3375 = vmatprep.subr.bf16.mxu0 %v5252_v62  ;;  %3703 = vmatprep.subr.bf16.mxu1 %v5255_v63  ;;  %v5339_v62 = vld [vmem:[%s7510_s1 + $0x8ec] ss:$16 sps:$4 sm:$0xff]   ;;  %v5334_v63 = vld [vmem:[%s7510_s1 + $0x8e0] ss:$16 sps:$4 sm:$0xff]  }
  0xe7   :  { %3376 = vmatpush1.bf16.msra.mxu0 %v5250_v0  ;;  %3704 = vmatpush1.bf16.msra.mxu1 %v5253_v1  ;;  %v5337_v0 = vld [vmem:[%s7510_s1 + $0x8e8] ss:$16 sps:$4 sm:$0xff]   ;;  %v5342_v1 = vld [vmem:[%s7510_s1 + $0x904] ss:$16 sps:$4 sm:$0xff]  }
  0xe8   :  { %3377 = vmatprep.subr.bf16.mxu0 %v5258_v2  ;;  %3705 = vmatprep.subr.bf16.mxu1 %v5261_v3  ;;  %v5345_v2 = vld [vmem:[%s7510_s1 + $0x90c] ss:$16 sps:$4 sm:$0xff]   ;;  %v5340_v3 = vld [vmem:[%s7510_s1 + $0x900] ss:$16 sps:$4 sm:$0xff]  }
  0xeb   :  { %3378 = vmatpush1.bf16.msra.mxu0 %v5256_v4  ;;  %3706 = vmatpush1.bf16.msra.mxu1 %v5259_v5  ;;  %v5343_v4 = vld [vmem:[%s7510_s1 + $0x908] ss:$16 sps:$4 sm:$0xff]   ;;  %v5348_v5 = vld [vmem:[%s7510_s1 + $0x924] ss:$16 sps:$4 sm:$0xff]  }
  0xec   :  { %3379 = vmatprep.subr.bf16.mxu0 %v5264_v6  ;;  %3707 = vmatprep.subr.bf16.mxu1 %v5267_v7  ;;  %v5351_v6 = vld [vmem:[%s7510_s1 + $0x92c] ss:$16 sps:$4 sm:$0xff]   ;;  %v5346_v7 = vld [vmem:[%s7510_s1 + $0x920] ss:$16 sps:$4 sm:$0xff]  }
  0xef   :  { %3380 = vmatpush1.bf16.msra.mxu0 %v5262_v8  ;;  %3708 = vmatpush1.bf16.msra.mxu1 %v5265_v9  ;;  %v5349_v8 = vld [vmem:[%s7510_s1 + $0x928] ss:$16 sps:$4 sm:$0xff]   ;;  %v5354_v9 = vld [vmem:[%s7510_s1 + $0x944] ss:$16 sps:$4 sm:$0xff]  }
  0xf0   :  { %3381 = vmatprep.subr.bf16.mxu0 %v5270_v10  ;;  %3709 = vmatprep.subr.bf16.mxu1 %v5273_v11  ;;  %v5357_v10 = vld [vmem:[%s7510_s1 + $0x94c] ss:$16 sps:$4 sm:$0xff]   ;;  %v5352_v11 = vld [vmem:[%s7510_s1 + $0x940] ss:$16 sps:$4 sm:$0xff]  }
  0xf3   :  { %3382 = vmatpush1.bf16.msra.mxu0 %v5268_v12  ;;  %3710 = vmatpush1.bf16.msra.mxu1 %v5271_v52  ;;  %v5355_v12 = vld [vmem:[%s7510_s1 + $0x948] ss:$16 sps:$4 sm:$0xff]   ;;  %v5360_v52 = vld [vmem:[%s7510_s1 + $0x964] ss:$16 sps:$4 sm:$0xff]  }
  0xf4   :  { %3383 = vmatprep.subr.bf16.mxu0 %v5276_v15  ;;  %3711 = vmatprep.subr.bf16.mxu1 %v5279_v16  ;;  %v5363_v15 = vld [vmem:[%s7510_s1 + $0x96c] ss:$16 sps:$4 sm:$0xff]   ;;  %v5358_v16 = vld [vmem:[%s7510_s1 + $0x960] ss:$16 sps:$4 sm:$0xff]  }
  0xf7   :  { %3384 = vmatpush1.bf16.msra.mxu0 %v5274_v17  ;;  %3712 = vmatpush1.bf16.msra.mxu1 %v5277_v18  ;;  %v5361_v17 = vld [vmem:[%s7510_s1 + $0x968] ss:$16 sps:$4 sm:$0xff]   ;;  %v5366_v18 = vld [vmem:[%s7510_s1 + $0x984] ss:$16 sps:$4 sm:$0xff]  }
  0xf8   :  { %3385 = vmatprep.subr.bf16.mxu0 %v5282_v19  ;;  %3713 = vmatprep.subr.bf16.mxu1 %v5285_v20  ;;  %v5369_v19 = vld [vmem:[%s7510_s1 + $0x98c] ss:$16 sps:$4 sm:$0xff]   ;;  %v5364_v20 = vld [vmem:[%s7510_s1 + $0x980] ss:$16 sps:$4 sm:$0xff]  }
  0xfb   :  { %3386 = vmatpush1.bf16.msra.mxu0 %v5280_v22  ;;  %3714 = vmatpush1.bf16.msra.mxu1 %v5283_v23  ;;  %v5367_v22 = vld [vmem:[%s7510_s1 + $0x988] ss:$16 sps:$4 sm:$0xff]   ;;  %v5372_v23 = vld [vmem:[%s7510_s1 + $0x9a4] ss:$16 sps:$4 sm:$0xff]  }
  0xfc   :  { %3387 = vmatprep.subr.bf16.mxu0 %v5288_v24  ;;  %3715 = vmatprep.subr.bf16.mxu1 %v5291_v13  ;;  %v5375_v24 = vld [vmem:[%s7510_s1 + $0x9ac] ss:$16 sps:$4 sm:$0xff]   ;;  %v5370_v13 = vld [vmem:[%s7510_s1 + $0x9a0] ss:$16 sps:$4 sm:$0xff]  }
  0xff   :  { %3388 = vmatpush1.bf16.msra.mxu0 %v5286_v28  ;;  %3716 = vmatpush1.bf16.msra.mxu1 %v5289_v29  ;;  %v5373_v28 = vld [vmem:[%s7510_s1 + $0x9a8] ss:$16 sps:$4 sm:$0xff]   ;;  %v5378_v29 = vld [vmem:[%s7510_s1 + $0x9c4] ss:$16 sps:$4 sm:$0xff]  }
 0x100   :  { %3398 = vmatprep.subr.bf16.mxu0 %v5294_v14  ;;  %3726 = vmatprep.subr.bf16.mxu1 %v5297_v30  ;;  %v5381_v14 = vld [vmem:[%s7510_s1 + $0x9cc] ss:$16 sps:$4 sm:$0xff]   ;;  %v5376_v30 = vld [vmem:[%s7510_s1 + $0x9c0] ss:$16 sps:$4 sm:$0xff]  }
 0x102   :  { %3390 = vmatmul.mubr.bf16.vlgmr.msra.gmra.mrb[0].mxu0 %v606_v25  ;;  %3718 = vmatmul.mubr.bf16.vlgmr.msra.gmra.mrb[0].mxu1 %v606_v25  ;;  %v5384_v25 = vld [vmem:[%s7510_s1 + $0x9e4] ss:$16 sps:$4 sm:$0xff]  }
 0x103   :  { %3399 = vmatpush1.bf16.msra.mxu0 %v5292_v32  ;;  %3727 = vmatpush1.bf16.msra.mxu1 %v5295_v33  ;;  %v5387_v32 = vld [vmem:[%s7510_s1 + $0x9ec] ss:$16 sps:$4 sm:$0xff]   ;;  %v5382_v33 = vld [vmem:[%s7510_s1 + $0x9e0] ss:$16 sps:$4 sm:$0xff]  }
 0x104   :  { %3400 = vmatprep.subr.bf16.mxu0 %v5300_v34  ;;  %3728 = vmatprep.subr.bf16.mxu1 %v5303_v26  ;;  %v5385_v34 = vld [vmem:[%s7510_s1 + $0x9e8] ss:$16 sps:$4 sm:$0xff]   ;;  %v5390_v26 = vld [vmem:[%s7510_s1 + $0xa04] ss:$16 sps:$4 sm:$0xff]  }
 0x105   :  { %3430 = vmatprep.mubr.bf16.mxu0 %v6605_v35  ;;  %3758 = vmatprep.mubr.bf16.mxu1 %v6605_v35 }
 0x107   :  { %3401 = vmatpush1.bf16.msra.mxu0 %v5298_v36  ;;  %3729 = vmatpush1.bf16.msra.mxu1 %v5301_v37  ;;  %v5393_v36 = vld [vmem:[%s7510_s1 + $0xa0c] ss:$16 sps:$4 sm:$0xff]   ;;  %v6791_v37 = vrot.slane %v6574_v27, %v5900_v49 }
 0x108   :  { %3402 = vmatprep.subr.bf16.mxu0 %v5306_v38  ;;  %3730 = vmatprep.subr.bf16.mxu1 %v5309_v39  ;;  %v5388_v38 = vld [vmem:[%s7510_s1 + $0xa00] ss:$16 sps:$4 sm:$0xff]   ;;  %v5391_v39 = vld [vmem:[%s7510_s1 + $0xa08] ss:$16 sps:$4 sm:$0xff]   ;;  %v5399_v27 = vld [vmem:[%s7510_s1 + $0xa2c] ss:$16 sps:$4 sm:$0xff]  }
 0x10b   :  { %3403 = vmatpush1.bf16.msra.mxu0 %v5304_v40  ;;  %3731 = vmatpush1.bf16.msra.mxu1 %v5307_v41  ;;  %v5396_v40 = vld [vmem:[%s7510_s1 + $0xa24] ss:$16 sps:$4 sm:$0xff]   ;;  %v656_v41 = vcombine.high %v6605_v35, %v6605_v35 }
 0x10c   :  { %3404 = vmatprep.subr.bf16.mxu0 %v5312_v43  ;;  %3732 = vmatprep.subr.bf16.mxu1 %v5315_v44  ;;  %v5394_v43 = vld [vmem:[%s7510_s1 + $0xa20] ss:$16 sps:$4 sm:$0xff]   ;;  %v5397_v44 = vld [vmem:[%s7510_s1 + $0xa28] ss:$16 sps:$4 sm:$0xff]   ;;  %v5402_v35 = vld [vmem:[%s7510_s1 + $0xa44] ss:$16 sps:$4 sm:$0xff]  }
 0x10f   :  { %3405 = vmatpush1.bf16.msra.mxu0 %v5310_v45  ;;  %3733 = vmatpush1.bf16.msra.mxu1 %v5313_v46  ;;  %v5405_v45 = vld [vmem:[%s7510_s1 + $0xa4c] ss:$16 sps:$4 sm:$0xff]   ;;  %v5400_v46 = vld [vmem:[%s7510_s1 + $0xa40] ss:$16 sps:$4 sm:$0xff]  }
 0x110   :  { %3406 = vmatprep.subr.bf16.mxu0 %v5318_v47  ;;  %3734 = vmatprep.subr.bf16.mxu1 %v5321_v48  ;;  %v5403_v47 = vld [vmem:[%s7510_s1 + $0xa48] ss:$16 sps:$4 sm:$0xff]   ;;  %v5408_v48 = vld [vmem:[%s7510_s1 + $0xa64] ss:$16 sps:$4 sm:$0xff]  }
 0x113   :  { %3407 = vmatpush1.bf16.msra.mxu0 %v5316_v50  ;;  %3735 = vmatpush1.bf16.msra.mxu1 %v5319_v51  ;;  %v5411_v50 = vld [vmem:[%s7510_s1 + $0xa6c] ss:$16 sps:$4 sm:$0xff]   ;;  %v5406_v51 = vld [vmem:[%s7510_s1 + $0xa60] ss:$16 sps:$4 sm:$0xff]  }
 0x114   :  { %3408 = vmatprep.subr.bf16.mxu0 %v5324_v53  ;;  %3736 = vmatprep.subr.bf16.mxu1 %v5327_v54  ;;  %v5409_v53 = vld [vmem:[%s7510_s1 + $0xa68] ss:$16 sps:$4 sm:$0xff]   ;;  %v5414_v54 = vld [vmem:[%s7510_s1 + $0xa84] ss:$16 sps:$4 sm:$0xff]  }
 0x117   :  { %3409 = vmatpush1.bf16.msra.mxu0 %v5322_v55  ;;  %3737 = vmatpush1.bf16.msra.mxu1 %v5325_v56  ;;  %v5417_v55 = vld [vmem:[%s7510_s1 + $0xa8c] ss:$16 sps:$4 sm:$0xff]   ;;  %v5412_v56 = vld [vmem:[%s7510_s1 + $0xa80] ss:$16 sps:$4 sm:$0xff]  }
 0x118   :  { %3410 = vmatprep.subr.bf16.mxu0 %v5330_v57  ;;  %3738 = vmatprep.subr.bf16.mxu1 %v5333_v58  ;;  %v5415_v57 = vld [vmem:[%s7510_s1 + $0xa88] ss:$16 sps:$4 sm:$0xff]   ;;  %v5420_v58 = vld [vmem:[%s7510_s1 + $0xaa4] ss:$16 sps:$4 sm:$0xff]  }
 0x11b   :  { %3411 = vmatpush1.bf16.msra.mxu0 %v5328_v59  ;;  %3739 = vmatpush1.bf16.msra.mxu1 %v5331_v60  ;;  %v5423_v59 = vld [vmem:[%s7510_s1 + $0xaac] ss:$16 sps:$4 sm:$0xff]   ;;  %v5418_v60 = vld [vmem:[%s7510_s1 + $0xaa0] ss:$16 sps:$4 sm:$0xff]  }
 0x11c   :  { %3412 = vmatprep.subr.bf16.mxu0 %v5336_v61  ;;  %3740 = vmatprep.subr.bf16.mxu1 %v5339_v62  ;;  %v5421_v61 = vld [vmem:[%s7510_s1 + $0xaa8] ss:$16 sps:$4 sm:$0xff]   ;;  %v5426_v62 = vld [vmem:[%s7510_s1 + $0xac4] ss:$16 sps:$4 sm:$0xff]  }
 0x11f   :  { %3413 = vmatpush1.bf16.msra.mxu0 %v5334_v63  ;;  %3741 = vmatpush1.bf16.msra.mxu1 %v5337_v0  ;;  %v5429_v63 = vld [vmem:[%s7510_s1 + $0xacc] ss:$16 sps:$4 sm:$0xff]   ;;  %v5424_v0 = vld [vmem:[%s7510_s1 + $0xac0] ss:$16 sps:$4 sm:$0xff]  }
 0x120   :  { %3414 = vmatprep.subr.bf16.mxu0 %v5342_v1  ;;  %3742 = vmatprep.subr.bf16.mxu1 %v5345_v2  ;;  %v5427_v1 = vld [vmem:[%s7510_s1 + $0xac8] ss:$16 sps:$4 sm:$0xff]   ;;  %v5432_v2 = vld [vmem:[%s7510_s1 + $0xae4] ss:$16 sps:$4 sm:$0xff]  }
 0x123   :  { %3415 = vmatpush1.bf16.msra.mxu0 %v5340_v3  ;;  %3743 = vmatpush1.bf16.msra.mxu1 %v5343_v4  ;;  %v5435_v3 = vld [vmem:[%s7510_s1 + $0xaec] ss:$16 sps:$4 sm:$0xff]   ;;  %v5430_v4 = vld [vmem:[%s7510_s1 + $0xae0] ss:$16 sps:$4 sm:$0xff]  }
 0x124   :  { %3416 = vmatprep.subr.bf16.mxu0 %v5348_v5  ;;  %3744 = vmatprep.subr.bf16.mxu1 %v5351_v6  ;;  %v5433_v5 = vld [vmem:[%s7510_s1 + $0xae8] ss:$16 sps:$4 sm:$0xff]   ;;  %v5438_v6 = vld [vmem:[%s7510_s1 + $0xb04] ss:$16 sps:$4 sm:$0xff]  }
 0x127   :  { %3417 = vmatpush1.bf16.msra.mxu0 %v5346_v7  ;;  %3745 = vmatpush1.bf16.msra.mxu1 %v5349_v8  ;;  %v5441_v7 = vld [vmem:[%s7510_s1 + $0xb0c] ss:$16 sps:$4 sm:$0xff]   ;;  %v5436_v8 = vld [vmem:[%s7510_s1 + $0xb00] ss:$16 sps:$4 sm:$0xff]  }
 0x128   :  { %3418 = vmatprep.subr.bf16.mxu0 %v5354_v9  ;;  %3746 = vmatprep.subr.bf16.mxu1 %v5357_v10  ;;  %v5439_v9 = vld [vmem:[%s7510_s1 + $0xb08] ss:$16 sps:$4 sm:$0xff]   ;;  %v5444_v10 = vld [vmem:[%s7510_s1 + $0xb24] ss:$16 sps:$4 sm:$0xff]  }
 0x12b   :  { %3419 = vmatpush1.bf16.msra.mxu0 %v5352_v11  ;;  %3747 = vmatpush1.bf16.msra.mxu1 %v5355_v12  ;;  %v5447_v11 = vld [vmem:[%s7510_s1 + $0xb2c] ss:$16 sps:$4 sm:$0xff]  }
 0x12c   :  { %3420 = vmatprep.subr.bf16.mxu0 %v5360_v52  ;;  %3748 = vmatprep.subr.bf16.mxu1 %v5363_v15 }
 0x12f   :  { %3421 = vmatpush1.bf16.msra.mxu0 %v5358_v16  ;;  %3749 = vmatpush1.bf16.msra.mxu1 %v5361_v17 }
 0x130   :  { %3422 = vmatprep.subr.bf16.mxu0 %v5366_v18  ;;  %3750 = vmatprep.subr.bf16.mxu1 %v5369_v19 }
 0x133   :  { %3423 = vmatpush1.bf16.msra.mxu0 %v5364_v20  ;;  %3751 = vmatpush1.bf16.msra.mxu1 %v5367_v22 }
 0x134   :  { %3424 = vmatprep.subr.bf16.mxu0 %v5372_v23  ;;  %3752 = vmatprep.subr.bf16.mxu1 %v5375_v24 }
 0x137   :  { %3425 = vmatpush1.bf16.msra.mxu0 %v5370_v13  ;;  %3753 = vmatpush1.bf16.msra.mxu1 %v5373_v28 }
 0x138   :  { %3426 = vmatprep.subr.bf16.mxu0 %v5378_v29  ;;  %3754 = vmatprep.subr.bf16.mxu1 %v5381_v14 }
 0x13b   :  { %3427 = vmatpush1.bf16.msra.mxu0 %v5376_v30  ;;  %3755 = vmatpush1.bf16.msra.mxu1 %v5379_v31 }
 0x13c   :  { %3428 = vmatprep.subr.bf16.mxu0 %v5384_v25  ;;  %3756 = vmatprep.subr.bf16.mxu1 %v5387_v32 }
 0x13f   :  { %3429 = vmatpush1.bf16.msra.mxu0 %v5382_v33  ;;  %3757 = vmatpush1.bf16.msra.mxu1 %v5385_v34 }
 0x140   :  { %3439 = vmatprep.subr.bf16.mxu0 %v5390_v26  ;;  %3767 = vmatprep.subr.bf16.mxu1 %v5393_v36 }
 0x142   :  { %3431 = vmatmul.mubr.bf16.vlgmr.msra.gmra.mrb[0].mxu0 %v6791_v37  ;;  %3759 = vmatmul.mubr.bf16.vlgmr.msra.gmra.mrb[0].mxu1 %v6791_v37 }
 0x143   :  { %3440 = vmatpush1.bf16.msra.mxu0 %v5388_v38  ;;  %3768 = vmatpush1.bf16.msra.mxu1 %v5391_v39 }
 0x144   :  { %3441 = vmatprep.subr.bf16.mxu0 %v5396_v40  ;;  %3769 = vmatprep.subr.bf16.mxu1 %v5399_v27 }
 0x145   :  { %3471 = vmatprep.mubr.bf16.mxu0 %v656_v41  ;;  %3799 = vmatprep.mubr.bf16.mxu1 %v656_v41 }
 0x147   :  { %3442 = vmatpush1.bf16.msra.mxu0 %v5394_v43  ;;  %3770 = vmatpush1.bf16.msra.mxu1 %v5397_v44 }
 0x148   :  { %3443 = vmatprep.subr.bf16.mxu0 %v5402_v35  ;;  %3771 = vmatprep.subr.bf16.mxu1 %v5405_v45 }
 0x14b   :  { %3444 = vmatpush1.bf16.msra.mxu0 %v5400_v46  ;;  %3772 = vmatpush1.bf16.msra.mxu1 %v5403_v47 }
 0x14c   :  { %3445 = vmatprep.subr.bf16.mxu0 %v5408_v48  ;;  %3773 = vmatprep.subr.bf16.mxu1 %v5411_v50 }
 0x14f   :  { %3446 = vmatpush1.bf16.msra.mxu0 %v5406_v51  ;;  %3774 = vmatpush1.bf16.msra.mxu1 %v5409_v53 }
 0x150   :  { %3447 = vmatprep.subr.bf16.mxu0 %v5414_v54  ;;  %3775 = vmatprep.subr.bf16.mxu1 %v5417_v55 }
 0x153   :  { %3448 = vmatpush1.bf16.msra.mxu0 %v5412_v56  ;;  %3776 = vmatpush1.bf16.msra.mxu1 %v5415_v57 }
 0x154   :  { %3449 = vmatprep.subr.bf16.mxu0 %v5420_v58  ;;  %3777 = vmatprep.subr.bf16.mxu1 %v5423_v59 }
 0x157   :  { %3450 = vmatpush1.bf16.msra.mxu0 %v5418_v60  ;;  %3778 = vmatpush1.bf16.msra.mxu1 %v5421_v61 }
 0x158   :  { %3451 = vmatprep.subr.bf16.mxu0 %v5426_v62  ;;  %3779 = vmatprep.subr.bf16.mxu1 %v5429_v63 }
 0x15b   :  { %3452 = vmatpush1.bf16.msra.mxu0 %v5424_v0  ;;  %3780 = vmatpush1.bf16.msra.mxu1 %v5427_v1 }
 0x15c   :  { %3453 = vmatprep.subr.bf16.mxu0 %v5432_v2  ;;  %3781 = vmatprep.subr.bf16.mxu1 %v5435_v3 }
 0x15f   :  { %3454 = vmatpush1.bf16.msra.mxu0 %v5430_v4  ;;  %3782 = vmatpush1.bf16.msra.mxu1 %v5433_v5 }
 0x160   :  { %3455 = vmatprep.subr.bf16.mxu0 %v5438_v6  ;;  %3783 = vmatprep.subr.bf16.mxu1 %v5441_v7 }
 0x161   :  { %10 = vsyncpa [#allocation3], 0  ;;  %v5442_v12 = vld [vmem:[%s7510_s1 + $0xb20] ss:$16 sps:$4 sm:$0xff]   ;;  %v5445_v52 = vld [vmem:[%s7510_s1 + $0xb28] ss:$16 sps:$4 sm:$0xff]   ;;  %v609_v34 = vcombine.high %v6558_v21, %v6558_v21  ;;  %v654_v35 = vcombine.high %v6791_v37, %v6791_v37 }
 0x162   :  { %v5450_v15 = vld [vmem:[%s7510_s1 + $0xb44] ss:$16 sps:$4 sm:$0xff]   ;;  %v5453_v16 = vld [vmem:[%s7510_s1 + $0xb4c] ss:$16 sps:$4 sm:$0xff]   ;;  %v5448_v17 = vld [vmem:[%s7510_s1 + $0xb40] ss:$16 sps:$4 sm:$0xff]  }
 0x163   :  { %3456 = vmatpush1.bf16.msra.mxu0 %v5436_v8  ;;  %3784 = vmatpush1.bf16.msra.mxu1 %v5439_v9  ;;  %v5451_v18 = vld [vmem:[%s7510_s1 + $0xb48] ss:$16 sps:$4 sm:$0xff]   ;;  %v5456_v19 = vld [vmem:[%s7510_s1 + $0xb64] ss:$16 sps:$4 sm:$0xff]   ;;  %v5459_v20 = vld [vmem:[%s7510_s1 + $0xb6c] ss:$16 sps:$4 sm:$0xff]   ;;  %v6980_v39 = vrot.slane %v609_v34, %v5900_v49 }
 0x164   :  { %3457 = vmatprep.subr.bf16.mxu0 %v5444_v10  ;;  %3785 = vmatprep.subr.bf16.mxu1 %v5447_v11  ;;  %v5454_v22 = vld [vmem:[%s7510_s1 + $0xb60] ss:$16 sps:$4 sm:$0xff]   ;;  %v5457_v23 = vld [vmem:[%s7510_s1 + $0xb68] ss:$16 sps:$4 sm:$0xff]   ;;  %v5462_v24 = vld [vmem:[%s7510_s1 + $0xb84] ss:$16 sps:$4 sm:$0xff]  }
 0x165   :  { %v5465_v13 = vld [vmem:[%s7510_s1 + $0xb8c] ss:$16 sps:$4 sm:$0xff]   ;;  %v5460_v28 = vld [vmem:[%s7510_s1 + $0xb80] ss:$16 sps:$4 sm:$0xff]   ;;  %v5463_v29 = vld [vmem:[%s7510_s1 + $0xb88] ss:$16 sps:$4 sm:$0xff]   ;;  %v625_v44 = vcombine.high %v6980_v39, %v6980_v39 }
 0x166   :  { %v5468_v14 = vld [vmem:[%s7510_s1 + $0xba4] ss:$16 sps:$4 sm:$0xff]   ;;  %v5471_v30 = vld [vmem:[%s7510_s1 + $0xbac] ss:$16 sps:$4 sm:$0xff]   ;;  %v5466_v31 = vld [vmem:[%s7510_s1 + $0xba0] ss:$16 sps:$4 sm:$0xff]  }
 0x167   :  { %3458 = vmatpush1.bf16.msra.mxu0 %v5442_v12  ;;  %3786 = vmatpush1.bf16.msra.mxu1 %v5445_v52  ;;  %v5469_v25 = vld [vmem:[%s7510_s1 + $0xba8] ss:$16 sps:$4 sm:$0xff]   ;;  %v5474_v32 = vld [vmem:[%s7510_s1 + $0xbc4] ss:$16 sps:$4 sm:$0xff]   ;;  %v5477_v33 = vld [vmem:[%s7510_s1 + $0xbcc] ss:$16 sps:$4 sm:$0xff]   ;;  %v7011_v48 = vrot.slane %v625_v44, %v5900_v49 }
 0x168   :  { %3459 = vmatprep.subr.bf16.mxu0 %v5450_v15  ;;  %3787 = vmatprep.subr.bf16.mxu1 %v5453_v16  ;;  %v5472_v26 = vld [vmem:[%s7510_s1 + $0xbc0] ss:$16 sps:$4 sm:$0xff]   ;;  %v5475_v36 = vld [vmem:[%s7510_s1 + $0xbc8] ss:$16 sps:$4 sm:$0xff]   ;;  %v5480_v38 = vld [vmem:[%s7510_s1 + $0xbe4] ss:$16 sps:$4 sm:$0xff]  }
 0x169   :  { %v5483_v21 = vld [vmem:[%s7510_s1 + $0xbec] ss:$16 sps:$4 sm:$0xff]   ;;  %v5478_v40 = vld [vmem:[%s7510_s1 + $0xbe0] ss:$16 sps:$4 sm:$0xff]   ;;  %v5481_v27 = vld [vmem:[%s7510_s1 + $0xbe8] ss:$16 sps:$4 sm:$0xff]  }
 0x16a   :  { %v5486_v41 = vld [vmem:[%s7510_s1 + $0xc04] ss:$16 sps:$4 sm:$0xff]   ;;  %v5489_v43 = vld [vmem:[%s7510_s1 + $0xc0c] ss:$16 sps:$4 sm:$0xff]   ;;  %v5484_v45 = vld [vmem:[%s7510_s1 + $0xc00] ss:$16 sps:$4 sm:$0xff]  }
 0x16b   :  { %3460 = vmatpush1.bf16.msra.mxu0 %v5448_v17  ;;  %3788 = vmatpush1.bf16.msra.mxu1 %v5451_v18  ;;  %v5487_v46 = vld [vmem:[%s7510_s1 + $0xc08] ss:$16 sps:$4 sm:$0xff]   ;;  %v5492_v47 = vld [vmem:[%s7510_s1 + $0xc24] ss:$16 sps:$4 sm:$0xff]   ;;  %v5495_v37 = vld [vmem:[%s7510_s1 + $0xc2c] ss:$16 sps:$4 sm:$0xff]  }
 0x16c   :  { %3461 = vmatprep.subr.bf16.mxu0 %v5456_v19  ;;  %3789 = vmatprep.subr.bf16.mxu1 %v5459_v20  ;;  %v5490_v50 = vld [vmem:[%s7510_s1 + $0xc20] ss:$16 sps:$4 sm:$0xff]   ;;  %v5493_v51 = vld [vmem:[%s7510_s1 + $0xc28] ss:$16 sps:$4 sm:$0xff]   ;;  %v5498_v53 = vld [vmem:[%s7510_s1 + $0xc44] ss:$16 sps:$4 sm:$0xff]  }
 0x16d   :  { %v5501_v54 = vld [vmem:[%s7510_s1 + $0xc4c] ss:$16 sps:$4 sm:$0xff]   ;;  %v5496_v55 = vld [vmem:[%s7510_s1 + $0xc40] ss:$16 sps:$4 sm:$0xff]   ;;  %v5499_v56 = vld [vmem:[%s7510_s1 + $0xc48] ss:$16 sps:$4 sm:$0xff]  }
 0x16e   :  { %v5504_v57 = vld [vmem:[%s7510_s1 + $0xc64] ss:$16 sps:$4 sm:$0xff]   ;;  %v5507_v58 = vld [vmem:[%s7510_s1 + $0xc6c] ss:$16 sps:$4 sm:$0xff]   ;;  %v5502_v59 = vld [vmem:[%s7510_s1 + $0xc60] ss:$16 sps:$4 sm:$0xff]  }
 0x16f   :  { %3462 = vmatpush1.bf16.msra.mxu0 %v5454_v22  ;;  %3790 = vmatpush1.bf16.msra.mxu1 %v5457_v23  ;;  %v5505_v60 = vld [vmem:[%s7510_s1 + $0xc68] ss:$16 sps:$4 sm:$0xff]   ;;  %v5510_v61 = vld [vmem:[%s7510_s1 + $0xc84] ss:$16 sps:$4 sm:$0xff]   ;;  %v5513_v62 = vld [vmem:[%s7510_s1 + $0xc8c] ss:$16 sps:$4 sm:$0xff]  }
 0x170   :  { %3463 = vmatprep.subr.bf16.mxu0 %v5462_v24  ;;  %3791 = vmatprep.subr.bf16.mxu1 %v5465_v13  ;;  %v5508_v63 = vld [vmem:[%s7510_s1 + $0xc80] ss:$16 sps:$4 sm:$0xff]   ;;  %v5511_v0 = vld [vmem:[%s7510_s1 + $0xc88] ss:$16 sps:$4 sm:$0xff]   ;;  %v5516_v1 = vld [vmem:[%s7510_s1 + $0xca4] ss:$16 sps:$4 sm:$0xff]  }
 0x171   :  { %v5519_v2 = vld [vmem:[%s7510_s1 + $0xcac] ss:$16 sps:$4 sm:$0xff]   ;;  %v5514_v3 = vld [vmem:[%s7510_s1 + $0xca0] ss:$16 sps:$4 sm:$0xff]   ;;  %v5517_v4 = vld [vmem:[%s7510_s1 + $0xca8] ss:$16 sps:$4 sm:$0xff]  }
 0x172   :  { %v5522_v5 = vld [vmem:[%s7510_s1 + $0xcc4] ss:$16 sps:$4 sm:$0xff]   ;;  %v5525_v6 = vld [vmem:[%s7510_s1 + $0xccc] ss:$16 sps:$4 sm:$0xff]   ;;  %v5520_v7 = vld [vmem:[%s7510_s1 + $0xcc0] ss:$16 sps:$4 sm:$0xff]  }
 0x173   :  { %3464 = vmatpush1.bf16.msra.mxu0 %v5460_v28  ;;  %3792 = vmatpush1.bf16.msra.mxu1 %v5463_v29  ;;  %v5523_v8 = vld [vmem:[%s7510_s1 + $0xcc8] ss:$16 sps:$4 sm:$0xff]   ;;  %v5528_v9 = vld [vmem:[%s7510_s1 + $0xce4] ss:$16 sps:$4 sm:$0xff]   ;;  %v5531_v10 = vld [vmem:[%s7510_s1 + $0xcec] ss:$16 sps:$4 sm:$0xff]  }
 0x174   :  { %3465 = vmatprep.subr.bf16.mxu0 %v5468_v14  ;;  %3793 = vmatprep.subr.bf16.mxu1 %v5471_v30  ;;  %v5526_v11 = vld [vmem:[%s7510_s1 + $0xce0] ss:$16 sps:$4 sm:$0xff]   ;;  %v5529_v12 = vld [vmem:[%s7510_s1 + $0xce8] ss:$16 sps:$4 sm:$0xff]   ;;  %v5534_v52 = vld [vmem:[%s7510_s1 + $0xd04] ss:$16 sps:$4 sm:$0xff]  }
 0x175   :  { %v5537_v15 = vld [vmem:[%s7510_s1 + $0xd0c] ss:$16 sps:$4 sm:$0xff]   ;;  %v5532_v16 = vld [vmem:[%s7510_s1 + $0xd00] ss:$16 sps:$4 sm:$0xff]   ;;  %v5535_v17 = vld [vmem:[%s7510_s1 + $0xd08] ss:$16 sps:$4 sm:$0xff]  }
 0x176   :  { %v5540_v18 = vld [vmem:[%s7510_s1 + $0xd24] ss:$16 sps:$4 sm:$0xff]   ;;  %v5543_v19 = vld [vmem:[%s7510_s1 + $0xd2c] ss:$16 sps:$4 sm:$0xff]   ;;  %v5538_v20 = vld [vmem:[%s7510_s1 + $0xd20] ss:$16 sps:$4 sm:$0xff]  }
 0x177   :  { %3466 = vmatpush1.bf16.msra.mxu0 %v5466_v31  ;;  %3794 = vmatpush1.bf16.msra.mxu1 %v5469_v25  ;;  %v5541_v22 = vld [vmem:[%s7510_s1 + $0xd28] ss:$16 sps:$4 sm:$0xff]   ;;  %v5546_v23 = vld [vmem:[%s7510_s1 + $0xd44] ss:$16 sps:$4 sm:$0xff]   ;;  %v5549_v24 = vld [vmem:[%s7510_s1 + $0xd4c] ss:$16 sps:$4 sm:$0xff]  }
 0x178   :  { %3467 = vmatprep.subr.bf16.mxu0 %v5474_v32  ;;  %3795 = vmatprep.subr.bf16.mxu1 %v5477_v33  ;;  %v5544_v13 = vld [vmem:[%s7510_s1 + $0xd40] ss:$16 sps:$4 sm:$0xff]   ;;  %v5547_v28 = vld [vmem:[%s7510_s1 + $0xd48] ss:$16 sps:$4 sm:$0xff]   ;;  %v5552_v29 = vld [vmem:[%s7510_s1 + $0xd64] ss:$16 sps:$4 sm:$0xff]  }
 0x179   :  { %v5555_v14 = vld [vmem:[%s7510_s1 + $0xd6c] ss:$16 sps:$4 sm:$0xff]   ;;  %v5550_v30 = vld [vmem:[%s7510_s1 + $0xd60] ss:$16 sps:$4 sm:$0xff]   ;;  %v5553_v31 = vld [vmem:[%s7510_s1 + $0xd68] ss:$16 sps:$4 sm:$0xff]  }
 0x17a   :  { %v5558_v25 = vld [vmem:[%s7510_s1 + $0xd84] ss:$16 sps:$4 sm:$0xff]   ;;  %v5561_v32 = vld [vmem:[%s7510_s1 + $0xd8c] ss:$16 sps:$4 sm:$0xff]   ;;  %v5556_v33 = vld [vmem:[%s7510_s1 + $0xd80] ss:$16 sps:$4 sm:$0xff]  }
 0x17b   :  { %3468 = vmatpush1.bf16.msra.mxu0 %v5472_v26  ;;  %3796 = vmatpush1.bf16.msra.mxu1 %v5475_v36  ;;  %v5559_v34 = vld [vmem:[%s7510_s1 + $0xd88] ss:$16 sps:$4 sm:$0xff]   ;;  %v5564_v26 = vld [vmem:[%s7510_s1 + $0xda4] ss:$16 sps:$4 sm:$0xff]   ;;  %v5567_v36 = vld [vmem:[%s7510_s1 + $0xdac] ss:$16 sps:$4 sm:$0xff]  }
 0x17c   :  { %3469 = vmatprep.subr.bf16.mxu0 %v5480_v38  ;;  %3797 = vmatprep.subr.bf16.mxu1 %v5483_v21  ;;  %v5562_v38 = vld [vmem:[%s7510_s1 + $0xda0] ss:$16 sps:$4 sm:$0xff]   ;;  %v5565_v21 = vld [vmem:[%s7510_s1 + $0xda8] ss:$16 sps:$4 sm:$0xff]   ;;  %v5576_v44 = vld [vmem:[%s7510_s1 + $0xde4] ss:$16 sps:$4 sm:$0xff]  }
 0x17d   :  { %s5734_s11 = smov [#allocation2]  }
 0x17e   :  { %s4248_s12 = sshll.u32 %s5734_s11, 4  ;;  %s4249_s12 = int_to_ptr.vmem [resolvable:$true] %s4248_s12 }
 0x17f   :  { %3470 = vmatpush1.bf16.msra.mxu0 %v5478_v40  ;;  %3798 = vmatpush1.bf16.msra.mxu1 %v5481_v27  ;;  %v5570_v40 = vld [vmem:[%s7510_s1 + $0xdc4] ss:$16 sps:$4 sm:$0xff]   ;;  %v5573_v27 = vld [vmem:[%s7510_s1 + $0xdcc] ss:$16 sps:$4 sm:$0xff]   ;;  %s5709_s13 = scalar_lea.vmem %s4249_s12, 32  ;;  %p5714_p1 = scmp.lt.s32.totalorder %s4249_s12, %s4249_s12 }
 0x180   :  { %3480 = vmatprep.subr.bf16.mxu0 %v5486_v41  ;;  %3808 = vmatprep.subr.bf16.mxu1 %v5489_v43  ;;  %v5568_v41 = vld [vmem:[%s7510_s1 + $0xdc0] ss:$16 sps:$4 sm:$0xff]   ;;  %v5571_v43 = vld [vmem:[%s7510_s1 + $0xdc8] ss:$16 sps:$4 sm:$0xff]   ;;  %p5710_p0 = scmp.ne.s32.totalorder %s4249_s12, %s5709_s13  ;;  %p5715_p2 = scmp.lt.s32.totalorder %s5709_s13, %s5709_s13 }
 0x182   :  { %3472 = vmatmul.mubr.bf16.vlgmr.msra.gmra.mrb[0].mxu0 %v654_v35  ;;  %3800 = vmatmul.mubr.bf16.vlgmr.msra.gmra.mrb[0].mxu1 %v654_v35  ;;  %v5579_v35 = vld [vmem:[%s7510_s1 + $0xdec] ss:$16 sps:$4 sm:$0xff]   ;;  %p5716_p3 = por %p5715_p2, %p5714_p1 }
 0x183   :  { %3481 = vmatpush1.bf16.msra.mxu0 %v5484_v45  ;;  %3809 = vmatpush1.bf16.msra.mxu1 %v5487_v46  ;;  %v5574_v45 = vld [vmem:[%s7510_s1 + $0xde0] ss:$16 sps:$4 sm:$0xff]   ;;  %v5577_v46 = vld [vmem:[%s7510_s1 + $0xde8] ss:$16 sps:$4 sm:$0xff]  }
 0x184   :  { %3482 = vmatprep.subr.bf16.mxu0 %v5492_v47  ;;  %3810 = vmatprep.subr.bf16.mxu1 %v5495_v37  ;;  %v5583_v47 = vld [vmem:[%s7510_s1 + $0xe04] ss:$16 sps:$4 sm:$0xff]   ;;  %v5586_v37 = vld [vmem:[%s7510_s1 + $0xe0c] ss:$16 sps:$4 sm:$0xff]   ;;  %p5717_p4 = pnand %p5716_p3, %p5710_p0 }
 0x185   :  { %3512 = vmatprep.mubr.bf16.mxu0 %v7011_v48  ;;  %3840 = vmatprep.mubr.bf16.mxu1 %v7011_v48 }
 0x187   :  { %3483 = vmatpush1.bf16.msra.mxu0 %v5490_v50  ;;  %3811 = vmatpush1.bf16.msra.mxu1 %v5493_v51  ;;  %v7197_v50 = vrot.slane %v6980_v39, %v5900_v49  ;;  %v5581_v51 = vld [vmem:[%s7510_s1 + $0xe00] ss:$16 sps:$4 sm:$0xff]   ;;  %v5592_v49 = vld [vmem:[%s7510_s1 + $0xe2c] ss:$16 sps:$4 sm:$0xff]   ;;  %v657_v39 = vcombine.high %v7011_v48, %v7011_v48  ;;  %v5595_v48 = vld [vmem:[%s7510_s1 + $0xe44] ss:$16 sps:$4 sm:$0xff]  }
 0x188   :  { %3484 = vmatprep.subr.bf16.mxu0 %v5498_v53  ;;  %3812 = vmatprep.subr.bf16.mxu1 %v5501_v54  ;;  %v5584_v53 = vld [vmem:[%s7510_s1 + $0xe08] ss:$16 sps:$4 sm:$0xff]   ;;  %v5589_v54 = vld [vmem:[%s7510_s1 + $0xe24] ss:$16 sps:$4 sm:$0xff]  }
 0x18b   :  { %3485 = vmatpush1.bf16.msra.mxu0 %v5496_v55  ;;  %3813 = vmatpush1.bf16.msra.mxu1 %v5499_v56  ;;  %v5587_v55 = vld [vmem:[%s7510_s1 + $0xe20] ss:$16 sps:$4 sm:$0xff]   ;;  %v5590_v56 = vld [vmem:[%s7510_s1 + $0xe28] ss:$16 sps:$4 sm:$0xff]  }
 0x18c   :  { %3486 = vmatprep.subr.bf16.mxu0 %v5504_v57  ;;  %3814 = vmatprep.subr.bf16.mxu1 %v5507_v58  ;;  %v5598_v57 = vld [vmem:[%s7510_s1 + $0xe4c] ss:$16 sps:$4 sm:$0xff]   ;;  %v5593_v58 = vld [vmem:[%s7510_s1 + $0xe40] ss:$16 sps:$4 sm:$0xff]  }
 0x18f   :  { %3487 = vmatpush1.bf16.msra.mxu0 %v5502_v59  ;;  %3815 = vmatpush1.bf16.msra.mxu1 %v5505_v60  ;;  %v5596_v59 = vld [vmem:[%s7510_s1 + $0xe48] ss:$16 sps:$4 sm:$0xff]   ;;  %v5601_v60 = vld [vmem:[%s7510_s1 + $0xe64] ss:$16 sps:$4 sm:$0xff]  }
 0x190   :  { %3488 = vmatprep.subr.bf16.mxu0 %v5510_v61  ;;  %3816 = vmatprep.subr.bf16.mxu1 %v5513_v62  ;;  %v5604_v61 = vld [vmem:[%s7510_s1 + $0xe6c] ss:$16 sps:$4 sm:$0xff]   ;;  %v5599_v62 = vld [vmem:[%s7510_s1 + $0xe60] ss:$16 sps:$4 sm:$0xff]  }
 0x193   :  { %3489 = vmatpush1.bf16.msra.mxu0 %v5508_v63  ;;  %3817 = vmatpush1.bf16.msra.mxu1 %v5511_v0  ;;  %v5602_v63 = vld [vmem:[%s7510_s1 + $0xe68] ss:$16 sps:$4 sm:$0xff]   ;;  %v5607_v0 = vld [vmem:[%s7510_s1 + $0xe84] ss:$16 sps:$4 sm:$0xff]  }
 0x194   :  { %3490 = vmatprep.subr.bf16.mxu0 %v5516_v1  ;;  %3818 = vmatprep.subr.bf16.mxu1 %v5519_v2  ;;  %v5610_v1 = vld [vmem:[%s7510_s1 + $0xe8c] ss:$16 sps:$4 sm:$0xff]   ;;  %v5605_v2 = vld [vmem:[%s7510_s1 + $0xe80] ss:$16 sps:$4 sm:$0xff]  }
 0x197   :  { %3491 = vmatpush1.bf16.msra.mxu0 %v5514_v3  ;;  %3819 = vmatpush1.bf16.msra.mxu1 %v5517_v4  ;;  %v5608_v3 = vld [vmem:[%s7510_s1 + $0xe88] ss:$16 sps:$4 sm:$0xff]   ;;  %v5613_v4 = vld [vmem:[%s7510_s1 + $0xea4] ss:$16 sps:$4 sm:$0xff]  }
 0x198   :  { %3492 = vmatprep.subr.bf16.mxu0 %v5522_v5  ;;  %3820 = vmatprep.subr.bf16.mxu1 %v5525_v6  ;;  %v5616_v5 = vld [vmem:[%s7510_s1 + $0xeac] ss:$16 sps:$4 sm:$0xff]   ;;  %v5611_v6 = vld [vmem:[%s7510_s1 + $0xea0] ss:$16 sps:$4 sm:$0xff]  }
 0x19b   :  { %3493 = vmatpush1.bf16.msra.mxu0 %v5520_v7  ;;  %3821 = vmatpush1.bf16.msra.mxu1 %v5523_v8  ;;  %v5614_v7 = vld [vmem:[%s7510_s1 + $0xea8] ss:$16 sps:$4 sm:$0xff]   ;;  %v5619_v8 = vld [vmem:[%s7510_s1 + $0xec4] ss:$16 sps:$4 sm:$0xff]  }
 0x19c   :  { %3494 = vmatprep.subr.bf16.mxu0 %v5528_v9  ;;  %3822 = vmatprep.subr.bf16.mxu1 %v5531_v10  ;;  %v5622_v9 = vld [vmem:[%s7510_s1 + $0xecc] ss:$16 sps:$4 sm:$0xff]   ;;  %v5617_v10 = vld [vmem:[%s7510_s1 + $0xec0] ss:$16 sps:$4 sm:$0xff]  }
 0x19f   :  { %3495 = vmatpush1.bf16.msra.mxu0 %v5526_v11  ;;  %3823 = vmatpush1.bf16.msra.mxu1 %v5529_v12  ;;  %v5620_v11 = vld [vmem:[%s7510_s1 + $0xec8] ss:$16 sps:$4 sm:$0xff]   ;;  %v5625_v12 = vld [vmem:[%s7510_s1 + $0xee4] ss:$16 sps:$4 sm:$0xff]  }
 0x1a0   :  { %3496 = vmatprep.subr.bf16.mxu0 %v5534_v52  ;;  %3824 = vmatprep.subr.bf16.mxu1 %v5537_v15  ;;  %v5628_v52 = vld [vmem:[%s7510_s1 + $0xeec] ss:$16 sps:$4 sm:$0xff]   ;;  %v5623_v15 = vld [vmem:[%s7510_s1 + $0xee0] ss:$16 sps:$4 sm:$0xff]  }
 0x1a3   :  { %3497 = vmatpush1.bf16.msra.mxu0 %v5532_v16  ;;  %3825 = vmatpush1.bf16.msra.mxu1 %v5535_v17  ;;  %v5626_v16 = vld [vmem:[%s7510_s1 + $0xee8] ss:$16 sps:$4 sm:$0xff]   ;;  %v5631_v17 = vld [vmem:[%s7510_s1 + $0xf04] ss:$16 sps:$4 sm:$0xff]  }
 0x1a4   :  { %3498 = vmatprep.subr.bf16.mxu0 %v5540_v18  ;;  %3826 = vmatprep.subr.bf16.mxu1 %v5543_v19  ;;  %v5634_v18 = vld [vmem:[%s7510_s1 + $0xf0c] ss:$16 sps:$4 sm:$0xff]   ;;  %v5629_v19 = vld [vmem:[%s7510_s1 + $0xf00] ss:$16 sps:$4 sm:$0xff]  }
 0x1a7   :  { %3499 = vmatpush1.bf16.msra.mxu0 %v5538_v20  ;;  %3827 = vmatpush1.bf16.msra.mxu1 %v5541_v22  ;;  %v5632_v20 = vld [vmem:[%s7510_s1 + $0xf08] ss:$16 sps:$4 sm:$0xff]   ;;  %v5637_v22 = vld [vmem:[%s7510_s1 + $0xf24] ss:$16 sps:$4 sm:$0xff]  }
 0x1a8   :  { %3500 = vmatprep.subr.bf16.mxu0 %v5546_v23  ;;  %3828 = vmatprep.subr.bf16.mxu1 %v5549_v24  ;;  %v5640_v23 = vld [vmem:[%s7510_s1 + $0xf2c] ss:$16 sps:$4 sm:$0xff]   ;;  %v5635_v24 = vld [vmem:[%s7510_s1 + $0xf20] ss:$16 sps:$4 sm:$0xff]  }
 0x1ab   :  { %3501 = vmatpush1.bf16.msra.mxu0 %v5544_v13  ;;  %3829 = vmatpush1.bf16.msra.mxu1 %v5547_v28  ;;  %v5638_v13 = vld [vmem:[%s7510_s1 + $0xf28] ss:$16 sps:$4 sm:$0xff]   ;;  %v5643_v28 = vld [vmem:[%s7510_s1 + $0xf44] ss:$16 sps:$4 sm:$0xff]  }
 0x1ac   :  { %3502 = vmatprep.subr.bf16.mxu0 %v5552_v29  ;;  %3830 = vmatprep.subr.bf16.mxu1 %v5555_v14  ;;  %v5646_v29 = vld [vmem:[%s7510_s1 + $0xf4c] ss:$16 sps:$4 sm:$0xff]   ;;  %v5641_v14 = vld [vmem:[%s7510_s1 + $0xf40] ss:$16 sps:$4 sm:$0xff]  }
 0x1af   :  { %3503 = vmatpush1.bf16.msra.mxu0 %v5550_v30  ;;  %3831 = vmatpush1.bf16.msra.mxu1 %v5553_v31  ;;  %v5644_v30 = vld [vmem:[%s7510_s1 + $0xf48] ss:$16 sps:$4 sm:$0xff]   ;;  %v5649_v31 = vld [vmem:[%s7510_s1 + $0xf64] ss:$16 sps:$4 sm:$0xff]  }
 0x1b0   :  { %3504 = vmatprep.subr.bf16.mxu0 %v5558_v25  ;;  %3832 = vmatprep.subr.bf16.mxu1 %v5561_v32  ;;  %v5652_v25 = vld [vmem:[%s7510_s1 + $0xf6c] ss:$16 sps:$4 sm:$0xff]   ;;  %v5647_v32 = vld [vmem:[%s7510_s1 + $0xf60] ss:$16 sps:$4 sm:$0xff]  }
 0x1b3   :  { %3505 = vmatpush1.bf16.msra.mxu0 %v5556_v33  ;;  %3833 = vmatpush1.bf16.msra.mxu1 %v5559_v34  ;;  %v5650_v33 = vld [vmem:[%s7510_s1 + $0xf68] ss:$16 sps:$4 sm:$0xff]   ;;  %v5655_v34 = vld [vmem:[%s7510_s1 + $0xf84] ss:$16 sps:$4 sm:$0xff]  }
 0x1b4   :  { %3506 = vmatprep.subr.bf16.mxu0 %v5564_v26  ;;  %3834 = vmatprep.subr.bf16.mxu1 %v5567_v36  ;;  %v5658_v26 = vld [vmem:[%s7510_s1 + $0xf8c] ss:$16 sps:$4 sm:$0xff]   ;;  %v5653_v36 = vld [vmem:[%s7510_s1 + $0xf80] ss:$16 sps:$4 sm:$0xff]  }
 0x1b7   :  { %3507 = vmatpush1.bf16.msra.mxu0 %v5562_v38  ;;  %3835 = vmatpush1.bf16.msra.mxu1 %v5565_v21  ;;  %v5656_v38 = vld [vmem:[%s7510_s1 + $0xf88] ss:$16 sps:$4 sm:$0xff]   ;;  %v5661_v21 = vld [vmem:[%s7510_s1 + $0xfa4] ss:$16 sps:$4 sm:$0xff]  }
 0x1b8   :  { %3508 = vmatprep.subr.bf16.mxu0 %v5570_v40  ;;  %3836 = vmatprep.subr.bf16.mxu1 %v5573_v27  ;;  %v5664_v40 = vld [vmem:[%s7510_s1 + $0xfac] ss:$16 sps:$4 sm:$0xff]   ;;  %v5659_v27 = vld [vmem:[%s7510_s1 + $0xfa0] ss:$16 sps:$4 sm:$0xff]  }
 0x1bb   :  { %3509 = vmatpush1.bf16.msra.mxu0 %v5568_v41  ;;  %3837 = vmatpush1.bf16.msra.mxu1 %v5571_v43  ;;  %v5662_v41 = vld [vmem:[%s7510_s1 + $0xfa8] ss:$16 sps:$4 sm:$0xff]   ;;  %v5667_v43 = vld [vmem:[%s7510_s1 + $0xfc4] ss:$16 sps:$4 sm:$0xff]  }
 0x1bc   :  { %3510 = vmatprep.subr.bf16.mxu0 %v5576_v44  ;;  %3838 = vmatprep.subr.bf16.mxu1 %v5579_v35  ;;  %v5670_v44 = vld [vmem:[%s7510_s1 + $0xfcc] ss:$16 sps:$4 sm:$0xff]   ;;  %v5665_v35 = vld [vmem:[%s7510_s1 + $0xfc0] ss:$16 sps:$4 sm:$0xff]  }
 0x1bf   :  { %3511 = vmatpush1.bf16.msra.mxu0 %v5574_v45  ;;  %3839 = vmatpush1.bf16.msra.mxu1 %v5577_v46  ;;  %v5668_v45 = vld [vmem:[%s7510_s1 + $0xfc8] ss:$16 sps:$4 sm:$0xff]   ;;  %v5673_v46 = vld [vmem:[%s7510_s1 + $0xfe4] ss:$16 sps:$4 sm:$0xff]  }
 0x1c0   :  { %3521 = vmatprep.subr.bf16.mxu0 %v5583_v47  ;;  %3849 = vmatprep.subr.bf16.mxu1 %v5586_v37  ;;  %v5676_v47 = vld [vmem:[%s7510_s1 + $0xfec] ss:$16 sps:$4 sm:$0xff]   ;;  %v5671_v37 = vld [vmem:[%s7510_s1 + $0xfe0] ss:$16 sps:$4 sm:$0xff]  }
 0x1c2   :  { %3513 = vmatmul.mubr.bf16.vlgmr.msra.gmra.mrb[0].mxu0 %v7197_v50  ;;  %3841 = vmatmul.mubr.bf16.vlgmr.msra.gmra.mrb[0].mxu1 %v7197_v50 }
 0x1c3   :  { %3522 = vmatpush1.bf16.msra.mxu0 %v5581_v51  ;;  %3850 = vmatpush1.bf16.msra.mxu1 %v5584_v53  ;;  %v5674_v51 = vld [vmem:[%s7510_s1 + $0xfe8] ss:$16 sps:$4 sm:$0xff]   ;;  %v5677_v53 = vld [vmem:[%s7512_s3 + $0x40] sm:$0xff]  }
 0x1c4   :  { %3523 = vmatprep.subr.bf16.mxu0 %v5589_v54  ;;  %3851 = vmatprep.subr.bf16.mxu1 %v5592_v49  ;;  %v5678_v54 = vld [vmem:[%s7512_s3 + $0xc0] sm:$0xff]   ;;  %v655_v49 = vcombine.high %v7197_v50, %v7197_v50  ;;  %v5682_v50 = vld [vmem:[%s7512_s3 + $0xc8] sm:$0xff]  }
 0x1c5   :  { %3553 = vmatprep.mubr.bf16.mxu0 %v657_v39  ;;  %3881 = vmatprep.mubr.bf16.mxu1 %v657_v39  ;;  %v5679_v39 = vld [vmem:[%s7512_s3] sm:$0xff]  }
 0x1c7   :  { %3524 = vmatpush1.bf16.msra.mxu0 %v5587_v55  ;;  %3852 = vmatpush1.bf16.msra.mxu1 %v5590_v56  ;;  %v5680_v55 = vld [vmem:[%s7512_s3 + $0x80] sm:$0xff]   ;;  %v5681_v56 = vld [vmem:[%s7512_s3 + $0x48] sm:$0xff]  }
 0x1c8   :  { %3525 = vmatprep.subr.bf16.mxu0 %v5595_v48  ;;  %3853 = vmatprep.subr.bf16.mxu1 %v5598_v57  ;;  %v5683_v48 = vld [vmem:[%s7512_s3 + $0x8] sm:$0xff]  }
 0x1c9   :  { %v5684_v57 = vld [vmem:[%s7512_s3 + $0x88] sm:$0xff]  }
 0x1cb   :  { %3526 = vmatpush1.bf16.msra.mxu0 %v5593_v58  ;;  %3854 = vmatpush1.bf16.msra.mxu1 %v5596_v59  ;;  %v5685_v58 = vld [vmem:[%s7512_s3 + $0x50] sm:$0xff]  }
 0x1cc   :  { %3527 = vmatprep.subr.bf16.mxu0 %v5601_v60  ;;  %3855 = vmatprep.subr.bf16.mxu1 %v5604_v61  ;;  %v5686_v59 = vld [vmem:[%s7512_s3 + $0xd0] sm:$0xff]  }
 0x1cd   :  { %v5687_v60 = vld [vmem:[%s7512_s3 + $0x10] sm:$0xff]  }
 0x1ce   :  { %v5688_v61 = vld [vmem:[%s7512_s3 + $0x90] sm:$0xff]  }
 0x1cf   :  { %3528 = vmatpush1.bf16.msra.mxu0 %v5599_v62  ;;  %3856 = vmatpush1.bf16.msra.mxu1 %v5602_v63  ;;  %v5689_v62 = vld [vmem:[%s7512_s3 + $0x58] sm:$0xff]  }
 0x1d0   :  { %3529 = vmatprep.subr.bf16.mxu0 %v5607_v0  ;;  %3857 = vmatprep.subr.bf16.mxu1 %v5610_v1  ;;  %v5690_v63 = vld [vmem:[%s7512_s3 + $0xd8] sm:$0xff]  }
 0x1d1   :  { %v5691_v0 = vld [vmem:[%s7512_s3 + $0x18] sm:$0xff]  }
 0x1d2   :  { %v5692_v1 = vld [vmem:[%s7512_s3 + $0x98] sm:$0xff]  }
 0x1d3   :  { %3530 = vmatpush1.bf16.msra.mxu0 %v5605_v2  ;;  %3858 = vmatpush1.bf16.msra.mxu1 %v5608_v3  ;;  %v5693_v2 = vld [vmem:[%s7512_s3 + $0x60] sm:$0xff]  }
 0x1d4   :  { %3531 = vmatprep.subr.bf16.mxu0 %v5613_v4  ;;  %3859 = vmatprep.subr.bf16.mxu1 %v5616_v5  ;;  %v5694_v3 = vld [vmem:[%s7512_s3 + $0xe0] sm:$0xff]  }
 0x1d5   :  { %v5695_v4 = vld [vmem:[%s7512_s3 + $0x20] sm:$0xff]  }
 0x1d6   :  { %v5696_v5 = vld [vmem:[%s7512_s3 + $0xa0] sm:$0xff]  }
 0x1d7   :  { %3532 = vmatpush1.bf16.msra.mxu0 %v5611_v6  ;;  %3860 = vmatpush1.bf16.msra.mxu1 %v5614_v7  ;;  %v5697_v6 = vld [vmem:[%s7512_s3 + $0x68] sm:$0xff]  }
 0x1d8   :  { %3533 = vmatprep.subr.bf16.mxu0 %v5619_v8  ;;  %3861 = vmatprep.subr.bf16.mxu1 %v5622_v9  ;;  %v5698_v7 = vld [vmem:[%s7512_s3 + $0xe8] sm:$0xff]  }
 0x1d9   :  { %v5699_v8 = vld [vmem:[%s7512_s3 + $0x28] sm:$0xff]  }
 0x1da   :  { %v5700_v9 = vld [vmem:[%s7512_s3 + $0xa8] sm:$0xff]  }
 0x1db   :  { %3534 = vmatpush1.bf16.msra.mxu0 %v5617_v10  ;;  %3862 = vmatpush1.bf16.msra.mxu1 %v5620_v11  ;;  %v5701_v10 = vld [vmem:[%s7512_s3 + $0x70] sm:$0xff]  }
 0x1dc   :  { %3535 = vmatprep.subr.bf16.mxu0 %v5625_v12  ;;  %3863 = vmatprep.subr.bf16.mxu1 %v5628_v52  ;;  %v5702_v11 = vld [vmem:[%s7512_s3 + $0xf0] sm:$0xff]  }
 0x1dd   :  { %v5703_v12 = vld [vmem:[%s7512_s3 + $0x30] sm:$0xff]  }
 0x1de   :  { %v5704_v52 = vld [vmem:[%s7512_s3 + $0xb0] sm:$0xff]  }
 0x1df   :  { %3536 = vmatpush1.bf16.msra.mxu0 %v5623_v15  ;;  %3864 = vmatpush1.bf16.msra.mxu1 %v5626_v16  ;;  %v5705_v15 = vld [vmem:[%s7512_s3 + $0x78] sm:$0xff]  }
 0x1e0   :  { %3537 = vmatprep.subr.bf16.mxu0 %v5631_v17  ;;  %3865 = vmatprep.subr.bf16.mxu1 %v5634_v18  ;;  %v5706_v16 = vld [vmem:[%s7512_s3 + $0xf8] sm:$0xff]  }
 0x1e1   :  { %v5707_v17 = vld [vmem:[%s7512_s3 + $0x38] sm:$0xff]  }
 0x1e2   :  { %v5708_v18 = vld [vmem:[%s7512_s3 + $0xb8] sm:$0xff]  }
 0x1e3   :  { %3538 = vmatpush1.bf16.msra.mxu0 %v5629_v19  ;;  %3866 = vmatpush1.bf16.msra.mxu1 %v5632_v20  ;;  %v540_v19 = vsub.s32 0, %v5882_v42  ;;  %v548_v20 = vsub.s32 2, %v5882_v42 }
 0x1e4   :  { %3539 = vmatprep.subr.bf16.mxu0 %v5637_v22  ;;  %3867 = vmatprep.subr.bf16.mxu1 %v5640_v23  ;;  %v536_v22 = vld [vmem:[%s7511_s2] sm:$0xf]  ;;  %v544_v23 = vsub.s32 1, %v5882_v42 }
 0x1e7   :  { %3540 = vmatpush1.bf16.msra.mxu0 %v5635_v24  ;;  %3868 = vmatpush1.bf16.msra.mxu1 %v5638_v13  ;;  %v552_v24 = vsub.s32 3, %v5882_v42  ;;  %v541_v13 = vrot.slane %v536_v22, %v540_v19 }
 0x1e8   :  { %3541 = vmatprep.subr.bf16.mxu0 %v5643_v28  ;;  %3869 = vmatprep.subr.bf16.mxu1 %v5646_v29  ;;  %v549_v28 = vrot.slane %v536_v22, %v548_v20  ;;  %v545_v29 = vrot.slane %v536_v22, %v544_v23 }
 0x1eb   :  { %3542 = vmatpush1.bf16.msra.mxu0 %v5641_v14  ;;  %3870 = vmatpush1.bf16.msra.mxu1 %v5644_v30  ;;  %v553_v14 = vrot.slane %v536_v22, %v552_v24 }
 0x1ec   :  { %3543 = vmatprep.subr.bf16.mxu0 %v5649_v31  ;;  %3871 = vmatprep.subr.bf16.mxu1 %v5652_v25 }
 0x1ef   :  { %3544 = vmatpush1.bf16.msra.mxu0 %v5647_v32  ;;  %3872 = vmatpush1.bf16.msra.mxu1 %v5650_v33 }
 0x1f0   :  { %3545 = vmatprep.subr.bf16.mxu0 %v5655_v34  ;;  %3873 = vmatprep.subr.bf16.mxu1 %v5658_v26 }
 0x1f3   :  { %3546 = vmatpush1.bf16.msra.mxu0 %v5653_v36  ;;  %3874 = vmatpush1.bf16.msra.mxu1 %v5656_v38 }
 0x1f4   :  { %3547 = vmatprep.subr.bf16.mxu0 %v5661_v21  ;;  %3875 = vmatprep.subr.bf16.mxu1 %v5664_v40 }
 0x1f7   :  { %3548 = vmatpush1.bf16.msra.mxu0 %v5659_v27  ;;  %3876 = vmatpush1.bf16.msra.mxu1 %v5662_v41 }
 0x1f8   :  { %3549 = vmatprep.subr.bf16.mxu0 %v5667_v43  ;;  %3877 = vmatprep.subr.bf16.mxu1 %v5670_v44 }
 0x1fb   :  { %3550 = vmatpush1.bf16.msra.mxu0 %v5665_v35  ;;  %3878 = vmatpush1.bf16.msra.mxu1 %v5668_v45 }
 0x1fc   :  { %3551 = vmatprep.subr.bf16.mxu0 %v5673_v46  ;;  %3879 = vmatprep.subr.bf16.mxu1 %v5676_v47 }
 0x1ff   :  { %3552 = vmatpush1.bf16.msra.mxu0 %v5671_v37  ;;  %3880 = vmatpush1.bf16.msra.mxu1 %v5674_v51 }
 0x200   :  { %4801 = vmatprep.subr.bf16.mxu0 %v5677_v53  ;;  %4823 = vmatprep.subr.bf16.mxu1 %v5678_v54  ;;  %v4768_v53 = vld [vmem:[%s7513_s4] ss:$0 sm:$0xff] }
 0x202   :  { %3554 = vmatmul.mubr.bf16.vlgmr.msra.gmra.mrb[0].mxu0 %v655_v49  ;;  %3882 = vmatmul.mubr.bf16.vlgmr.msra.gmra.mrb[0].mxu1 %v655_v49 }
 0x203   :  { %4802 = vmatpush3.bf16.msra.mxu0 %v5679_v39  ;;  %4824 = vmatpush3.bf16.msra.mxu1 %v5680_v55 }
 0x204   :  { %4803 = vmatprep.subr.bf16.mxu0 %v5681_v56  ;;  %4825 = vmatprep.subr.bf16.mxu1 %v5682_v50 }
 0x207   :  { %4804 = vmatpush3.bf16.msra.mxu0 %v5683_v48  ;;  %4826 = vmatpush3.bf16.msra.mxu1 %v5684_v57 }
 0x208   :  { %4805 = vmatprep.subr.bf16.mxu0 %v5685_v58  ;;  %4827 = vmatprep.subr.bf16.mxu1 %v5686_v59 }
 0x20b   :  { %4806 = vmatpush3.bf16.msra.mxu0 %v5687_v60  ;;  %4828 = vmatpush3.bf16.msra.mxu1 %v5688_v61 }
 0x20c   :  { %4807 = vmatprep.subr.bf16.mxu0 %v5689_v62  ;;  %4829 = vmatprep.subr.bf16.mxu1 %v5690_v63 }
 0x20f   :  { %4808 = vmatpush3.bf16.msra.mxu0 %v5691_v0  ;;  %4830 = vmatpush3.bf16.msra.mxu1 %v5692_v1 }
 0x210   :  { %4809 = vmatprep.subr.bf16.mxu0 %v5693_v2  ;;  %4831 = vmatprep.subr.bf16.mxu1 %v5694_v3 }
 0x213   :  { %4810 = vmatpush3.bf16.msra.mxu0 %v5695_v4  ;;  %4832 = vmatpush3.bf16.msra.mxu1 %v5696_v5 }
 0x214   :  { %4811 = vmatprep.subr.bf16.mxu0 %v5697_v6  ;;  %4833 = vmatprep.subr.bf16.mxu1 %v5698_v7 }
 0x217   :  { %4812 = vmatpush3.bf16.msra.mxu0 %v5699_v8  ;;  %4834 = vmatpush3.bf16.msra.mxu1 %v5700_v9 }
 0x218   :  { %4813 = vmatprep.subr.bf16.mxu0 %v5701_v10  ;;  %4835 = vmatprep.subr.bf16.mxu1 %v5702_v11 }
 0x21b   :  { %4814 = vmatpush3.bf16.msra.mxu0 %v5703_v12  ;;  %4836 = vmatpush3.bf16.msra.mxu1 %v5704_v52 }
 0x21c   :  { %4815 = vmatprep.subr.bf16.mxu0 %v5705_v15  ;;  %4837 = vmatprep.subr.bf16.mxu1 %v5706_v16 }
 0x21f   :  { %4816 = vmatpush3.bf16.msra.mxu0 %v5707_v17  ;;  %4838 = vmatpush3.bf16.msra.mxu1 %v5708_v18 }
 0x2d5   :  { %v3555_v30 = vpop.f32.mrb[0].mxu0  ;;  %v3883_v31 = vpop.f32.mrb[0].mxu1 }
 0x2d6   :  { %v4845_v25 = vadd.f32 %v3555_v30, %v541_v13  ;;  %v4847_v32 = vadd.f32 %v3883_v31, %v549_v28  ;;  %v3557_v33 = vpop.f32.mrb[1].mxu0  ;;  %v3885_v34 = vpop.f32.mrb[1].mxu1 }
 0x2d7   :  { %v4846_v26 = vadd.f32 %v3557_v33, %v545_v29  ;;  %v4848_v36 = vadd.f32 %v3885_v34, %v553_v14  ;;  %v3559_v38 = vpop.f32.mrb[2].mxu0  ;;  %v3887_v21 = vpop.f32.mrb[2].mxu1 }
 0x2d8   :  { %v3890_v40 = vmax.f32 %v4845_v25, 0.0  ;;  %v3892_v27 = vmax.f32 %v4847_v32, 0.0  ;;  %v3560_v41 = vpop.f32.mrb[3].mxu0  ;;  %v3888_v43 = vpop.f32.mrb[3].mxu1 }
 0x2d9   :  { %v3891_v44 = vmax.f32 %v4846_v26, 0.0  ;;  %v3893_v42 = vmax.f32 %v4848_v36, 0.0 }
 0x2da   :  { %v3894_v46 = vpack.c.bf16 %v3890_v40, %v3890_v40  ;;  %v3896_v47 = vpack.c.bf16 %v3892_v27, %v3892_v27 }
 0x2db   :  { %v3895_v35 = vpack.c.bf16 %v3891_v44, %v3891_v44  ;;  %v3897_v45 = vpack.c.bf16 %v3893_v42, %v3893_v42 }
 0x2dd   :  { %4193 = vmatprep.mubr.bf16.mxu0 %v3895_v35  ;;  %4233 = vmatprep.mubr.bf16.mxu1 %v3897_v45 }
 0x2de   :  { %4194 = vmatmul.mubr.bf16.vlgmr.msra.gmra.mrb[4].mxu0 %v3894_v46  ;;  %4234 = vmatmul.mubr.bf16.vlgmr.msra.gmra.mrb[4].mxu1 %v3896_v47 }
 0x3b1   :  { %v4817_v37 = vpop.f32.mrb[4].mxu0  ;;  %v4839_v51 = vpop.f32.mrb[4].mxu1 }
 0x3b2   :  { %v4818_v54 = vpop.f32.mrb[5].mxu0  ;;  %v4840_v49 = vpop.f32.mrb[5].mxu1 }
 0x3b3   :  { %v4819_v39 = vadd.f32 %v4818_v54, %v4817_v37  ;;  %v4841_v55 = vadd.f32 %v4840_v49, %v4839_v51  ;;  %v4820_v56 = vpop.f32.mrb[6].mxu0  ;;  %v4842_v50 = vpop.f32.mrb[6].mxu1 }
 0x3b4   :  { %v4821_v48 = vpop.f32.mrb[7].mxu0  ;;  %v4843_v57 = vpop.f32.mrb[7].mxu1 }
 0x3b5   :  { %v4196_v58 = vadd.f32 %v4819_v39, %v4768_v53 }
 0x3b7   :  { %v4236_v59 = vadd.f32 %v4841_v55, %v4196_v58 }
 0x3b9   :  { %4241 = vst [vmem:[#allocation2] sm:$0x3] %v4236_v59 }
 0x3ba   :  { %5720 = shalt.err (!%p5717_p4)
}
 0x3bb   :  { %s5721_s15 = scalar_lea.hbm %s7514_s5, 32 }
 0x3bc   :  { %p5722_p5 = scmp.ne.s32.totalorder %s7514_s5, %s5721_s15  ;;  %p5725_p6 = scmp.lt.u32.totalorder %s5721_s15, %s7514_s5 }
 0x3be   :  { %p5727_p7 = pnand %p5725_p6, %p5722_p5 }
 0x3c0   :  { %5730 = shalt.err (!%p5727_p7)
}
 0x3c1   :  { %4251 = dma.vmem_to_hbm [thread:$0]  %s4249_s12, 32, %s7514_s5, [#allocation3]  }
 0x3c2   :  { %5731 = dma.done.wait [#allocation3], 32  }
 0x3c3   :  { %5732 = vsyncadd [#allocation3], 4294967264 }
 0x3c4   :  { %4255 = vsyncpa [#allocation3], 1 }

</bundles_post_ra>
